<compile_context>
chip_gen: v6e
topology: v6e:2x2x1
jax: 0.10.0
libtpu: 0.0.40
codegen_flags: <defaults>
</compile_context>

<pallas_src>
import math

import numpy as np

import jax
import jax.numpy as jnp
from jax.experimental import pallas as pl
from jax.experimental.pallas import tpu as pltpu

EPS = 1e-5


# --------------------------------------------------------------------------- #
# bilinear-interpolation helpers (compile-time constants)
# --------------------------------------------------------------------------- #
def _stencil(n_in, n_out):
    """Static (i0, i1, frac) taps for 1-D bilinear interp, align_corners=True."""
    if n_in == 1:
        return [(0, 0, 0.0)] * n_out
    scale = (n_in - 1) / (n_out - 1)
    taps = []
    for i in range(n_out):
        src = i * scale
        i0 = min(int(math.floor(src)), n_in - 1)
        i1 = min(i0 + 1, n_in - 1)
        taps.append((i0, i1, float(src - i0)))
    return taps


def _interp_matrix(n_in, n_out):
    u = np.zeros((n_out, n_in), np.float32)
    for o, (i0, i1, f) in enumerate(_stencil(n_in, n_out)):
        u[o, i0] += 1.0 - f
        u[o, i1] += f
    return u


# --------------------------------------------------------------------------- #
# kernel
# --------------------------------------------------------------------------- #
def _make_kernel(C2, count1, count2):
    def _sumall(v):  # (R, L) -> (1, 1), keep everything >= 2-D
        return jnp.sum(jnp.sum(v, axis=1, keepdims=True), axis=0, keepdims=True)

    def _bn(pre, masks, count):
        """Training-mode BatchNorm (gamma=1, beta=0), two-pass, over the masked
        valid positions.  The masks are also the per-channel lane selectors, so
        invalid (halo / F.pad) positions come out exactly zero."""
        r = 1.0 / count
        mu = None
        for m in masks:
            mu_c = _sumall(pre * m) * r
            mu = mu_c * m if mu is None else mu + mu_c * m
        d = pre - mu
        inv = None
        for m in masks:
            var_c = _sumall(d * d * m) * r
            inv_c = jax.lax.rsqrt(var_c + EPS)
            inv = inv_c * m if inv is None else inv + inv_c * m
        return d * inv

    def kernel(xw_ref, skip_ref, mw_ref, uhs_ref, b1_ref, t_ref,
               b2s_ref, b2y_ref, b3_ref, bias_ref, m1_ref, m2_ref, out_ref):
        f32 = jnp.float32
        dot = lambda a, b: jnp.dot(a, b, preferred_element_type=f32)

        # -- 1. bilinear upsample, W pass: one matmul into the lane-packed,
        #       column-padded grid layout (halo columns zero by construction).
        colp = dot(xw_ref[...], mw_ref[...])                       # (N*H, Sg*C)

        # -- 2. conv1 (2x2 valid) + BatchNorm.  The H pass of the upsample is
        #       folded into the per-row-tap interpolation matrices UhS[dy];
        #       the kx/cin contraction and F.pad offsets live in B1[dy].
        pre = dot(dot(uhs_ref[0], colp), b1_ref[0])
        pre = pre + dot(dot(uhs_ref[1], colp), b1_ref[1])          # (N*Hs, L2)
        m1 = [m1_ref[c] for c in range(C2)]
        y1 = _bn(pre + bias_ref[0:1, :], m1, count1)   # == F.pad(BN(conv1(up)))

        # -- 3. conv2 (3x3, pad=1) on cat([skip, y1]) + BatchNorm + ReLU.
        #       The channel concat is the sum of the two banded weight halves.
        skip = skip_ref[...]
        m2 = [m2_ref[c] for c in range(C2)]
        pre = None
        for d in range(3):
            td = t_ref[d]
            term = dot(dot(td, skip), b2s_ref[d]) + dot(dot(td, y1), b2y_ref[d])
            pre = term if pre is None else pre + term
        z2 = jnp.maximum(_bn(pre + bias_ref[1:2, :], m2, count2), 0.0)

        # -- 4. conv3 (3x3, pad=1) + BatchNorm + ReLU.
        pre = None
        for d in range(3):
            term = dot(dot(t_ref[d], z2), b3_ref[d])
            pre = term if pre is None else pre + term
        z3 = jnp.maximum(_bn(pre + bias_ref[2:3, :], m2, count2), 0.0)

        # -- 5. single unmasked, fully lane-dense output store.
        out_ref[...] = z3

    return kernel


# --------------------------------------------------------------------------- #
# wrapper-side constant construction (layout plumbing, done once per shape)
# --------------------------------------------------------------------------- #
def _build_constants(params, N, C, H, W, Hs, Ws):
    C2 = C // 2
    Ho, Wo = 2 * H, 2 * W
    H1, W1 = Ho - 1, Wo - 1
    assert Hs >= H1 and Ws >= W1
    py, px = (Hs - H1) // 2, (Ws - W1) // 2

    # padded grid width; round so the packed lane width is a multiple of 128.
    Sg = Ws + 2
    if 128 % C2 == 0:
        Sg = max(Sg, (-(-(Sg * C2) // 128) * 128) // C2)
    L2 = Sg * C2          # conv-output / 2-channel packed lane width
    LC = Sg * C           # conv1-input (full-channel) packed lane width
    NR = N * Hs           # stacked interior rows

    Uh = _interp_matrix(H, Ho)
    Uw = _interp_matrix(W, Wo)

    # W-pass interpolation, (w*C + c) -> (s*C + c) with s = wo + 1 (halo zero).
    Mw = np.zeros((W * C, LC), np.float32)
    for wo in range(Wo):
        for w in range(W):
            uw = Uw[wo, w]
            if uw != 0.0:
                for c in range(C):
                    Mw[w * C + c, (wo + 1) * C + c] = uw

    # H-pass interpolation with the conv1 row tap folded in (block-diag over n).
    UhS = np.zeros((2, NR, N * H), np.float32)
    for dy in range(2):
        for n in range(N):
            for Y in range(Hs):
                ho = Y - py + dy
                if 0 <= ho < Ho:
                    UhS[dy, n * Hs + Y, n * H:(n + 1) * H] = Uh[ho]

    # conv1 lane contraction (kx, cin) with the F.pad offset folded in.
    w1 = np.asarray(params["w1"], np.float32)            # (C2, C, 2, 2)
    B1 = np.zeros((2, LC, L2), np.float32)
    for dy in range(2):
        for x in range(W1):
            s_out = x + px + 1
            for kx in range(2):
                s_in = x + kx + 1
                for ci in range(C):
                    for co in range(C2):
                        B1[dy, s_in * C + ci, s_out * C2 + co] = w1[co, ci, dy, kx]

    # within-image row shift matrices (dy = -1, 0, +1), zero fill at the edges.
    T = np.zeros((3, NR, NR), np.float32)
    for d, dy in enumerate((-1, 0, 1)):
        for n in range(N):
            for Y in range(Hs):
                if 0 <= Y + dy < Hs:
                    T[d, n * Hs + Y, n * Hs + Y + dy] = 1.0

    # 3x3 banded lane-contraction matrices (conv halo handled by zero columns).
    def band(wm):                                         # wm: (C2, cin, 3, 3)
        out = np.zeros((3, L2, L2), np.float32)
        for d in range(3):
            for X in range(Ws):
                s_out = X + 1
                for dx in (-1, 0, 1):
                    s_in = s_out + dx
                    for ci in range(wm.shape[1]):
                        for co in range(C2):
                            out[d, s_in * C2 + ci, s_out * C2 + co] = wm[co, ci, d, dx + 1]
        return out

    w2 = np.asarray(params["w2"], np.float32)             # (C2, C, 3, 3)
    w3 = np.asarray(params["w3"], np.float32)             # (C2, C2, 3, 3)
    B2s = band(w2[:, :C2])
    B2y = band(w2[:, C2:])
    B3 = band(w3)

    # conv bias lane vectors.
    bvec = np.zeros((3, L2), np.float32)
    for k, b in enumerate((params["b1"], params["b2"], params["b3"])):
        b = np.asarray(b, np.float32)
        for s in range(Sg):
            bvec[k, s * C2:(s + 1) * C2] = b

    # per-output-channel validity masks (BN statistics + halo/F.pad zeroing).
    mask1 = np.zeros((C2, NR, L2), np.float32)
    mask2 = np.zeros((C2, NR, L2), np.float32)
    for n in range(N):
        for Y in range(Hs):
            r = n * Hs + Y
            for X in range(Ws):
                s = X + 1
                for co in range(C2):
                    mask2[co, r, s * C2 + co] = 1.0
                    if py <= Y < py + H1 and px <= X < px + W1:
                        mask1[co, r, s * C2 + co] = 1.0

    consts = (Mw, UhS, B1, T, B2s, B2y, B3, bvec, mask1, mask2)
    geom = dict(C2=C2, Sg=Sg, L2=L2, NR=NR,
                count1=N * H1 * W1, count2=N * Hs * Ws)
    return consts, geom


def expand_forward(x, skip, params):
    """PyTorch-layout (NCHW) in/out wrapper around the Pallas kernel."""
    N, C, H, W = x.shape
    C2 = C // 2
    Ns, Cs, Hs, Ws = skip.shape
    assert Ns == N and Cs == C2

    consts, g = _build_constants(params, N, C, H, W, Hs, Ws)
    Sg, L2, NR = g["Sg"], g["L2"], g["NR"]

    # data operands in the packed layout (wrapper-side layout plumbing only).
    xw = jnp.transpose(x.astype(jnp.float32), (0, 2, 3, 1)).reshape(N * H, W * C)
    skip_i = jnp.transpose(skip.astype(jnp.float32), (0, 2, 3, 1))
    skip_i = jnp.pad(skip_i, ((0, 0), (0, 0), (1, Sg - 1 - Ws), (0, 0)))
    skip_i = skip_i.reshape(NR, L2)

    operands = (xw, skip_i) + tuple(jnp.asarray(c) for c in consts)

    vmem = lambda: pl.BlockSpec(memory_space=pltpu.MemorySpace.VMEM)
    out = pl.pallas_call(
        _make_kernel(g["C2"], g["count1"], g["count2"]),
        out_shape=jax.ShapeDtypeStruct((NR, L2), jnp.float32),
        in_specs=[vmem() for _ in operands],
        out_specs=vmem(),
    )(*operands)

    out = out.reshape(N, Hs, Sg, C2)[:, :, 1:1 + Ws, :]
    return jnp.transpose(out, (0, 3, 1, 2))


# --------------------------------------------------------------------------- #
# pure-JAX (XLA) reference, full f32
# --------------------------------------------------------------------------- #
def reference_forward(x, skip, params):
    x = x.astype(jnp.float32)
    skip = skip.astype(jnp.float32)
    N, C, H, W = x.shape

    rows = []
    for (i0, i1, f) in _stencil(H, 2 * H):
        rows.append((1.0 - f) * x[:, :, i0, :] + f * x[:, :, i1, :])
    t = jnp.stack(rows, axis=2)
    cols = []
    for (j0, j1, g) in _stencil(W, 2 * W):
        cols.append((1.0 - g) * t[:, :, :, j0] + g * t[:, :, :, j1])
    up = jnp.stack(cols, axis=3)                          # (N, C, 2H, 2W)

    def conv(inp, w, b, pad):
        out = jax.lax.conv_general_dilated(
            inp, jnp.asarray(w, jnp.float32), (1, 1), [(pad, pad), (pad, pad)],
            dimension_numbers=("NCHW", "OIHW", "NCHW"),
            precision=jax.lax.Precision.HIGHEST)
        return out + jnp.asarray(b, jnp.float32)[None, :, None, None]

    def bn(v):
        m = jnp.mean(v, axis=(0, 2, 3), keepdims=True)
        var = jnp.mean((v - m) ** 2, axis=(0, 2, 3), keepdims=True)
        return (v - m) * jax.lax.rsqrt(var + EPS)

    y = bn(conv(up, params["w1"], params["b1"], 0))
    Hs, Ws = skip.shape[2], skip.shape[3]
    dY, dX = Hs - y.shape[2], Ws - y.shape[3]
    y = jnp.pad(y, ((0, 0), (0, 0), (dY // 2, dY - dY // 2), (dX // 2, dX - dX // 2)))
    z = jnp.concatenate([skip, y], axis=1)
    z = jax.nn.relu(bn(conv(z, params["w2"], params["b2"], 1)))
    z = jax.nn.relu(bn(conv(z, params["w3"], params["b3"], 1)))
    return z


# --------------------------------------------------------------------------- #
# driver
# --------------------------------------------------------------------------- #
if __name__ == "__main__":
    key = jax.random.PRNGKey(0)
    N, C, H, W = 2, 4, 16, 16            # input_channels = 4
    C2 = C // 2
    Hs, Ws = 2 * H, 2 * W                # skip-connection spatial size

    ks = jax.random.split(key, 8)
    x = jax.random.normal(ks[0], (N, C, H, W), jnp.float32)
    skip = jax.random.normal(ks[1], (N, C2, Hs, Ws), jnp.float32)
    params = {
        "w1": 0.2 * jax.random.normal(ks[2], (C2, C, 2, 2), jnp.float32),
        "b1": 0.1 * jax.random.normal(ks[3], (C2,), jnp.float32),
        "w2": 0.2 * jax.random.normal(ks[4], (C2, C, 3, 3), jnp.float32),
        "b2": 0.1 * jax.random.normal(ks[5], (C2,), jnp.float32),
        "w3": 0.2 * jax.random.normal(ks[6], (C2, C2, 3, 3), jnp.float32),
        "b3": 0.1 * jax.random.normal(ks[7], (C2,), jnp.float32),
    }

    out = jax.block_until_ready(expand_forward(x, skip, params))
    ref = jax.block_until_ready(reference_forward(x, skip, params))

    assert out.shape == (N, C2, Hs, Ws), out.shape
    if not jnp.allclose(out, ref, atol=2e-2, rtol=2e-2):
        max_err = float(jnp.max(jnp.abs(out - ref)))
        raise AssertionError(f"kernel/reference mismatch, max abs err={max_err}")
    print("KERNEL_OK")
</pallas_src>

<mosaic_0001>
module attributes {stable_mosaic.version = 11 : i64} {
  func.func @kernel(%arg0: memref<32x64xf32, #tpu.memory_space<vmem>>, %arg1: memref<64x128xf32, #tpu.memory_space<vmem>>, %arg2: memref<64x256xf32, #tpu.memory_space<vmem>>, %arg3: memref<2x64x32xf32, #tpu.memory_space<vmem>>, %arg4: memref<2x256x128xf32, #tpu.memory_space<vmem>>, %arg5: memref<3x64x64xf32, #tpu.memory_space<vmem>>, %arg6: memref<3x128x128xf32, #tpu.memory_space<vmem>>, %arg7: memref<3x128x128xf32, #tpu.memory_space<vmem>>, %arg8: memref<3x128x128xf32, #tpu.memory_space<vmem>>, %arg9: memref<3x128xf32, #tpu.memory_space<vmem>>, %arg10: memref<2x64x128xf32, #tpu.memory_space<vmem>>, %arg11: memref<2x64x128xf32, #tpu.memory_space<vmem>>, %arg12: memref<64x128xf32, #tpu.memory_space<vmem>>) attributes {dimension_semantics = [], scalar_prefetch = 0 : i64, scratch_operands = 0 : i64, tpu.core_type = #tpu.core_type<tc>} {
    %c0 = arith.constant 0 : index
    %c0_0 = arith.constant 0 : index
    %0 = vector.load %arg0[%c0, %c0_0] : memref<32x64xf32, #tpu.memory_space<vmem>>, vector<32x64xf32>
    %c0_1 = arith.constant 0 : index
    %c0_2 = arith.constant 0 : index
    %1 = vector.load %arg2[%c0_1, %c0_2] : memref<64x256xf32, #tpu.memory_space<vmem>>, vector<64x256xf32>
    %cst = arith.constant dense<0.000000e+00> : vector<32x256xf32>
    %2 = tpu.matmul %0, %1, %cst {dimension_numbers = #tpu.dot_dimension_numbers<[1], [0], [0], [1], [0, 0, 1, 1], [], []>} : vector<32x64xf32>, vector<64x256xf32>, vector<32x256xf32> -> vector<32x256xf32>
    %c0_3 = arith.constant 0 : index
    %c0_4 = arith.constant 0 : index
    %c0_5 = arith.constant 0 : index
    %3 = vector.load %arg3[%c0_3, %c0_4, %c0_5] : memref<2x64x32xf32, #tpu.memory_space<vmem>>, vector<1x64x32xf32>
    %4 = vector.shape_cast %3 : vector<1x64x32xf32> to vector<64x32xf32>
    %cst_6 = arith.constant dense<0.000000e+00> : vector<64x256xf32>
    %5 = tpu.matmul %4, %2, %cst_6 {dimension_numbers = #tpu.dot_dimension_numbers<[1], [0], [0], [1], [0, 0, 1, 1], [], []>} : vector<64x32xf32>, vector<32x256xf32>, vector<64x256xf32> -> vector<64x256xf32>
    %c0_7 = arith.constant 0 : index
    %c0_8 = arith.constant 0 : index
    %c0_9 = arith.constant 0 : index
    %6 = vector.load %arg4[%c0_7, %c0_8, %c0_9] : memref<2x256x128xf32, #tpu.memory_space<vmem>>, vector<1x256x128xf32>
    %7 = vector.shape_cast %6 : vector<1x256x128xf32> to vector<256x128xf32>
    %cst_10 = arith.constant dense<0.000000e+00> : vector<64x128xf32>
    %8 = tpu.matmul %5, %7, %cst_10 {dimension_numbers = #tpu.dot_dimension_numbers<[1], [0], [0], [1], [0, 0, 1, 1], [], []>} : vector<64x256xf32>, vector<256x128xf32>, vector<64x128xf32> -> vector<64x128xf32>
    %c1 = arith.constant 1 : index
    %c0_11 = arith.constant 0 : index
    %c0_12 = arith.constant 0 : index
    %9 = vector.load %arg3[%c1, %c0_11, %c0_12] : memref<2x64x32xf32, #tpu.memory_space<vmem>>, vector<1x64x32xf32>
    %10 = vector.shape_cast %9 : vector<1x64x32xf32> to vector<64x32xf32>
    %cst_13 = arith.constant dense<0.000000e+00> : vector<64x256xf32>
    %11 = tpu.matmul %10, %2, %cst_13 {dimension_numbers = #tpu.dot_dimension_numbers<[1], [0], [0], [1], [0, 0, 1, 1], [], []>} : vector<64x32xf32>, vector<32x256xf32>, vector<64x256xf32> -> vector<64x256xf32>
    %c1_14 = arith.constant 1 : index
    %c0_15 = arith.constant 0 : index
    %c0_16 = arith.constant 0 : index
    %12 = vector.load %arg4[%c1_14, %c0_15, %c0_16] : memref<2x256x128xf32, #tpu.memory_space<vmem>>, vector<1x256x128xf32>
    %13 = vector.shape_cast %12 : vector<1x256x128xf32> to vector<256x128xf32>
    %cst_17 = arith.constant dense<0.000000e+00> : vector<64x128xf32>
    %14 = tpu.matmul %11, %13, %cst_17 {dimension_numbers = #tpu.dot_dimension_numbers<[1], [0], [0], [1], [0, 0, 1, 1], [], []>} : vector<64x256xf32>, vector<256x128xf32>, vector<64x128xf32> -> vector<64x128xf32>
    %15 = arith.addf %8, %14 : vector<64x128xf32>
    %c0_18 = arith.constant 0 : index
    %c0_19 = arith.constant 0 : index
    %c0_20 = arith.constant 0 : index
    %16 = vector.load %arg10[%c0_18, %c0_19, %c0_20] : memref<2x64x128xf32, #tpu.memory_space<vmem>>, vector<1x64x128xf32>
    %17 = vector.shape_cast %16 : vector<1x64x128xf32> to vector<64x128xf32>
    %c1_21 = arith.constant 1 : index
    %c0_22 = arith.constant 0 : index
    %c0_23 = arith.constant 0 : index
    %18 = vector.load %arg10[%c1_21, %c0_22, %c0_23] : memref<2x64x128xf32, #tpu.memory_space<vmem>>, vector<1x64x128xf32>
    %19 = vector.shape_cast %18 : vector<1x64x128xf32> to vector<64x128xf32>
    %c0_24 = arith.constant 0 : index
    %c0_25 = arith.constant 0 : index
    %20 = vector.load %arg9[%c0_24, %c0_25] : memref<3x128xf32, #tpu.memory_space<vmem>>, vector<1x128xf32>
    %21 = vector.broadcast %20 : vector<1x128xf32> to vector<64x128xf32>
    %22 = arith.addf %15, %21 : vector<64x128xf32>
    %23 = arith.mulf %22, %17 : vector<64x128xf32>
    %cst_26 = arith.constant dense<0.000000e+00> : vector<64xf32>
    %24 = vector.multi_reduction <add>, %23, %cst_26 [1] : vector<64x128xf32> to vector<64xf32>
    %25 = vector.shape_cast %24 : vector<64xf32> to vector<64x1xf32>
    %cst_27 = arith.constant dense<0.000000e+00> : vector<1xf32>
    %26 = vector.multi_reduction <add>, %25, %cst_27 [0] : vector<64x1xf32> to vector<1xf32>
    %27 = vector.shape_cast %26 : vector<1xf32> to vector<1x1xf32>
    %cst_28 = arith.constant 5.20291389E-4 : f32
    %28 = vector.broadcast %cst_28 : f32 to vector<1x1xf32>
    %29 = arith.mulf %27, %28 : vector<1x1xf32>
    %30 = vector.broadcast %29 : vector<1x1xf32> to vector<64x128xf32>
    %31 = arith.mulf %30, %17 : vector<64x128xf32>
    %32 = arith.mulf %22, %19 : vector<64x128xf32>
    %cst_29 = arith.constant dense<0.000000e+00> : vector<64xf32>
    %33 = vector.multi_reduction <add>, %32, %cst_29 [1] : vector<64x128xf32> to vector<64xf32>
    %34 = vector.shape_cast %33 : vector<64xf32> to vector<64x1xf32>
    %cst_30 = arith.constant dense<0.000000e+00> : vector<1xf32>
    %35 = vector.multi_reduction <add>, %34, %cst_30 [0] : vector<64x1xf32> to vector<1xf32>
    %36 = vector.shape_cast %35 : vector<1xf32> to vector<1x1xf32>
    %cst_31 = arith.constant 5.20291389E-4 : f32
    %37 = vector.broadcast %cst_31 : f32 to vector<1x1xf32>
    %38 = arith.mulf %36, %37 : vector<1x1xf32>
    %39 = vector.broadcast %38 : vector<1x1xf32> to vector<64x128xf32>
    %40 = arith.mulf %39, %19 : vector<64x128xf32>
    %41 = arith.addf %31, %40 : vector<64x128xf32>
    %42 = arith.subf %22, %41 : vector<64x128xf32>
    %43 = arith.mulf %42, %42 : vector<64x128xf32>
    %44 = arith.mulf %43, %17 : vector<64x128xf32>
    %cst_32 = arith.constant dense<0.000000e+00> : vector<64xf32>
    %45 = vector.multi_reduction <add>, %44, %cst_32 [1] : vector<64x128xf32> to vector<64xf32>
    %46 = vector.shape_cast %45 : vector<64xf32> to vector<64x1xf32>
    %cst_33 = arith.constant dense<0.000000e+00> : vector<1xf32>
    %47 = vector.multi_reduction <add>, %46, %cst_33 [0] : vector<64x1xf32> to vector<1xf32>
    %48 = vector.shape_cast %47 : vector<1xf32> to vector<1x1xf32>
    %cst_34 = arith.constant 5.20291389E-4 : f32
    %49 = vector.broadcast %cst_34 : f32 to vector<1x1xf32>
    %50 = arith.mulf %48, %49 : vector<1x1xf32>
    %cst_35 = arith.constant 9.99999974E-6 : f32
    %51 = vector.broadcast %cst_35 : f32 to vector<1x1xf32>
    %52 = arith.addf %50, %51 : vector<1x1xf32>
    %53 = math.rsqrt %52 : vector<1x1xf32>
    %54 = vector.broadcast %53 : vector<1x1xf32> to vector<64x128xf32>
    %55 = arith.mulf %54, %17 : vector<64x128xf32>
    %56 = arith.mulf %42, %42 : vector<64x128xf32>
    %57 = arith.mulf %56, %19 : vector<64x128xf32>
    %cst_36 = arith.constant dense<0.000000e+00> : vector<64xf32>
    %58 = vector.multi_reduction <add>, %57, %cst_36 [1] : vector<64x128xf32> to vector<64xf32>
    %59 = vector.shape_cast %58 : vector<64xf32> to vector<64x1xf32>
    %cst_37 = arith.constant dense<0.000000e+00> : vector<1xf32>
    %60 = vector.multi_reduction <add>, %59, %cst_37 [0] : vector<64x1xf32> to vector<1xf32>
    %61 = vector.shape_cast %60 : vector<1xf32> to vector<1x1xf32>
    %cst_38 = arith.constant 5.20291389E-4 : f32
    %62 = vector.broadcast %cst_38 : f32 to vector<1x1xf32>
    %63 = arith.mulf %61, %62 : vector<1x1xf32>
    %cst_39 = arith.constant 9.99999974E-6 : f32
    %64 = vector.broadcast %cst_39 : f32 to vector<1x1xf32>
    %65 = arith.addf %63, %64 : vector<1x1xf32>
    %66 = math.rsqrt %65 : vector<1x1xf32>
    %67 = vector.broadcast %66 : vector<1x1xf32> to vector<64x128xf32>
    %68 = arith.mulf %67, %19 : vector<64x128xf32>
    %69 = arith.addf %55, %68 : vector<64x128xf32>
    %70 = arith.mulf %42, %69 : vector<64x128xf32>
    %c0_40 = arith.constant 0 : index
    %c0_41 = arith.constant 0 : index
    %71 = vector.load %arg1[%c0_40, %c0_41] : memref<64x128xf32, #tpu.memory_space<vmem>>, vector<64x128xf32>
    %c0_42 = arith.constant 0 : index
    %c0_43 = arith.constant 0 : index
    %c0_44 = arith.constant 0 : index
    %72 = vector.load %arg11[%c0_42, %c0_43, %c0_44] : memref<2x64x128xf32, #tpu.memory_space<vmem>>, vector<1x64x128xf32>
    %73 = vector.shape_cast %72 : vector<1x64x128xf32> to vector<64x128xf32>
    %c1_45 = arith.constant 1 : index
    %c0_46 = arith.constant 0 : index
    %c0_47 = arith.constant 0 : index
    %74 = vector.load %arg11[%c1_45, %c0_46, %c0_47] : memref<2x64x128xf32, #tpu.memory_space<vmem>>, vector<1x64x128xf32>
    %75 = vector.shape_cast %74 : vector<1x64x128xf32> to vector<64x128xf32>
    %c0_48 = arith.constant 0 : index
    %c0_49 = arith.constant 0 : index
    %c0_50 = arith.constant 0 : index
    %76 = vector.load %arg5[%c0_48, %c0_49, %c0_50] : memref<3x64x64xf32, #tpu.memory_space<vmem>>, vector<1x64x64xf32>
    %77 = vector.shape_cast %76 : vector<1x64x64xf32> to vector<64x64xf32>
    %cst_51 = arith.constant dense<0.000000e+00> : vector<64x128xf32>
    %78 = tpu.matmul %77, %71, %cst_51 {dimension_numbers = #tpu.dot_dimension_numbers<[1], [0], [0], [1], [0, 0, 1, 1], [], []>} : vector<64x64xf32>, vector<64x128xf32>, vector<64x128xf32> -> vector<64x128xf32>
    %c0_52 = arith.constant 0 : index
    %c0_53 = arith.constant 0 : index
    %c0_54 = arith.constant 0 : index
    %79 = vector.load %arg6[%c0_52, %c0_53, %c0_54] : memref<3x128x128xf32, #tpu.memory_space<vmem>>, vector<1x128x128xf32>
    %80 = vector.shape_cast %79 : vector<1x128x128xf32> to vector<128x128xf32>
    %cst_55 = arith.constant dense<0.000000e+00> : vector<64x128xf32>
    %81 = tpu.matmul %78, %80, %cst_55 {dimension_numbers = #tpu.dot_dimension_numbers<[1], [0], [0], [1], [0, 0, 1, 1], [], []>} : vector<64x128xf32>, vector<128x128xf32>, vector<64x128xf32> -> vector<64x128xf32>
    %cst_56 = arith.constant dense<0.000000e+00> : vector<64x128xf32>
    %82 = tpu.matmul %77, %70, %cst_56 {dimension_numbers = #tpu.dot_dimension_numbers<[1], [0], [0], [1], [0, 0, 1, 1], [], []>} : vector<64x64xf32>, vector<64x128xf32>, vector<64x128xf32> -> vector<64x128xf32>
    %c0_57 = arith.constant 0 : index
    %c0_58 = arith.constant 0 : index
    %c0_59 = arith.constant 0 : index
    %83 = vector.load %arg7[%c0_57, %c0_58, %c0_59] : memref<3x128x128xf32, #tpu.memory_space<vmem>>, vector<1x128x128xf32>
    %84 = vector.shape_cast %83 : vector<1x128x128xf32> to vector<128x128xf32>
    %cst_60 = arith.constant dense<0.000000e+00> : vector<64x128xf32>
    %85 = tpu.matmul %82, %84, %cst_60 {dimension_numbers = #tpu.dot_dimension_numbers<[1], [0], [0], [1], [0, 0, 1, 1], [], []>} : vector<64x128xf32>, vector<128x128xf32>, vector<64x128xf32> -> vector<64x128xf32>
    %86 = arith.addf %81, %85 : vector<64x128xf32>
    %c1_61 = arith.constant 1 : index
    %c0_62 = arith.constant 0 : index
    %c0_63 = arith.constant 0 : index
    %87 = vector.load %arg5[%c1_61, %c0_62, %c0_63] : memref<3x64x64xf32, #tpu.memory_space<vmem>>, vector<1x64x64xf32>
    %88 = vector.shape_cast %87 : vector<1x64x64xf32> to vector<64x64xf32>
    %cst_64 = arith.constant dense<0.000000e+00> : vector<64x128xf32>
    %89 = tpu.matmul %88, %71, %cst_64 {dimension_numbers = #tpu.dot_dimension_numbers<[1], [0], [0], [1], [0, 0, 1, 1], [], []>} : vector<64x64xf32>, vector<64x128xf32>, vector<64x128xf32> -> vector<64x128xf32>
    %c1_65 = arith.constant 1 : index
    %c0_66 = arith.constant 0 : index
    %c0_67 = arith.constant 0 : index
    %90 = vector.load %arg6[%c1_65, %c0_66, %c0_67] : memref<3x128x128xf32, #tpu.memory_space<vmem>>, vector<1x128x128xf32>
    %91 = vector.shape_cast %90 : vector<1x128x128xf32> to vector<128x128xf32>
    %cst_68 = arith.constant dense<0.000000e+00> : vector<64x128xf32>
    %92 = tpu.matmul %89, %91, %cst_68 {dimension_numbers = #tpu.dot_dimension_numbers<[1], [0], [0], [1], [0, 0, 1, 1], [], []>} : vector<64x128xf32>, vector<128x128xf32>, vector<64x128xf32> -> vector<64x128xf32>
    %cst_69 = arith.constant dense<0.000000e+00> : vector<64x128xf32>
    %93 = tpu.matmul %88, %70, %cst_69 {dimension_numbers = #tpu.dot_dimension_numbers<[1], [0], [0], [1], [0, 0, 1, 1], [], []>} : vector<64x64xf32>, vector<64x128xf32>, vector<64x128xf32> -> vector<64x128xf32>
    %c1_70 = arith.constant 1 : index
    %c0_71 = arith.constant 0 : index
    %c0_72 = arith.constant 0 : index
    %94 = vector.load %arg7[%c1_70, %c0_71, %c0_72] : memref<3x128x128xf32, #tpu.memory_space<vmem>>, vector<1x128x128xf32>
    %95 = vector.shape_cast %94 : vector<1x128x128xf32> to vector<128x128xf32>
    %cst_73 = arith.constant dense<0.000000e+00> : vector<64x128xf32>
    %96 = tpu.matmul %93, %95, %cst_73 {dimension_numbers = #tpu.dot_dimension_numbers<[1], [0], [0], [1], [0, 0, 1, 1], [], []>} : vector<64x128xf32>, vector<128x128xf32>, vector<64x128xf32> -> vector<64x128xf32>
    %97 = arith.addf %92, %96 : vector<64x128xf32>
    %98 = arith.addf %86, %97 : vector<64x128xf32>
    %c2 = arith.constant 2 : index
    %c0_74 = arith.constant 0 : index
    %c0_75 = arith.constant 0 : index
    %99 = vector.load %arg5[%c2, %c0_74, %c0_75] : memref<3x64x64xf32, #tpu.memory_space<vmem>>, vector<1x64x64xf32>
    %100 = vector.shape_cast %99 : vector<1x64x64xf32> to vector<64x64xf32>
    %cst_76 = arith.constant dense<0.000000e+00> : vector<64x128xf32>
    %101 = tpu.matmul %100, %71, %cst_76 {dimension_numbers = #tpu.dot_dimension_numbers<[1], [0], [0], [1], [0, 0, 1, 1], [], []>} : vector<64x64xf32>, vector<64x128xf32>, vector<64x128xf32> -> vector<64x128xf32>
    %c2_77 = arith.constant 2 : index
    %c0_78 = arith.constant 0 : index
    %c0_79 = arith.constant 0 : index
    %102 = vector.load %arg6[%c2_77, %c0_78, %c0_79] : memref<3x128x128xf32, #tpu.memory_space<vmem>>, vector<1x128x128xf32>
    %103 = vector.shape_cast %102 : vector<1x128x128xf32> to vector<128x128xf32>
    %cst_80 = arith.constant dense<0.000000e+00> : vector<64x128xf32>
    %104 = tpu.matmul %101, %103, %cst_80 {dimension_numbers = #tpu.dot_dimension_numbers<[1], [0], [0], [1], [0, 0, 1, 1], [], []>} : vector<64x128xf32>, vector<128x128xf32>, vector<64x128xf32> -> vector<64x128xf32>
    %cst_81 = arith.constant dense<0.000000e+00> : vector<64x128xf32>
    %105 = tpu.matmul %100, %70, %cst_81 {dimension_numbers = #tpu.dot_dimension_numbers<[1], [0], [0], [1], [0, 0, 1, 1], [], []>} : vector<64x64xf32>, vector<64x128xf32>, vector<64x128xf32> -> vector<64x128xf32>
    %c2_82 = arith.constant 2 : index
    %c0_83 = arith.constant 0 : index
    %c0_84 = arith.constant 0 : index
    %106 = vector.load %arg7[%c2_82, %c0_83, %c0_84] : memref<3x128x128xf32, #tpu.memory_space<vmem>>, vector<1x128x128xf32>
    %107 = vector.shape_cast %106 : vector<1x128x128xf32> to vector<128x128xf32>
    %cst_85 = arith.constant dense<0.000000e+00> : vector<64x128xf32>
    %108 = tpu.matmul %105, %107, %cst_85 {dimension_numbers = #tpu.dot_dimension_numbers<[1], [0], [0], [1], [0, 0, 1, 1], [], []>} : vector<64x128xf32>, vector<128x128xf32>, vector<64x128xf32> -> vector<64x128xf32>
    %109 = arith.addf %104, %108 : vector<64x128xf32>
    %110 = arith.addf %98, %109 : vector<64x128xf32>
    %c1_86 = arith.constant 1 : index
    %c0_87 = arith.constant 0 : index
    %111 = vector.load %arg9[%c1_86, %c0_87] : memref<3x128xf32, #tpu.memory_space<vmem>>, vector<1x128xf32>
    %112 = vector.broadcast %111 : vector<1x128xf32> to vector<64x128xf32>
    %113 = arith.addf %110, %112 : vector<64x128xf32>
    %114 = arith.mulf %113, %73 : vector<64x128xf32>
    %cst_88 = arith.constant dense<0.000000e+00> : vector<64xf32>
    %115 = vector.multi_reduction <add>, %114, %cst_88 [1] : vector<64x128xf32> to vector<64xf32>
    %116 = vector.shape_cast %115 : vector<64xf32> to vector<64x1xf32>
    %cst_89 = arith.constant dense<0.000000e+00> : vector<1xf32>
    %117 = vector.multi_reduction <add>, %116, %cst_89 [0] : vector<64x1xf32> to vector<1xf32>
    %118 = vector.shape_cast %117 : vector<1xf32> to vector<1x1xf32>
    %cst_90 = arith.constant 4.8828125E-4 : f32
    %119 = vector.broadcast %cst_90 : f32 to vector<1x1xf32>
    %120 = arith.mulf %118, %119 : vector<1x1xf32>
    %121 = vector.broadcast %120 : vector<1x1xf32> to vector<64x128xf32>
    %122 = arith.mulf %121, %73 : vector<64x128xf32>
    %123 = arith.mulf %113, %75 : vector<64x128xf32>
    %cst_91 = arith.constant dense<0.000000e+00> : vector<64xf32>
    %124 = vector.multi_reduction <add>, %123, %cst_91 [1] : vector<64x128xf32> to vector<64xf32>
    %125 = vector.shape_cast %124 : vector<64xf32> to vector<64x1xf32>
    %cst_92 = arith.constant dense<0.000000e+00> : vector<1xf32>
    %126 = vector.multi_reduction <add>, %125, %cst_92 [0] : vector<64x1xf32> to vector<1xf32>
    %127 = vector.shape_cast %126 : vector<1xf32> to vector<1x1xf32>
    %cst_93 = arith.constant 4.8828125E-4 : f32
    %128 = vector.broadcast %cst_93 : f32 to vector<1x1xf32>
    %129 = arith.mulf %127, %128 : vector<1x1xf32>
    %130 = vector.broadcast %129 : vector<1x1xf32> to vector<64x128xf32>
    %131 = arith.mulf %130, %75 : vector<64x128xf32>
    %132 = arith.addf %122, %131 : vector<64x128xf32>
    %133 = arith.subf %113, %132 : vector<64x128xf32>
    %134 = arith.mulf %133, %133 : vector<64x128xf32>
    %135 = arith.mulf %134, %73 : vector<64x128xf32>
    %cst_94 = arith.constant dense<0.000000e+00> : vector<64xf32>
    %136 = vector.multi_reduction <add>, %135, %cst_94 [1] : vector<64x128xf32> to vector<64xf32>
    %137 = vector.shape_cast %136 : vector<64xf32> to vector<64x1xf32>
    %cst_95 = arith.constant dense<0.000000e+00> : vector<1xf32>
    %138 = vector.multi_reduction <add>, %137, %cst_95 [0] : vector<64x1xf32> to vector<1xf32>
    %139 = vector.shape_cast %138 : vector<1xf32> to vector<1x1xf32>
    %cst_96 = arith.constant 4.8828125E-4 : f32
    %140 = vector.broadcast %cst_96 : f32 to vector<1x1xf32>
    %141 = arith.mulf %139, %140 : vector<1x1xf32>
    %cst_97 = arith.constant 9.99999974E-6 : f32
    %142 = vector.broadcast %cst_97 : f32 to vector<1x1xf32>
    %143 = arith.addf %141, %142 : vector<1x1xf32>
    %144 = math.rsqrt %143 : vector<1x1xf32>
    %145 = vector.broadcast %144 : vector<1x1xf32> to vector<64x128xf32>
    %146 = arith.mulf %145, %73 : vector<64x128xf32>
    %147 = arith.mulf %133, %133 : vector<64x128xf32>
    %148 = arith.mulf %147, %75 : vector<64x128xf32>
    %cst_98 = arith.constant dense<0.000000e+00> : vector<64xf32>
    %149 = vector.multi_reduction <add>, %148, %cst_98 [1] : vector<64x128xf32> to vector<64xf32>
    %150 = vector.shape_cast %149 : vector<64xf32> to vector<64x1xf32>
    %cst_99 = arith.constant dense<0.000000e+00> : vector<1xf32>
    %151 = vector.multi_reduction <add>, %150, %cst_99 [0] : vector<64x1xf32> to vector<1xf32>
    %152 = vector.shape_cast %151 : vector<1xf32> to vector<1x1xf32>
    %cst_100 = arith.constant 4.8828125E-4 : f32
    %153 = vector.broadcast %cst_100 : f32 to vector<1x1xf32>
    %154 = arith.mulf %152, %153 : vector<1x1xf32>
    %cst_101 = arith.constant 9.99999974E-6 : f32
    %155 = vector.broadcast %cst_101 : f32 to vector<1x1xf32>
    %156 = arith.addf %154, %155 : vector<1x1xf32>
    %157 = math.rsqrt %156 : vector<1x1xf32>
    %158 = vector.broadcast %157 : vector<1x1xf32> to vector<64x128xf32>
    %159 = arith.mulf %158, %75 : vector<64x128xf32>
    %160 = arith.addf %146, %159 : vector<64x128xf32>
    %161 = arith.mulf %133, %160 : vector<64x128xf32>
    %cst_102 = arith.constant 0.000000e+00 : f32
    %162 = vector.broadcast %cst_102 : f32 to vector<64x128xf32>
    %163 = arith.maximumf %161, %162 : vector<64x128xf32>
    %c0_103 = arith.constant 0 : index
    %c0_104 = arith.constant 0 : index
    %c0_105 = arith.constant 0 : index
    %164 = vector.load %arg5[%c0_103, %c0_104, %c0_105] : memref<3x64x64xf32, #tpu.memory_space<vmem>>, vector<1x64x64xf32>
    %165 = vector.shape_cast %164 : vector<1x64x64xf32> to vector<64x64xf32>
    %cst_106 = arith.constant dense<0.000000e+00> : vector<64x128xf32>
    %166 = tpu.matmul %165, %163, %cst_106 {dimension_numbers = #tpu.dot_dimension_numbers<[1], [0], [0], [1], [0, 0, 1, 1], [], []>} : vector<64x64xf32>, vector<64x128xf32>, vector<64x128xf32> -> vector<64x128xf32>
    %c0_107 = arith.constant 0 : index
    %c0_108 = arith.constant 0 : index
    %c0_109 = arith.constant 0 : index
    %167 = vector.load %arg8[%c0_107, %c0_108, %c0_109] : memref<3x128x128xf32, #tpu.memory_space<vmem>>, vector<1x128x128xf32>
    %168 = vector.shape_cast %167 : vector<1x128x128xf32> to vector<128x128xf32>
    %cst_110 = arith.constant dense<0.000000e+00> : vector<64x128xf32>
    %169 = tpu.matmul %166, %168, %cst_110 {dimension_numbers = #tpu.dot_dimension_numbers<[1], [0], [0], [1], [0, 0, 1, 1], [], []>} : vector<64x128xf32>, vector<128x128xf32>, vector<64x128xf32> -> vector<64x128xf32>
    %c1_111 = arith.constant 1 : index
    %c0_112 = arith.constant 0 : index
    %c0_113 = arith.constant 0 : index
    %170 = vector.load %arg5[%c1_111, %c0_112, %c0_113] : memref<3x64x64xf32, #tpu.memory_space<vmem>>, vector<1x64x64xf32>
    %171 = vector.shape_cast %170 : vector<1x64x64xf32> to vector<64x64xf32>
    %cst_114 = arith.constant dense<0.000000e+00> : vector<64x128xf32>
    %172 = tpu.matmul %171, %163, %cst_114 {dimension_numbers = #tpu.dot_dimension_numbers<[1], [0], [0], [1], [0, 0, 1, 1], [], []>} : vector<64x64xf32>, vector<64x128xf32>, vector<64x128xf32> -> vector<64x128xf32>
    %c1_115 = arith.constant 1 : index
    %c0_116 = arith.constant 0 : index
    %c0_117 = arith.constant 0 : index
    %173 = vector.load %arg8[%c1_115, %c0_116, %c0_117] : memref<3x128x128xf32, #tpu.memory_space<vmem>>, vector<1x128x128xf32>
    %174 = vector.shape_cast %173 : vector<1x128x128xf32> to vector<128x128xf32>
    %cst_118 = arith.constant dense<0.000000e+00> : vector<64x128xf32>
    %175 = tpu.matmul %172, %174, %cst_118 {dimension_numbers = #tpu.dot_dimension_numbers<[1], [0], [0], [1], [0, 0, 1, 1], [], []>} : vector<64x128xf32>, vector<128x128xf32>, vector<64x128xf32> -> vector<64x128xf32>
    %176 = arith.addf %169, %175 : vector<64x128xf32>
    %c2_119 = arith.constant 2 : index
    %c0_120 = arith.constant 0 : index
    %c0_121 = arith.constant 0 : index
    %177 = vector.load %arg5[%c2_119, %c0_120, %c0_121] : memref<3x64x64xf32, #tpu.memory_space<vmem>>, vector<1x64x64xf32>
    %178 = vector.shape_cast %177 : vector<1x64x64xf32> to vector<64x64xf32>
    %cst_122 = arith.constant dense<0.000000e+00> : vector<64x128xf32>
    %179 = tpu.matmul %178, %163, %cst_122 {dimension_numbers = #tpu.dot_dimension_numbers<[1], [0], [0], [1], [0, 0, 1, 1], [], []>} : vector<64x64xf32>, vector<64x128xf32>, vector<64x128xf32> -> vector<64x128xf32>
    %c2_123 = arith.constant 2 : index
    %c0_124 = arith.constant 0 : index
    %c0_125 = arith.constant 0 : index
    %180 = vector.load %arg8[%c2_123, %c0_124, %c0_125] : memref<3x128x128xf32, #tpu.memory_space<vmem>>, vector<1x128x128xf32>
    %181 = vector.shape_cast %180 : vector<1x128x128xf32> to vector<128x128xf32>
    %cst_126 = arith.constant dense<0.000000e+00> : vector<64x128xf32>
    %182 = tpu.matmul %179, %181, %cst_126 {dimension_numbers = #tpu.dot_dimension_numbers<[1], [0], [0], [1], [0, 0, 1, 1], [], []>} : vector<64x128xf32>, vector<128x128xf32>, vector<64x128xf32> -> vector<64x128xf32>
    %183 = arith.addf %176, %182 : vector<64x128xf32>
    %c2_127 = arith.constant 2 : index
    %c0_128 = arith.constant 0 : index
    %184 = vector.load %arg9[%c2_127, %c0_128] : memref<3x128xf32, #tpu.memory_space<vmem>>, vector<1x128xf32>
    %185 = vector.broadcast %184 : vector<1x128xf32> to vector<64x128xf32>
    %186 = arith.addf %183, %185 : vector<64x128xf32>
    %187 = arith.mulf %186, %73 : vector<64x128xf32>
    %cst_129 = arith.constant dense<0.000000e+00> : vector<64xf32>
    %188 = vector.multi_reduction <add>, %187, %cst_129 [1] : vector<64x128xf32> to vector<64xf32>
    %189 = vector.shape_cast %188 : vector<64xf32> to vector<64x1xf32>
    %cst_130 = arith.constant dense<0.000000e+00> : vector<1xf32>
    %190 = vector.multi_reduction <add>, %189, %cst_130 [0] : vector<64x1xf32> to vector<1xf32>
    %191 = vector.shape_cast %190 : vector<1xf32> to vector<1x1xf32>
    %cst_131 = arith.constant 4.8828125E-4 : f32
    %192 = vector.broadcast %cst_131 : f32 to vector<1x1xf32>
    %193 = arith.mulf %191, %192 : vector<1x1xf32>
    %194 = vector.broadcast %193 : vector<1x1xf32> to vector<64x128xf32>
    %195 = arith.mulf %194, %73 : vector<64x128xf32>
    %196 = arith.mulf %186, %75 : vector<64x128xf32>
    %cst_132 = arith.constant dense<0.000000e+00> : vector<64xf32>
    %197 = vector.multi_reduction <add>, %196, %cst_132 [1] : vector<64x128xf32> to vector<64xf32>
    %198 = vector.shape_cast %197 : vector<64xf32> to vector<64x1xf32>
    %cst_133 = arith.constant dense<0.000000e+00> : vector<1xf32>
    %199 = vector.multi_reduction <add>, %198, %cst_133 [0] : vector<64x1xf32> to vector<1xf32>
    %200 = vector.shape_cast %199 : vector<1xf32> to vector<1x1xf32>
    %cst_134 = arith.constant 4.8828125E-4 : f32
    %201 = vector.broadcast %cst_134 : f32 to vector<1x1xf32>
    %202 = arith.mulf %200, %201 : vector<1x1xf32>
    %203 = vector.broadcast %202 : vector<1x1xf32> to vector<64x128xf32>
    %204 = arith.mulf %203, %75 : vector<64x128xf32>
    %205 = arith.addf %195, %204 : vector<64x128xf32>
    %206 = arith.subf %186, %205 : vector<64x128xf32>
    %207 = arith.mulf %206, %206 : vector<64x128xf32>
    %208 = arith.mulf %207, %73 : vector<64x128xf32>
    %cst_135 = arith.constant dense<0.000000e+00> : vector<64xf32>
    %209 = vector.multi_reduction <add>, %208, %cst_135 [1] : vector<64x128xf32> to vector<64xf32>
    %210 = vector.shape_cast %209 : vector<64xf32> to vector<64x1xf32>
    %cst_136 = arith.constant dense<0.000000e+00> : vector<1xf32>
    %211 = vector.multi_reduction <add>, %210, %cst_136 [0] : vector<64x1xf32> to vector<1xf32>
    %212 = vector.shape_cast %211 : vector<1xf32> to vector<1x1xf32>
    %cst_137 = arith.constant 4.8828125E-4 : f32
    %213 = vector.broadcast %cst_137 : f32 to vector<1x1xf32>
    %214 = arith.mulf %212, %213 : vector<1x1xf32>
    %cst_138 = arith.constant 9.99999974E-6 : f32
    %215 = vector.broadcast %cst_138 : f32 to vector<1x1xf32>
    %216 = arith.addf %214, %215 : vector<1x1xf32>
    %217 = math.rsqrt %216 : vector<1x1xf32>
    %218 = vector.broadcast %217 : vector<1x1xf32> to vector<64x128xf32>
    %219 = arith.mulf %218, %73 : vector<64x128xf32>
    %220 = arith.mulf %206, %206 : vector<64x128xf32>
    %221 = arith.mulf %220, %75 : vector<64x128xf32>
    %cst_139 = arith.constant dense<0.000000e+00> : vector<64xf32>
    %222 = vector.multi_reduction <add>, %221, %cst_139 [1] : vector<64x128xf32> to vector<64xf32>
    %223 = vector.shape_cast %222 : vector<64xf32> to vector<64x1xf32>
    %cst_140 = arith.constant dense<0.000000e+00> : vector<1xf32>
    %224 = vector.multi_reduction <add>, %223, %cst_140 [0] : vector<64x1xf32> to vector<1xf32>
    %225 = vector.shape_cast %224 : vector<1xf32> to vector<1x1xf32>
    %cst_141 = arith.constant 4.8828125E-4 : f32
    %226 = vector.broadcast %cst_141 : f32 to vector<1x1xf32>
    %227 = arith.mulf %225, %226 : vector<1x1xf32>
    %cst_142 = arith.constant 9.99999974E-6 : f32
    %228 = vector.broadcast %cst_142 : f32 to vector<1x1xf32>
    %229 = arith.addf %227, %228 : vector<1x1xf32>
    %230 = math.rsqrt %229 : vector<1x1xf32>
    %231 = vector.broadcast %230 : vector<1x1xf32> to vector<64x128xf32>
    %232 = arith.mulf %231, %75 : vector<64x128xf32>
    %233 = arith.addf %219, %232 : vector<64x128xf32>
    %234 = arith.mulf %206, %233 : vector<64x128xf32>
    %cst_143 = arith.constant 0.000000e+00 : f32
    %235 = vector.broadcast %cst_143 : f32 to vector<64x128xf32>
    %236 = arith.maximumf %234, %235 : vector<64x128xf32>
    %c0_144 = arith.constant 0 : index
    %c0_145 = arith.constant 0 : index
    %237 = vector.load %arg12[%c0_144, %c0_145] : memref<64x128xf32, #tpu.memory_space<vmem>>, vector<64x128xf32>
    tpu.vector_store %arg12[%c0_144, %c0_145], %236 {strides = array<i32>} : memref<64x128xf32, #tpu.memory_space<vmem>>, vector<64x128xf32>,
    return
  }
}

</mosaic_0001>

<bundles_post_ra>
// kernel: tpu_custom_call.1
= control target key start
LH: loop header
LB: loop body
LE: loop exit
PB: predicated region body
PF: predicated region fallthrough
CT: control target
= control target key end

     0   :  { %17 = vsyncpa [#allocation3], 0  ;;  %s6645_s0 = inlined_call_operand.hbm [shape: f32[32,64], index: 0, kind: input, shape index: {}]   ;;  %s6646_s1 = inlined_call_operand.hbm [shape: f32[64,128], index: 1, kind: input, shape index: {}]   ;;  %s6647_s2 = inlined_call_operand.hbm [shape: f32[64,256], index: 2, kind: input, shape index: {}]   ;;  %s6648_s3 = inlined_call_operand.vmem [shape: f32[2,64,32], index: 3, kind: input, shape index: {}]   ;;  %s6649_s4 = inlined_call_operand.hbm [shape: f32[2,256,128], index: 4, kind: input, shape index: {}]   ;;  %s6650_s5 = inlined_call_operand.vmem [shape: f32[3,64,64], index: 5, kind: input, shape index: {}]   ;;  %s6651_s6 = inlined_call_operand.hbm [shape: f32[3,128,128], index: 6, kind: input, shape index: {}]   ;;  %s6652_s7 = inlined_call_operand.hbm [shape: f32[3,128,128], index: 7, kind: input, shape index: {}]   ;;  %s6653_s8 = inlined_call_operand.hbm [shape: f32[3,128,128], index: 8, kind: input, shape index: {}]   ;;  %s6654_s9 = inlined_call_operand.vmem [shape: f32[3,128], index: 9, kind: input, shape index: {}]   ;;  %s6655_s10 = inlined_call_operand.hbm [shape: f32[2,64,128], index: 10, kind: input, shape index: {}]   ;;  %s6656_s11 = inlined_call_operand.hbm [shape: f32[2,64,128], index: 11, kind: input, shape index: {}]   ;;  %s6657_s12 = inlined_call_operand.hbm [shape: f32[64,128], index: 12, kind: output, shape index: {}]  }
   0x1   :  { %18 = vsyncpa [#allocation6], 0 }
   0x2   :  { %19 = vsyncpa [#allocation9], 0 }
   0x3   :  { %20 = vsyncpa [#allocation12], 0 }
   0x4   :  { %21 = vsyncpa [#allocation15], 0 }
   0x5   :  { %22 = vsyncpa [#allocation4], 0  ;;  %s5358_s21 = smov [#allocation5]   ;;  %s5359_s23 = smov [#allocation8]  }
   0x6   :  { %s40_s22 = sshll.u32 %s5358_s21, 4  ;;  %s66_s24 = sshll.u32 %s5359_s23, 4  ;;  %s41_s22 = int_to_ptr.vmem [resolvable:$true] %s40_s22  ;;  %s67_s24 = int_to_ptr.vmem [resolvable:$true] %s66_s24 }
   0x7   :  { %s5154_s25 = scalar_lea.vmem %s41_s22, 1024  ;;  %p5159_p1 = scmp.lt.s32.totalorder %s41_s22, %s41_s22 }
   0x8   :  { %p5155_p0 = scmp.ne.s32.totalorder %s41_s22, %s5154_s25  ;;  %p5160_p2 = scmp.lt.s32.totalorder %s5154_s25, %s5154_s25 }
   0xa   :  { %p5161_p3 = por %p5160_p2, %p5159_p1 }
   0xc   :  { %p5162_p4 = pnand %p5161_p3, %p5155_p0 }
   0xe   :  { %5165 = shalt.err (!%p5162_p4)
}
   0xf   :  { %s5360_s26 = smov 128   ;;  %s5361_s27 = smov 8  }
  0x10   :  { %46 = dma.hbm_to_vmem [thread:$0]  %s6646_s1, 1024, %s41_s22, [#allocation6], %s5360_s26, %s5360_s26, %s5361_s27  }
  0x11   :  { %s5174_s30 = scalar_lea.vmem %s67_s24, 8192  ;;  %p5179_p6 = scmp.lt.s32.totalorder %s67_s24, %s67_s24 }
  0x12   :  { %p5175_p5 = scmp.ne.s32.totalorder %s67_s24, %s5174_s30  ;;  %p5180_p7 = scmp.lt.s32.totalorder %s5174_s30, %s5174_s30 }
  0x14   :  { %p5181_p8 = por %p5180_p7, %p5179_p6 }
  0x16   :  { %p5182_p9 = pnand %p5181_p8, %p5175_p5 }
  0x18   :  { %5185 = shalt.err (!%p5182_p9)
}
  0x19   :  { %72 = dma.hbm_to_vmem [thread:$0]  %s6649_s4, 8192, %s67_s24, [#allocation9], %s5360_s26, %s5360_s26, %s5361_s27  }
  0x1a   :  { %s5362_s15 = smov [#allocation11]   ;;  %s5363_s17 = smov [#allocation14]  }
  0x1b   :  { %s92_s16 = sshll.u32 %s5362_s15, 4  ;;  %s118_s18 = sshll.u32 %s5363_s17, 4  ;;  %s93_s16 = int_to_ptr.vmem [resolvable:$true] %s92_s16  ;;  %s119_s18 = int_to_ptr.vmem [resolvable:$true] %s118_s18 }
  0x1c   :  { %s5194_s1 = scalar_lea.vmem %s93_s16, 6144  ;;  %p5199_p11 = scmp.lt.s32.totalorder %s93_s16, %s93_s16 }
  0x1d   :  { %p5195_p10 = scmp.ne.s32.totalorder %s93_s16, %s5194_s1  ;;  %p5200_p12 = scmp.lt.s32.totalorder %s5194_s1, %s5194_s1 }
  0x1f   :  { %p5201_p13 = por %p5200_p12, %p5199_p11 }
  0x21   :  { %p5202_p0 = pnand %p5201_p13, %p5195_p10 }
  0x23   :  { %5205 = shalt.err (!%p5202_p0)
}
  0x24   :  { %98 = dma.hbm_to_vmem [thread:$0]  %s6652_s7, 6144, %s93_s16, [#allocation12], %s5360_s26, %s5360_s26, %s5361_s27  }
  0x25   :  { %s5214_s4 = scalar_lea.vmem %s119_s18, 2048  ;;  %p5219_p2 = scmp.lt.s32.totalorder %s119_s18, %s119_s18 }
  0x26   :  { %p5215_p1 = scmp.ne.s32.totalorder %s119_s18, %s5214_s4  ;;  %p5220_p3 = scmp.lt.s32.totalorder %s5214_s4, %s5214_s4 }
  0x28   :  { %p5221_p4 = por %p5220_p3, %p5219_p2 }
  0x2a   :  { %p5222_p5 = pnand %p5221_p4, %p5215_p1 }
  0x2c   :  { %5225 = shalt.err (!%p5222_p5)
}
  0x2d   :  { %124 = dma.hbm_to_vmem [thread:$0]  %s6655_s10, 2048, %s119_s18, [#allocation15], %s5360_s26, %s5360_s26, %s5361_s27  }
  0x2e   :  { %s5364_s23 = smov [#allocation2]   ;;  %s5365_s25 = smov [#allocation7]  }
  0x2f   :  { %s28_s24 = sshll.u32 %s5364_s23, 4  ;;  %s52_s28 = sshll.u32 %s5365_s25, 4  ;;  %s29_s24 = int_to_ptr.vmem [resolvable:$true] %s28_s24  ;;  %s53_s28 = int_to_ptr.vmem [resolvable:$true] %s52_s28 }
  0x30   :  { %s5234_s7 = scalar_lea.vmem %s29_s24, 512  ;;  %p5239_p7 = scmp.lt.s32.totalorder %s29_s24, %s29_s24 }
  0x31   :  { %p5235_p6 = scmp.ne.s32.totalorder %s29_s24, %s5234_s7  ;;  %p5240_p8 = scmp.lt.s32.totalorder %s5234_s7, %s5234_s7 }
  0x33   :  { %p5241_p9 = por %p5240_p8, %p5239_p7 }
  0x35   :  { %p5242_p10 = pnand %p5241_p9, %p5235_p6 }
  0x37   :  { %5245 = shalt.err (!%p5242_p10)
}
  0x38   :  { %34 = dma.hbm_to_vmem [thread:$0]  %s6645_s0, 512, %s29_s24, [#allocation3], %s5360_s26, %s5360_s26, %s5361_s27  }
  0x39   :  { %s5254_s10 = scalar_lea.vmem %s53_s28, 2048  ;;  %p5259_p12 = scmp.lt.s32.totalorder %s53_s28, %s53_s28 }
  0x3a   :  { %p5255_p11 = scmp.ne.s32.totalorder %s53_s28, %s5254_s10  ;;  %p5260_p13 = scmp.lt.s32.totalorder %s5254_s10, %s5254_s10 }
  0x3c   :  { %p5261_p0 = por %p5260_p13, %p5259_p12 }
  0x3e   :  { %p5262_p1 = pnand %p5261_p0, %p5255_p11 }
  0x40   :  { %5265 = shalt.err (!%p5262_p1)
}
  0x41   :  { %s5366_s13 = smov 256   ;;  %s5367_s14 = smov 16  }
  0x42   :  { %58 = dma.hbm_to_vmem [thread:$0]  %s6647_s2, 2048, %s53_s28, [#allocation6], %s5366_s13, %s5366_s13, %s5367_s14  }
  0x43   :  { %s5368_s17 = smov [#allocation10]   ;;  %s5369_s1 = smov [#allocation13]  }
  0x44   :  { %s80_s18 = sshll.u32 %s5368_s17, 4  ;;  %s104_s19 = sshll.u32 %s5369_s1, 4  ;;  %s81_s18 = int_to_ptr.vmem [resolvable:$true] %s80_s18  ;;  %s105_s19 = int_to_ptr.vmem [resolvable:$true] %s104_s19 }
  0x45   :  { %s5274_s0 = scalar_lea.vmem %s81_s18, 6144  ;;  %p5279_p3 = scmp.lt.s32.totalorder %s81_s18, %s81_s18 }
  0x46   :  { %p5275_p2 = scmp.ne.s32.totalorder %s81_s18, %s5274_s0  ;;  %p5280_p4 = scmp.lt.s32.totalorder %s5274_s0, %s5274_s0 }
  0x48   :  { %p5281_p5 = por %p5280_p4, %p5279_p3 }
  0x4a   :  { %p5282_p6 = pnand %p5281_p5, %p5275_p2 }
  0x4c   :  { %5285 = shalt.err (!%p5282_p6)
}
  0x4d   :  { %86 = dma.hbm_to_vmem [thread:$0]  %s6651_s6, 6144, %s81_s18, [#allocation9], %s5360_s26, %s5360_s26, %s5361_s27  }
  0x4e   :  { %s5294_s2 = scalar_lea.vmem %s105_s19, 6144  ;;  %p5299_p8 = scmp.lt.s32.totalorder %s105_s19, %s105_s19 }
  0x4f   :  { %p5295_p7 = scmp.ne.s32.totalorder %s105_s19, %s5294_s2  ;;  %p5300_p9 = scmp.lt.s32.totalorder %s5294_s2, %s5294_s2 }
  0x51   :  { %p5301_p10 = por %p5300_p9, %p5299_p8 }
  0x53   :  { %p5302_p11 = pnand %p5301_p10, %p5295_p7 }
  0x55   :  { %5305 = shalt.err (!%p5302_p11)
}
  0x56   :  { %110 = dma.hbm_to_vmem [thread:$0]  %s6653_s8, 6144, %s105_s19, [#allocation12], %s5360_s26, %s5360_s26, %s5361_s27  }
  0x57   :  { %s5370_s23 = smov [#allocation16]  }
  0x58   :  { %s130_s24 = sshll.u32 %s5370_s23, 4  ;;  %s131_s24 = int_to_ptr.vmem [resolvable:$true] %s130_s24 }
  0x59   :  { %s5314_s25 = scalar_lea.vmem %s131_s24, 2048  ;;  %p5319_p13 = scmp.lt.s32.totalorder %s131_s24, %s131_s24 }
  0x5a   :  { %p5315_p12 = scmp.ne.s32.totalorder %s131_s24, %s5314_s25  ;;  %p5320_p0 = scmp.lt.s32.totalorder %s5314_s25, %s5314_s25 }
  0x5c   :  { %p5321_p1 = por %p5320_p0, %p5319_p13 }
  0x5e   :  { %p5322_p2 = pnand %p5321_p1, %p5315_p12 }
  0x60   :  { %5325 = shalt.err (!%p5322_p2)
}
  0x61   :  { %136 = dma.hbm_to_vmem [thread:$0]  %s6656_s11, 2048, %s131_s24, [#allocation15], %s5360_s26, %s5360_s26, %s5361_s27  }
  0x62   :  { %5346 = dma.done.wait [#allocation3], 512  }
  0x63   :  { %5347 = vsyncadd [#allocation3], 4294966784 }
  0x64   :  { %5348 = dma.done.wait [#allocation6], 3072  }
  0x65   :  { %5349 = vsyncadd [#allocation6], 4294964224 }
  0x66   :  { %5350 = dma.done.wait [#allocation9], 14336  }
  0x67   :  { %5351 = vsyncadd [#allocation9], 4294952960 }
  0x68   :  { %5352 = dma.done.wait [#allocation12], 12288  }
  0x69   :  { %5353 = vsyncadd [#allocation12], 4294955008 }
  0x6a   :  { %5354 = dma.done.wait [#allocation15], 4096  }
  0x6b   :  { %5355 = vsyncadd [#allocation15], 4294963200  ;;  %v5371_v0 = vmov 0.0   ;;  %v183_v1 = vld [vmem:[#allocation7 + $0x78] sm:$0xff]  ;;  %v182_v2 = vld [vmem:[#allocation7 + $0x70] sm:$0xff]  ;;  %vm184_vm0 = vcmask 523264  }
  0x6c   :  { %273 = vmatprep.mubr.f32.mxu1 %v5371_v0  ;;  %261 = vmatprep.mubr.f32.mxu0 %v5371_v0  ;;  %v181_v3 = vld [vmem:[#allocation7 + $0x68] sm:$0xff]  ;;  %v180_v4 = vld [vmem:[#allocation7 + $0x60] sm:$0xff]  ;;  %v179_v5 = vld [vmem:[#allocation7 + $0x58] sm:$0xff]  ;;  %vm294_vm1 = vcmask 261120  }
  0x6d   :  { %5064 = vmatprep.subr.mxu1 %v183_v1  ;;  %213 = vmatprep.subr.mxu0 %v183_v1  ;;  %v178_v6 = vld [vmem:[#allocation7 + $0x50] sm:$0xff]  ;;  %v177_v7 = vld [vmem:[#allocation7 + $0x48] sm:$0xff]  ;;  %v176_v8 = vld [vmem:[#allocation7 + $0x40] sm:$0xff] }
  0x6e   :  { %5072 = vmatpush1.msra.mxu1 %v182_v2  ;;  %214 = vmatpush1.msra.mxu0 %v182_v2  ;;  %v175_v9 = vld [vmem:[#allocation7 + $0x38] sm:$0xff]  ;;  %v174_v10 = vld [vmem:[#allocation7 + $0x30] sm:$0xff]  ;;  %v173_v11 = vld [vmem:[#allocation7 + $0x28] sm:$0xff] }
  0x6f   :  { %5065 = vmatprep.subr.mxu1 %v181_v3  ;;  %215 = vmatprep.subr.mxu0 %v181_v3  ;;  %v172_v12 = vld [vmem:[#allocation7 + $0x20] sm:$0xff]  ;;  %v171_v13 = vld [vmem:[#allocation7 + $0x18] sm:$0xff]  ;;  %v170_v14 = vld [vmem:[#allocation7 + $0x10] sm:$0xff] }
  0x70   :  { %5073 = vmatpush1.msra.mxu1 %v180_v4  ;;  %216 = vmatpush1.msra.mxu0 %v180_v4  ;;  %v169_v15 = vld [vmem:[#allocation7 + $0x8] sm:$0xff]  ;;  %v168_v16 = vld [vmem:[#allocation7] sm:$0xff]  ;;  %v166_v17 = vld [vmem:[#allocation2 + $0x10] sm:$0xff] }
  0x71   :  { %5066 = vmatprep.subr.mxu1 %v179_v5  ;;  %217 = vmatprep.subr.mxu0 %v179_v5  ;;  %v164_v18 = vld [vmem:[#allocation2] sm:$0xff]  ;;  %v167_v19 = vld [vmem:[#allocation2 + $0x18] sm:$0xff]  ;;  %v165_v20 = vld [vmem:[#allocation2 + $0x8] sm:$0xff] }
  0x72   :  { %5074 = vmatpush1.msra.mxu1 %v178_v6  ;;  %218 = vmatpush1.msra.mxu0 %v178_v6  ;;  %v286_v29 = vld [vmem:[%s6648_s3] sm:$0xff]  ;;  %v642_v31 = vld [vmem:[#allocation8 + $0x1f8] sm:$0xff]  ;;  %v287_v35 = vld [vmem:[%s6648_s3 + $0x8] sm:$0xff] }
  0x73   :  { %5067 = vmatprep.subr.mxu1 %v177_v7  ;;  %219 = vmatprep.subr.mxu0 %v177_v7  ;;  %v3837_v30 = vld [vmem:[%s6648_s3 + $0x40] sm:$0xff]  ;;  %v463_v32 = vld [vmem:[#allocation8 + $0xf8] sm:$0xff]  ;;  %v3838_v36 = vld [vmem:[%s6648_s3 + $0x48] sm:$0xff] }
  0x74   :  { %5075 = vmatpush1.msra.mxu1 %v176_v8  ;;  %220 = vmatpush1.msra.mxu0 %v176_v8  ;;  %v626_v33 = vld [vmem:[#allocation8 + $0x178] sm:$0xff]  ;;  %v641_v37 = vld [vmem:[#allocation8 + $0x1f0] sm:$0xff]  ;;  %v640_v43 = vld [vmem:[#allocation8 + $0x1e8] sm:$0xff] }
  0x75   :  { %5068 = vmatprep.subr.mxu1 %v175_v9  ;;  %221 = vmatprep.subr.mxu0 %v175_v9  ;;  %v447_v34 = vld [vmem:[#allocation8 + $0x78] sm:$0xff]  ;;  %v462_v38 = vld [vmem:[#allocation8 + $0xf0] sm:$0xff]  ;;  %v461_v44 = vld [vmem:[#allocation8 + $0xe8] sm:$0xff] }
  0x76   :  { %5076 = vmatpush1.msra.mxu1 %v174_v10  ;;  %222 = vmatpush1.msra.mxu0 %v174_v10  ;;  %v625_v39 = vld [vmem:[#allocation8 + $0x170] sm:$0xff]  ;;  %v624_v45 = vld [vmem:[#allocation8 + $0x168] sm:$0xff]  ;;  %v289_v47 = vld [vmem:[%s6648_s3 + $0x18] sm:$0xff] }
  0x77   :  { %5069 = vmatprep.subr.mxu1 %v173_v11  ;;  %223 = vmatprep.subr.mxu0 %v173_v11  ;;  %v446_v40 = vld [vmem:[#allocation8 + $0x70] sm:$0xff]  ;;  %v445_v46 = vld [vmem:[#allocation8 + $0x68] sm:$0xff]  ;;  %v3840_v48 = vld [vmem:[%s6648_s3 + $0x58] sm:$0xff] }
  0x78   :  { %5077 = vmatpush1.msra.mxu1 %v172_v12  ;;  %224 = vmatpush1.msra.mxu0 %v172_v12  ;;  %v288_v41 = vld [vmem:[%s6648_s3 + $0x10] sm:$0xff]  ;;  %v639_v49 = vld [vmem:[#allocation8 + $0x1e0] sm:$0xff]  ;;  %v638_v55 = vld [vmem:[#allocation8 + $0x1d8] sm:$0xff] }
  0x79   :  { %5070 = vmatprep.subr.mxu1 %v171_v13  ;;  %225 = vmatprep.subr.mxu0 %v171_v13  ;;  %v3839_v42 = vld [vmem:[%s6648_s3 + $0x50] sm:$0xff]  ;;  %v460_v50 = vld [vmem:[#allocation8 + $0xe0] sm:$0xff]  ;;  %v459_v56 = vld [vmem:[#allocation8 + $0xd8] sm:$0xff] }
  0x7a   :  { %5078 = vmatpush1.msra.mxu1 %v170_v14  ;;  %226 = vmatpush1.msra.mxu0 %v170_v14  ;;  %v623_v51 = vld [vmem:[#allocation8 + $0x160] sm:$0xff]  ;;  %v622_v57 = vld [vmem:[#allocation8 + $0x158] sm:$0xff]  ;;  %v291_v59 = vld [vmem:[%s6648_s3 + $0x28] sm:$0xff] }
  0x7b   :  { %5071 = vmatprep.subr.mxu1 %v169_v15  ;;  %227 = vmatprep.subr.mxu0 %v169_v15  ;;  %v444_v52 = vld [vmem:[#allocation8 + $0x60] sm:$0xff]  ;;  %v443_v58 = vld [vmem:[#allocation8 + $0x58] sm:$0xff]  ;;  %v3842_v60 = vld [vmem:[%s6648_s3 + $0x68] sm:$0xff] }
  0x7c   :  { %5079 = vmatpush1.msra.mxu1 %v168_v16  ;;  %228 = vmatpush1.msra.mxu0 %v168_v16  ;;  %v290_v53 = vld [vmem:[%s6648_s3 + $0x20] sm:$0xff]  ;;  %v637_v61 = vld [vmem:[#allocation8 + $0x1d0] sm:$0xff]  ;;  %v636_v4 = vld [vmem:[#allocation8 + $0x1c8] sm:$0xff] }
  0x7d   :  { %3827 = vmatmul.mubr.msk.f32.vlgmr.msra.gmra.mxu1 %vm184_vm0, %v166_v17  ;;  %3825 = vmatmul.mubr.msk.f32.vlgmr.msra.gmra.mxu0 %vm184_vm0, %v164_v18  ;;  %v3841_v54 = vld [vmem:[%s6648_s3 + $0x60] sm:$0xff]  ;;  %v458_v62 = vld [vmem:[#allocation8 + $0xd0] sm:$0xff]  ;;  %v457_v5 = vld [vmem:[#allocation8 + $0xc8] sm:$0xff] }
  0x7e   :  { %279 = vmatprep.mubr.f32.mxu1 %v5371_v0  ;;  %267 = vmatprep.mubr.f32.mxu0 %v5371_v0  ;;  %v621_v63 = vld [vmem:[#allocation8 + $0x150] sm:$0xff]  ;;  %v620_v6 = vld [vmem:[#allocation8 + $0x148] sm:$0xff]  ;;  %v293_v8 = vld [vmem:[%s6648_s3 + $0x38] sm:$0xff] }
  0x7f   :  { %v442_v1 = vld [vmem:[#allocation8 + $0x50] sm:$0xff]  ;;  %v441_v7 = vld [vmem:[#allocation8 + $0x48] sm:$0xff]  ;;  %v3844_v9 = vld [vmem:[%s6648_s3 + $0x78] sm:$0xff] }
  0x80   :  { %v292_v2 = vld [vmem:[%s6648_s3 + $0x30] sm:$0xff]  ;;  %v635_v10 = vld [vmem:[#allocation8 + $0x1c0] sm:$0xff]  ;;  %v455_v14 = vld [vmem:[#allocation8 + $0xb8] sm:$0xff] }
  0x81   :  { %3828 = vmatmul.mubr.msk.f32.gmra.mxu1 %vm184_vm0, %v167_v19  ;;  %3826 = vmatmul.mubr.msk.f32.gmra.mxu0 %vm184_vm0, %v165_v20  ;;  %v3843_v3 = vld [vmem:[%s6648_s3 + $0x70] sm:$0xff]  ;;  %v456_v11 = vld [vmem:[#allocation8 + $0xc0] sm:$0xff]  ;;  %v618_v15 = vld [vmem:[#allocation8 + $0x138] sm:$0xff] }
  0x82   :  { %383 = vmatprep.mubr.f32.mxu1 %v5371_v0  ;;  %561 = vmatprep.mubr.f32.mxu0 %v5371_v0  ;;  %v619_v12 = vld [vmem:[#allocation8 + $0x140] sm:$0xff]  ;;  %v439_v16 = vld [vmem:[#allocation8 + $0x38] sm:$0xff]  ;;  %v633_v17 = vld [vmem:[#allocation8 + $0x1b0] sm:$0xff] }
  0x83   :  { %v440_v13 = vld [vmem:[#allocation8 + $0x40] sm:$0xff]  ;;  %v454_v18 = vld [vmem:[#allocation8 + $0xb0] sm:$0xff] }
  0x84   :  { %v617_v19 = vld [vmem:[#allocation8 + $0x130] sm:$0xff] }
  0x85   :  { %v438_v20 = vld [vmem:[#allocation8 + $0x30] sm:$0xff] }
 0x13d   :  { %v275_v21 = vpop.f32.mrf.mxu1  ;;  %v263_v22 = vpop.f32.mrf.mxu0 }
 0x13f   :  { %v277_v23 = vpop.f32.mrf.mxu1  ;;  %v265_v24 = vpop.f32.mrf.mxu0 }
 0x141   :  { %v281_v25 = vpop.f32.mrf.mxu1  ;;  %v269_v26 = vpop.f32.mrf.mxu0 }
 0x143   :  { %v283_v27 = vpop.f32.mrf.mxu1  ;;  %v271_v28 = vpop.f32.mrf.mxu0 }
 0x144   :  { %343 = vmatprep.subr.mxu1 %v283_v27  ;;  %521 = vmatprep.subr.mxu0 %v283_v27  ;;  %v615_v27 = vld [vmem:[#allocation8 + $0x120] sm:$0xff] }
 0x145   :  { %344 = vmatpush1.msra.mxu1 %v281_v25  ;;  %522 = vmatpush1.msra.mxu0 %v281_v25  ;;  %v631_v25 = vld [vmem:[#allocation8 + $0x1a0] sm:$0xff] }
 0x146   :  { %345 = vmatprep.subr.mxu1 %v277_v23  ;;  %523 = vmatprep.subr.mxu0 %v277_v23  ;;  %v616_v23 = vld [vmem:[#allocation8 + $0x128] sm:$0xff] }
 0x147   :  { %346 = vmatpush1.msra.mxu1 %v275_v21  ;;  %524 = vmatpush1.msra.mxu0 %v275_v21  ;;  %v632_v21 = vld [vmem:[#allocation8 + $0x1a8] sm:$0xff] }
 0x148   :  { %347 = vmatprep.subr.mxu1 %v271_v28  ;;  %525 = vmatprep.subr.mxu0 %v271_v28  ;;  %v436_v28 = vld [vmem:[#allocation8 + $0x20] sm:$0xff] }
 0x149   :  { %348 = vmatpush1.msra.mxu1 %v269_v26  ;;  %526 = vmatpush1.msra.mxu0 %v269_v26  ;;  %v452_v26 = vld [vmem:[#allocation8 + $0xa0] sm:$0xff] }
 0x14a   :  { %349 = vmatprep.subr.mxu1 %v265_v24  ;;  %527 = vmatprep.subr.mxu0 %v265_v24  ;;  %v437_v24 = vld [vmem:[#allocation8 + $0x28] sm:$0xff] }
 0x14b   :  { %350 = vmatpush1.msra.mxu1 %v263_v22  ;;  %528 = vmatpush1.msra.mxu0 %v263_v22  ;;  %v453_v22 = vld [vmem:[#allocation8 + $0xa8] sm:$0xff] }
 0x14c   :  { %3829 = vmatmul.mubr.msk.f32.vlgmr.msra.gmra.mxu1 %vm294_vm1, %v286_v29  ;;  %3845 = vmatmul.mubr.msk.f32.vlgmr.msra.gmra.mxu0 %vm294_vm1, %v3837_v30  ;;  %v630_v29 = vld [vmem:[#allocation8 + $0x198] sm:$0xff] }
 0x14d   :  { %389 = vmatprep.mubr.f32.mxu1 %v5371_v0  ;;  %567 = vmatprep.mubr.f32.mxu0 %v5371_v0  ;;  %v451_v30 = vld [vmem:[#allocation8 + $0x98] sm:$0xff] }
 0x14e   :  { %3944 = vmatprep.subr.mxu1 %v642_v31  ;;  %4000 = vmatprep.subr.mxu0 %v463_v32  ;;  %v614_v31 = vld [vmem:[#allocation8 + $0x118] sm:$0xff] }
 0x14f   :  { %3945 = vmatpush3.msra.mxu1 %v626_v33  ;;  %4001 = vmatpush3.msra.mxu0 %v447_v34  ;;  %v435_v32 = vld [vmem:[#allocation8 + $0x18] sm:$0xff]  ;;  %v629_v33 = vld [vmem:[#allocation8 + $0x190] sm:$0xff] }
 0x150   :  { %3830 = vmatmul.mubr.msk.f32.gmra.mxu1 %vm294_vm1, %v287_v35  ;;  %3846 = vmatmul.mubr.msk.f32.gmra.mxu0 %vm294_vm1, %v3838_v36  ;;  %v450_v34 = vld [vmem:[#allocation8 + $0x90] sm:$0xff] }
 0x151   :  { %395 = vmatprep.mubr.f32.mxu1 %v5371_v0  ;;  %573 = vmatprep.mubr.f32.mxu0 %v5371_v0  ;;  %v613_v35 = vld [vmem:[#allocation8 + $0x110] sm:$0xff] }
 0x152   :  { %3946 = vmatprep.subr.mxu1 %v641_v37  ;;  %4002 = vmatprep.subr.mxu0 %v462_v38  ;;  %v434_v36 = vld [vmem:[#allocation8 + $0x10] sm:$0xff]  ;;  %v628_v37 = vld [vmem:[#allocation8 + $0x188] sm:$0xff] }
 0x153   :  { %3947 = vmatpush3.msra.mxu1 %v625_v39  ;;  %4003 = vmatpush3.msra.mxu0 %v446_v40  ;;  %v449_v38 = vld [vmem:[#allocation8 + $0x88] sm:$0xff] }
 0x154   :  { %3831 = vmatmul.mubr.msk.f32.gmra.mxu1 %vm294_vm1, %v288_v41  ;;  %3847 = vmatmul.mubr.msk.f32.gmra.mxu0 %vm294_vm1, %v3839_v42  ;;  %v612_v39 = vld [vmem:[#allocation8 + $0x108] sm:$0xff]  ;;  %v627_v41 = vld [vmem:[#allocation8 + $0x180] sm:$0xff] }
 0x155   :  { %401 = vmatprep.mubr.f32.mxu1 %v5371_v0  ;;  %579 = vmatprep.mubr.f32.mxu0 %v5371_v0  ;;  %v433_v40 = vld [vmem:[#allocation8 + $0x8] sm:$0xff]  ;;  %v448_v42 = vld [vmem:[#allocation8 + $0x80] sm:$0xff] }
 0x156   :  { %3948 = vmatprep.subr.mxu1 %v640_v43  ;;  %4004 = vmatprep.subr.mxu0 %v461_v44  ;;  %v611_v43 = vld [vmem:[#allocation8 + $0x100] sm:$0xff] }
 0x157   :  { %3949 = vmatpush3.msra.mxu1 %v624_v45  ;;  %4005 = vmatpush3.msra.mxu0 %v445_v46  ;;  %v432_v44 = vld [vmem:[#allocation8] sm:$0xff] }
 0x158   :  { %3832 = vmatmul.mubr.msk.f32.gmra.mxu1 %vm294_vm1, %v289_v47  ;;  %3848 = vmatmul.mubr.msk.f32.gmra.mxu0 %vm294_vm1, %v3840_v48 }
 0x159   :  { %407 = vmatprep.mubr.f32.mxu1 %v5371_v0  ;;  %585 = vmatprep.mubr.f32.mxu0 %v5371_v0 }
 0x15a   :  { %3950 = vmatprep.subr.mxu1 %v639_v49  ;;  %4006 = vmatprep.subr.mxu0 %v460_v50 }
 0x15b   :  { %3951 = vmatpush3.msra.mxu1 %v623_v51  ;;  %4007 = vmatpush3.msra.mxu0 %v444_v52 }
 0x15c   :  { %3833 = vmatmul.mubr.msk.f32.gmra.mxu1 %vm294_vm1, %v290_v53  ;;  %3849 = vmatmul.mubr.msk.f32.gmra.mxu0 %vm294_vm1, %v3841_v54 }
 0x15d   :  { %413 = vmatprep.mubr.f32.mxu1 %v5371_v0  ;;  %591 = vmatprep.mubr.f32.mxu0 %v5371_v0 }
 0x15e   :  { %3952 = vmatprep.subr.mxu1 %v638_v55  ;;  %4008 = vmatprep.subr.mxu0 %v459_v56 }
 0x15f   :  { %3953 = vmatpush3.msra.mxu1 %v622_v57  ;;  %4009 = vmatpush3.msra.mxu0 %v443_v58 }
 0x160   :  { %3834 = vmatmul.mubr.msk.f32.gmra.mxu1 %vm294_vm1, %v291_v59  ;;  %3850 = vmatmul.mubr.msk.f32.gmra.mxu0 %vm294_vm1, %v3842_v60 }
 0x161   :  { %419 = vmatprep.mubr.f32.mxu1 %v5371_v0  ;;  %597 = vmatprep.mubr.f32.mxu0 %v5371_v0 }
 0x162   :  { %3954 = vmatprep.subr.mxu1 %v637_v61  ;;  %4010 = vmatprep.subr.mxu0 %v458_v62 }
 0x163   :  { %3955 = vmatpush3.msra.mxu1 %v621_v63  ;;  %4011 = vmatpush3.msra.mxu0 %v442_v1 }
 0x164   :  { %3835 = vmatmul.mubr.msk.f32.gmra.mxu1 %vm294_vm1, %v292_v2  ;;  %3851 = vmatmul.mubr.msk.f32.gmra.mxu0 %vm294_vm1, %v3843_v3 }
 0x165   :  { %425 = vmatprep.mubr.f32.mxu1 %v5371_v0  ;;  %603 = vmatprep.mubr.f32.mxu0 %v5371_v0  ;;  %v634_v0 = vld [vmem:[#allocation8 + $0x1b8] sm:$0xff] }
 0x166   :  { %3956 = vmatprep.subr.mxu1 %v636_v4  ;;  %4012 = vmatprep.subr.mxu0 %v457_v5 }
 0x167   :  { %3957 = vmatpush3.msra.mxu1 %v620_v6  ;;  %4013 = vmatpush3.msra.mxu0 %v441_v7 }
 0x168   :  { %3836 = vmatmul.mubr.msk.f32.gmra.mxu1 %vm294_vm1, %v293_v8  ;;  %3852 = vmatmul.mubr.msk.f32.gmra.mxu0 %vm294_vm1, %v3844_v9 }
 0x169   :  { %3958 = vmatprep.subr.mxu1 %v635_v10  ;;  %4014 = vmatprep.subr.mxu0 %v456_v11 }
 0x16a   :  { %3959 = vmatpush3.msra.mxu1 %v619_v12  ;;  %4015 = vmatpush3.msra.mxu0 %v440_v13 }
 0x16b   :  { %3960 = vmatprep.subr.mxu1 %v634_v0  ;;  %4016 = vmatprep.subr.mxu0 %v455_v14 }
 0x16c   :  { %3961 = vmatpush3.msra.mxu1 %v618_v15  ;;  %4017 = vmatpush3.msra.mxu0 %v439_v16 }
 0x16d   :  { %3962 = vmatprep.subr.mxu1 %v633_v17  ;;  %4018 = vmatprep.subr.mxu0 %v454_v18 }
 0x16e   :  { %3963 = vmatpush3.msra.mxu1 %v617_v19  ;;  %4019 = vmatpush3.msra.mxu0 %v438_v20 }
 0x16f   :  { %3964 = vmatprep.subr.mxu1 %v632_v21  ;;  %4020 = vmatprep.subr.mxu0 %v453_v22  ;;  %v5580_v21 = vld [vmem:[%s6654_s9] ss:$0 sm:$0xff] }
 0x170   :  { %3965 = vmatpush3.msra.mxu1 %v616_v23  ;;  %4021 = vmatpush3.msra.mxu0 %v437_v24 }
 0x171   :  { %3966 = vmatprep.subr.mxu1 %v631_v25  ;;  %4022 = vmatprep.subr.mxu0 %v452_v26  ;;  %v5582_v25 = vld [vmem:[#allocation14 + $0x40] sm:$0xff] }
 0x172   :  { %3967 = vmatpush3.msra.mxu1 %v615_v27  ;;  %4023 = vmatpush3.msra.mxu0 %v436_v28  ;;  %v5584_v26 = vld [vmem:[#allocation14] sm:$0xff] }
 0x173   :  { %3968 = vmatprep.subr.mxu1 %v630_v29  ;;  %4024 = vmatprep.subr.mxu0 %v451_v30 }
 0x174   :  { %3969 = vmatpush3.msra.mxu1 %v614_v31  ;;  %4025 = vmatpush3.msra.mxu0 %v435_v32 }
 0x175   :  { %3970 = vmatprep.subr.mxu1 %v629_v33  ;;  %4026 = vmatprep.subr.mxu0 %v450_v34 }
 0x176   :  { %3971 = vmatpush3.msra.mxu1 %v613_v35  ;;  %4027 = vmatpush3.msra.mxu0 %v434_v36 }
 0x177   :  { %3972 = vmatprep.subr.mxu1 %v628_v37  ;;  %4028 = vmatprep.subr.mxu0 %v449_v38  ;;  %v5593_v37 = vld [vmem:[#allocation14 + $0x48] sm:$0xff] }
 0x178   :  { %3973 = vmatpush3.msra.mxu1 %v612_v39  ;;  %4029 = vmatpush3.msra.mxu0 %v433_v40  ;;  %v5595_v38 = vld [vmem:[#allocation14 + $0x8] sm:$0xff] }
 0x179   :  { %3974 = vmatprep.subr.mxu1 %v627_v41  ;;  %4030 = vmatprep.subr.mxu0 %v448_v42 }
 0x17a   :  { %3975 = vmatpush3.msra.mxu1 %v611_v43  ;;  %4031 = vmatpush3.msra.mxu0 %v432_v44 }
 0x20c   :  { %v385_v45 = vpop.f32.mrf.mxu1  ;;  %v563_v46 = vpop.f32.mrf.mxu0 }
 0x20e   :  { %v387_v47 = vpop.f32.mrf.mxu1  ;;  %v565_v48 = vpop.f32.mrf.mxu0 }
 0x20f   :  { %707 = vmatprep.mubr.f32.mxu1 %v565_v48  ;;  %812 = vmatprep.mubr.f32.mxu0 %v387_v47 }
 0x210   :  { %v391_v49 = vpop.f32.mrf.mxu1  ;;  %v569_v50 = vpop.f32.mrf.mxu0  ;;  %708 = vmatmul.mubr.f32.vlgmr.msra.gmra.mxu1 %v563_v46  ;;  %813 = vmatmul.mubr.f32.vlgmr.msra.gmra.mxu0 %v385_v45 }
 0x212   :  { %v393_v51 = vpop.f32.mrf.mxu1  ;;  %v571_v52 = vpop.f32.mrf.mxu0 }
 0x213   :  { %712 = vmatprep.mubr.f32.mxu1 %v571_v52  ;;  %817 = vmatprep.mubr.f32.mxu0 %v393_v51 }
 0x214   :  { %v397_v53 = vpop.f32.mrf.mxu1  ;;  %v575_v54 = vpop.f32.mrf.mxu0  ;;  %713 = vmatmul.mubr.f32.gmra.mxu1 %v569_v50  ;;  %818 = vmatmul.mubr.f32.gmra.mxu0 %v391_v49  ;;  %v5604_v49 = vld [vmem:[#allocation14 + $0x50] sm:$0xff] }
 0x215   :  { %v5606_v50 = vld [vmem:[#allocation14 + $0x10] sm:$0xff] }
 0x216   :  { %v399_v55 = vpop.f32.mrf.mxu1  ;;  %v577_v56 = vpop.f32.mrf.mxu0 }
 0x217   :  { %717 = vmatprep.mubr.f32.mxu1 %v577_v56  ;;  %822 = vmatprep.mubr.f32.mxu0 %v399_v55 }
 0x218   :  { %v403_v57 = vpop.f32.mrf.mxu1  ;;  %v581_v58 = vpop.f32.mrf.mxu0  ;;  %718 = vmatmul.mubr.f32.gmra.mxu1 %v575_v54  ;;  %823 = vmatmul.mubr.f32.gmra.mxu0 %v397_v53 }
 0x21a   :  { %v405_v59 = vpop.f32.mrf.mxu1  ;;  %v583_v60 = vpop.f32.mrf.mxu0 }
 0x21b   :  { %722 = vmatprep.mubr.f32.mxu1 %v583_v60  ;;  %827 = vmatprep.mubr.f32.mxu0 %v405_v59 }
 0x21c   :  { %v409_v61 = vpop.f32.mrf.mxu1  ;;  %v587_v62 = vpop.f32.mrf.mxu0  ;;  %723 = vmatmul.mubr.f32.gmra.mxu1 %v581_v58  ;;  %828 = vmatmul.mubr.f32.gmra.mxu0 %v403_v57 }
 0x21e   :  { %v411_v63 = vpop.f32.mrf.mxu1  ;;  %v589_v1 = vpop.f32.mrf.mxu0 }
 0x21f   :  { %727 = vmatprep.mubr.f32.mxu1 %v589_v1  ;;  %832 = vmatprep.mubr.f32.mxu0 %v411_v63 }
 0x220   :  { %v415_v2 = vpop.f32.mrf.mxu1  ;;  %v593_v3 = vpop.f32.mrf.mxu0  ;;  %728 = vmatmul.mubr.f32.gmra.mxu1 %v587_v62  ;;  %833 = vmatmul.mubr.f32.gmra.mxu0 %v409_v61  ;;  %v5615_v61 = vld [vmem:[#allocation14 + $0x58] sm:$0xff] }
 0x221   :  { %v5617_v62 = vld [vmem:[#allocation14 + $0x18] sm:$0xff] }
 0x222   :  { %v417_v4 = vpop.f32.mrf.mxu1  ;;  %v595_v5 = vpop.f32.mrf.mxu0 }
 0x223   :  { %732 = vmatprep.mubr.f32.mxu1 %v595_v5  ;;  %837 = vmatprep.mubr.f32.mxu0 %v417_v4 }
 0x224   :  { %v421_v6 = vpop.f32.mrf.mxu1  ;;  %v599_v7 = vpop.f32.mrf.mxu0  ;;  %733 = vmatmul.mubr.f32.gmra.mxu1 %v593_v3  ;;  %838 = vmatmul.mubr.f32.gmra.mxu0 %v415_v2 }
 0x226   :  { %v423_v8 = vpop.f32.mrf.mxu1  ;;  %v601_v9 = vpop.f32.mrf.mxu0 }
 0x227   :  { %737 = vmatprep.mubr.f32.mxu1 %v601_v9  ;;  %842 = vmatprep.mubr.f32.mxu0 %v423_v8 }
 0x228   :  { %v427_v10 = vpop.f32.mrf.mxu1  ;;  %v605_v11 = vpop.f32.mrf.mxu0  ;;  %738 = vmatmul.mubr.f32.gmra.mxu1 %v599_v7  ;;  %843 = vmatmul.mubr.f32.gmra.mxu0 %v421_v6 }
 0x22a   :  { %v429_v12 = vpop.f32.mrf.mxu1  ;;  %v607_v13 = vpop.f32.mrf.mxu0 }
 0x22b   :  { %742 = vmatprep.mubr.f32.mxu1 %v607_v13  ;;  %847 = vmatprep.mubr.f32.mxu0 %v429_v12 }
 0x22c   :  { %743 = vmatmul.mubr.f32.gmra.mxu1 %v605_v11  ;;  %848 = vmatmul.mubr.f32.gmra.mxu0 %v427_v10  ;;  %v5626_v10 = vld [vmem:[#allocation14 + $0x60] sm:$0xff] }
 0x22d   :  { %v5628_v11 = vld [vmem:[#allocation14 + $0x20] sm:$0xff] }
 0x2d0   :  { %v3976_v0 = vpop.f32.mrf.mxu1  ;;  %v4032_v14 = vpop.f32.mrf.mxu0 }
 0x2d2   :  { %v3977_v15 = vpop.f32.mrf.mxu1  ;;  %v4033_v16 = vpop.f32.mrf.mxu0 }
 0x2d3   :  { %v3978_v17 = vadd.f32 %v3977_v15, %v3976_v0  ;;  %v4034_v18 = vadd.f32 %v4033_v16, %v4032_v14 }
 0x2d4   :  { %v3979_v19 = vpop.f32.mrf.mxu1  ;;  %v4035_v20 = vpop.f32.mrf.mxu0 }
 0x2d5   :  { %v815_v22 = vadd.f32 %v4034_v18, %v3978_v17 }
 0x2d6   :  { %v3980_v23 = vpop.f32.mrf.mxu1  ;;  %v4036_v24 = vpop.f32.mrf.mxu0 }
 0x2d7   :  { %v3981_v27 = vadd.f32 %v3980_v23, %v3979_v19  ;;  %v4037_v28 = vadd.f32 %v4036_v24, %v4035_v20  ;;  %v5587_v29 = vadd.f32 %v5580_v21, %v815_v22  ;;  %v5637_v22 = vld [vmem:[#allocation14 + $0x68] sm:$0xff] }
 0x2d8   :  { %v3982_v30 = vpop.f32.mrf.mxu1  ;;  %v4038_v31 = vpop.f32.mrf.mxu0  ;;  %v5639_v23 = vld [vmem:[#allocation14 + $0x28] sm:$0xff] }
 0x2d9   :  { %v820_v32 = vadd.f32 %v4037_v28, %v3981_v27  ;;  %v929_v33 = vmul.f32 %v5587_v29, %v5582_v25  ;;  %v883_v34 = vmul.f32 %v5587_v29, %v5584_v26 }
 0x2da   :  { %v3983_v35 = vpop.f32.mrf.mxu1  ;;  %v4039_v36 = vpop.f32.mrf.mxu0 }
 0x2db   :  { %v5598_v39 = vadd.f32 %v5580_v21, %v820_v32  ;;  %v3984_v40 = vadd.f32 %v3983_v35, %v3982_v30  ;;  %v4040_v41 = vadd.f32 %v4039_v36, %v4038_v31  ;;  %937 = vadd.xlane.f32.xlu1 %v929_v33  ;;  %891 = vadd.xlane.f32.xlu0 %v883_v34 }
 0x2dc   :  { %v3985_v42 = vpop.f32.mrf.mxu1  ;;  %v4041_v43 = vpop.f32.mrf.mxu0 }
 0x2dd   :  { %v825_v44 = vadd.f32 %v4040_v41, %v3984_v40  ;;  %v930_v45 = vmul.f32 %v5598_v39, %v5593_v37  ;;  %v884_v46 = vmul.f32 %v5598_v39, %v5595_v38  ;;  %v5648_v40 = vld [vmem:[#allocation14 + $0x70] sm:$0xff] }
 0x2de   :  { %v3986_v47 = vpop.f32.mrf.mxu1  ;;  %v4042_v48 = vpop.f32.mrf.mxu0  ;;  %v5650_v41 = vld [vmem:[#allocation14 + $0x30] sm:$0xff] }
 0x2df   :  { %v5609_v51 = vadd.f32 %v5580_v21, %v825_v44  ;;  %v3987_v52 = vadd.f32 %v3986_v47, %v3985_v42  ;;  %v4043_v53 = vadd.f32 %v4042_v48, %v4041_v43  ;;  %939 = vadd.xlane.f32.xlu1 %v930_v45  ;;  %893 = vadd.xlane.f32.xlu0 %v884_v46  ;;  %v5659_v48 = vld [vmem:[#allocation14 + $0x78] sm:$0xff] }
 0x2e0   :  { %v3988_v54 = vpop.f32.mrf.mxu1  ;;  %v4044_v55 = vpop.f32.mrf.mxu0 }
 0x2e1   :  { %v830_v56 = vadd.f32 %v4043_v53, %v3987_v52  ;;  %v931_v57 = vmul.f32 %v5609_v51, %v5604_v49  ;;  %v885_v58 = vmul.f32 %v5609_v51, %v5606_v50  ;;  %v5661_v52 = vld [vmem:[#allocation14 + $0x38] sm:$0xff] }
 0x2e2   :  { %v3989_v59 = vpop.f32.mrf.mxu1  ;;  %v4045_v60 = vpop.f32.mrf.mxu0 }
 0x2e3   :  { %v5620_v63 = vadd.f32 %v5580_v21, %v830_v56  ;;  %v3990_v1 = vadd.f32 %v3989_v59, %v3988_v54  ;;  %v4046_v2 = vadd.f32 %v4045_v60, %v4044_v55  ;;  %941 = vadd.xlane.f32.xlu1 %v931_v57  ;;  %895 = vadd.xlane.f32.xlu0 %v885_v58 }
 0x2e4   :  { %v3991_v3 = vpop.f32.mrf.mxu1  ;;  %v4047_v4 = vpop.f32.mrf.mxu0 }
 0x2e5   :  { %v835_v5 = vadd.f32 %v4046_v2, %v3990_v1  ;;  %v932_v6 = vmul.f32 %v5620_v63, %v5615_v61  ;;  %v886_v7 = vmul.f32 %v5620_v63, %v5617_v62 }
 0x2e6   :  { %v3992_v8 = vpop.f32.mrf.mxu1  ;;  %v4048_v9 = vpop.f32.mrf.mxu0 }
 0x2e7   :  { %v5631_v12 = vadd.f32 %v5580_v21, %v835_v5  ;;  %v3993_v13 = vadd.f32 %v3992_v8, %v3991_v3  ;;  %v4049_v0 = vadd.f32 %v4048_v9, %v4047_v4  ;;  %943 = vadd.xlane.f32.xlu1 %v932_v6  ;;  %897 = vadd.xlane.f32.xlu0 %v886_v7 }
 0x2e8   :  { %v3994_v14 = vpop.f32.mrf.mxu1  ;;  %v4050_v15 = vpop.f32.mrf.mxu0 }
 0x2e9   :  { %v840_v16 = vadd.f32 %v4049_v0, %v3993_v13  ;;  %v933_v17 = vmul.f32 %v5631_v12, %v5626_v10  ;;  %v887_v18 = vmul.f32 %v5631_v12, %v5628_v11 }
 0x2ea   :  { %v3995_v19 = vpop.f32.mrf.mxu1  ;;  %v4051_v20 = vpop.f32.mrf.mxu0 }
 0x2eb   :  { %v5642_v24 = vadd.f32 %v5580_v21, %v840_v16  ;;  %v3996_v27 = vadd.f32 %v3995_v19, %v3994_v14  ;;  %v4052_v28 = vadd.f32 %v4051_v20, %v4050_v15  ;;  %945 = vadd.xlane.f32.xlu1 %v933_v17  ;;  %899 = vadd.xlane.f32.xlu0 %v887_v18 }
 0x2ec   :  { %v3997_v30 = vpop.f32.mrf.mxu1  ;;  %v4053_v31 = vpop.f32.mrf.mxu0 }
 0x2ed   :  { %v845_v32 = vadd.f32 %v4052_v28, %v3996_v27  ;;  %v934_v33 = vmul.f32 %v5642_v24, %v5637_v22  ;;  %v888_v34 = vmul.f32 %v5642_v24, %v5639_v23 }
 0x2ee   :  { %v3998_v35 = vpop.f32.mrf.mxu1  ;;  %v4054_v36 = vpop.f32.mrf.mxu0 }
 0x2ef   :  { %v5653_v42 = vadd.f32 %v5580_v21, %v845_v32  ;;  %v3999_v43 = vadd.f32 %v3998_v35, %v3997_v30  ;;  %v4055_v44 = vadd.f32 %v4054_v36, %v4053_v31  ;;  %947 = vadd.xlane.f32.xlu1 %v934_v33  ;;  %901 = vadd.xlane.f32.xlu0 %v888_v34 }
 0x2f1   :  { %v850_v45 = vadd.f32 %v4055_v44, %v3999_v43  ;;  %v935_v46 = vmul.f32 %v5653_v42, %v5648_v40  ;;  %v889_v47 = vmul.f32 %v5653_v42, %v5650_v41 }
 0x2f3   :  { %v5664_v53 = vadd.f32 %v5580_v21, %v850_v45  ;;  %949 = vadd.xlane.f32.xlu1 %v935_v46  ;;  %903 = vadd.xlane.f32.xlu0 %v889_v47 }
 0x2f5   :  { %v936_v54 = vmul.f32 %v5664_v53, %v5659_v48  ;;  %v890_v55 = vmul.f32 %v5664_v53, %v5661_v52 }
 0x2f7   :  { %951 = vadd.xlane.f32.xlu1 %v936_v54  ;;  %905 = vadd.xlane.f32.xlu0 %v890_v55 }
 0x364   :  { %v938_v56 = vpop.xlane.xlu1 %937  ;;  %v892_v57 = vpop.xlane.xlu0 %891 }
 0x368   :  { %v940_v58 = vpop.xlane.xlu1 %939  ;;  %v894_v59 = vpop.xlane.xlu0 %893 }
 0x369   :  { %v953_v5 = vadd.f32 %v940_v58, %v938_v56  ;;  %v907_v6 = vadd.f32 %v894_v59, %v892_v57 }
 0x36c   :  { %v942_v60 = vpop.xlane.xlu1 %941  ;;  %v896_v1 = vpop.xlane.xlu0 %895 }
 0x36d   :  { %v954_v7 = vadd.f32 %v953_v5, %v942_v60  ;;  %v908_v8 = vadd.f32 %v907_v6, %v896_v1 }
 0x370   :  { %v944_v2 = vpop.xlane.xlu1 %943  ;;  %v898_v3 = vpop.xlane.xlu0 %897 }
 0x371   :  { %v955_v0 = vadd.f32 %v954_v7, %v944_v2  ;;  %v909_v14 = vadd.f32 %v908_v8, %v898_v3 }
 0x374   :  { %v946_v21 = vpop.xlane.xlu1 %945  ;;  %v900_v4 = vpop.xlane.xlu0 %899 }
 0x375   :  { %v956_v15 = vadd.f32 %v955_v0, %v946_v21  ;;  %v910_v16 = vadd.f32 %v909_v14, %v900_v4 }
 0x378   :  { %v948_v9 = vpop.xlane.xlu1 %947  ;;  %v902_v13 = vpop.xlane.xlu0 %901 }
 0x379   :  { %v957_v19 = vadd.f32 %v956_v15, %v948_v9  ;;  %v911_v20 = vadd.f32 %v910_v16, %v902_v13 }
 0x37c   :  { %v950_v17 = vpop.xlane.xlu1 %949  ;;  %v904_v18 = vpop.xlane.xlu0 %903 }
 0x37d   :  { %v958_v27 = vadd.f32 %v957_v19, %v950_v17  ;;  %v912_v28 = vadd.f32 %v911_v20, %v904_v18 }
 0x380   :  { %v952_v30 = vpop.xlane.xlu1 %951  ;;  %v906_v31 = vpop.xlane.xlu0 %905 }
 0x381   :  { %v959_v32 = vadd.f32 %v958_v27, %v952_v30  ;;  %v913_v33 = vadd.f32 %v912_v28, %v906_v31 }
 0x383   :  { %v960_v34 = vrot.slane %v959_v32, 4  ;;  %v914_v35 = vrot.slane %v913_v33, 4 }
 0x385   :  { %v961_v36 = vadd.f32 %v960_v34, %v959_v32  ;;  %v915_v43 = vadd.f32 %v914_v35, %v913_v33 }
 0x387   :  { %v962_v44 = vrot.slane %v961_v36, 2  ;;  %v916_v45 = vrot.slane %v915_v43, 2 }
 0x389   :  { %v963_v46 = vadd.f32 %v962_v44, %v961_v36  ;;  %v917_v47 = vadd.f32 %v916_v45, %v915_v43 }
 0x38b   :  { %v964_v54 = vrot.slane %v963_v46, 1  ;;  %v918_v55 = vrot.slane %v917_v47, 1 }
 0x38d   :  { %v965_v56 = vadd.f32 %v964_v54, %v963_v46  ;;  %v919_v57 = vadd.f32 %v918_v55, %v917_v47 }
 0x38f   :  { %v966_v58 = vmul.f32 0.0005202914, %v965_v56  ;;  %v920_v59 = vmul.f32 0.0005202914, %v919_v57 }
 0x391   :  { %v922_v60 = vmul.f32 %v920_v59, %v5595_v38  ;;  %v968_v1 = vmul.f32 %v966_v58, %v5593_v37  ;;  %v921_v2 = vmul.f32 %v920_v59, %v5584_v26  ;;  %v967_v3 = vmul.f32 %v966_v58, %v5582_v25 }
 0x392   :  { %v923_v21 = vmul.f32 %v920_v59, %v5606_v50  ;;  %v969_v4 = vmul.f32 %v966_v58, %v5604_v49  ;;  %v924_v7 = vmul.f32 %v920_v59, %v5617_v62  ;;  %v970_v0 = vmul.f32 %v966_v58, %v5615_v61 }
 0x393   :  { %v976_v5 = vadd.f32 %v968_v1, %v922_v60  ;;  %v975_v6 = vadd.f32 %v967_v3, %v921_v2  ;;  %v925_v16 = vmul.f32 %v920_v59, %v5628_v11  ;;  %v971_v17 = vmul.f32 %v966_v58, %v5626_v10 }
 0x394   :  { %v977_v13 = vadd.f32 %v969_v4, %v923_v21  ;;  %v978_v19 = vadd.f32 %v970_v0, %v924_v7  ;;  %v926_v27 = vmul.f32 %v920_v59, %v5639_v23  ;;  %v972_v28 = vmul.f32 %v966_v58, %v5637_v22  ;;  %v5748_v0 = vld [vmem:[#allocation5 + $0x28] sm:$0xff] }
 0x395   :  { %v5678_v8 = vsub.f32 %v5598_v39, %v976_v5  ;;  %v5681_v9 = vsub.f32 %v5587_v29, %v975_v6  ;;  %v979_v20 = vadd.f32 %v971_v17, %v925_v16  ;;  %v927_v34 = vmul.f32 %v920_v59, %v5650_v41  ;;  %v5760_v16 = vld [vmem:[#allocation5 + $0x18] sm:$0xff]  ;;  %v5764_v17 = vld [vmem:[#allocation5 + $0x10] sm:$0xff] }
 0x396   :  { %v5693_v29 = vsub.f32 %v5609_v51, %v977_v13  ;;  %v5702_v33 = vsub.f32 %v5620_v63, %v978_v19  ;;  %v980_v51 = vadd.f32 %v972_v28, %v926_v27  ;;  %v973_v35 = vmul.f32 %v966_v58, %v5648_v40  ;;  %v5742_v13 = vld [vmem:[#allocation5 + $0x38] sm:$0xff]  ;;  %v5779_v19 = vld [vmem:[%s6650_s5 + $0x8] sm:$0xff]  ;;  %v5802_v28 = vld [vmem:[%s6650_s5 + $0x20] sm:$0xff] }
 0x397   :  { %v992_v14 = vmul.f32 %v5678_v8, %v5678_v8  ;;  %v991_v15 = vmul.f32 %v5681_v9, %v5681_v9  ;;  %v5711_v45 = vsub.f32 %v5631_v12, %v979_v20  ;;  %v928_v47 = vmul.f32 %v920_v59, %v5661_v52  ;;  %4416 = vmatprep.subr.mxu1 %v5742_v13  ;;  %v5785_v20 = vld [vmem:[%s6650_s5 + $0x10] sm:$0xff]  ;;  %v5795_v27 = vld [vmem:[%s6650_s5 + $0x18] sm:$0xff] }
 0x398   :  { %v993_v32 = vmul.f32 %v5693_v29, %v5693_v29  ;;  %v994_v44 = vmul.f32 %v5702_v33, %v5702_v33  ;;  %v5714_v63 = vsub.f32 %v5642_v24, %v980_v51  ;;  %v981_v46 = vadd.f32 %v973_v35, %v927_v34  ;;  %4417 = vmatpush3.msra.mxu1 %v5742_v13  ;;  %v1409_v51 = vld [vmem:[#allocation11 + $0x78] sm:$0xff]  ;;  %v1408_v34 = vld [vmem:[#allocation11 + $0x70] sm:$0xff]  ;;  %v1407_v35 = vld [vmem:[#allocation11 + $0x68] sm:$0xff] }
 0x399   :  { %v1000_v18 = vmul.f32 %v992_v14, %v5595_v38  ;;  %v999_v39 = vmul.f32 %v991_v15, %v5584_v26  ;;  %v1048_v30 = vmul.f32 %v992_v14, %v5593_v37  ;;  %v1047_v31 = vmul.f32 %v991_v15, %v5582_v25  ;;  %v1136_v14 = vld [vmem:[%s6650_s5] sm:$0xff]  ;;  %4472 = vmatprep.subr.mxu0 %v1409_v51 }
 0x39a   :  { %v1049_v36 = vmul.f32 %v993_v32, %v5604_v49  ;;  %v1001_v43 = vmul.f32 %v993_v32, %v5606_v50  ;;  %v1050_v54 = vmul.f32 %v994_v44, %v5615_v61  ;;  %v1002_v55 = vmul.f32 %v994_v44, %v5617_v62  ;;  %4432 = vmatprep.mubr.msk.f32.mxu1 %vm184_vm0, %v1136_v14  ;;  %v5756_v15 = vld [vmem:[#allocation5 + $0x20] sm:$0xff]  ;;  %v5823_v32 = vld [vmem:[%s6650_s5 + $0x38] sm:$0xff] }
 0x39b   :  { %1009 = vadd.xlane.f32.xlu1 %v1000_v18  ;;  %1007 = vadd.xlane.f32.xlu0 %v999_v39  ;;  %v995_v56 = vmul.f32 %v5711_v45, %v5711_v45  ;;  %v974_v57 = vmul.f32 %v966_v58, %v5659_v48  ;;  %v996_v12 = vmul.f32 %v5714_v63, %v5714_v63  ;;  %v5768_v18 = vld [vmem:[#allocation5 + $0x8] sm:$0xff]  ;;  %v5772_v39 = vld [vmem:[#allocation5] sm:$0xff] }
 0x39c   :  { %v5727_v59 = vsub.f32 %v5653_v42, %v981_v46  ;;  %6662 = vst [vmem:[#allocation24_spill] sm:$0xff] %v5768_v18  ;;  %6663 = vst [vmem:[#allocation25_spill] sm:$0xff] %v5772_v39  ;;  %4473 = vmatpush3.msra.mxu0 %v1409_v51  ;;  %v1405_v46 = vld [vmem:[#allocation11 + $0x58] sm:$0xff]  ;;  %v1396_v51 = vld [vmem:[#allocation11 + $0x10] sm:$0xff] }
 0x39d   :  { %v1051_v24 = vmul.f32 %v995_v56, %v5626_v10  ;;  %v1003_v60 = vmul.f32 %v995_v56, %v5628_v11  ;;  %v982_v1 = vadd.f32 %v974_v57, %v928_v47  ;;  %v1052_v2 = vmul.f32 %v996_v12, %v5637_v22  ;;  %4474 = vmatprep.subr.mxu0 %v1408_v34  ;;  %v1404_v47 = vld [vmem:[#allocation11 + $0x50] sm:$0xff]  ;;  %v1403_v56 = vld [vmem:[#allocation11 + $0x48] sm:$0xff]  ;;  %v1402_v57 = vld [vmem:[#allocation11 + $0x40] sm:$0xff] }
 0x39e   :  { %v1004_v3 = vmul.f32 %v996_v12, %v5639_v23  ;;  %v997_v58 = vmul.f32 %v5727_v59, %v5727_v59  ;;  %4475 = vmatpush3.msra.mxu0 %v1408_v34 }
 0x39f   :  { %1057 = vadd.xlane.f32.xlu1 %v1048_v30  ;;  %1055 = vadd.xlane.f32.xlu0 %v1047_v31  ;;  %v5734_v21 = vsub.f32 %v5664_v53, %v982_v1  ;;  %v5744_v53 = vld [vmem:[#allocation5 + $0x30] sm:$0xff]  ;;  %v5809_v30 = vld [vmem:[%s6650_s5 + $0x28] sm:$0xff] }
 0x3a0   :  { %v1053_v4 = vmul.f32 %v997_v58, %v5648_v40  ;;  %v1005_v42 = vmul.f32 %v997_v58, %v5650_v41  ;;  %4418 = vmatprep.subr.mxu1 %v5744_v53  ;;  %v5816_v31 = vld [vmem:[%s6650_s5 + $0x30] sm:$0xff]  ;;  %4476 = vmatprep.subr.mxu0 %v1407_v35  ;;  %v1399_v58 = vld [vmem:[#allocation11 + $0x28] sm:$0xff] }
 0x3a1   :  { %v998_v5 = vmul.f32 %v5734_v21, %v5734_v21  ;;  %4419 = vmatpush3.msra.mxu1 %v5744_v53  ;;  %4477 = vmatpush3.msra.mxu0 %v1407_v35  ;;  %v1400_v1 = vld [vmem:[#allocation11 + $0x30] sm:$0xff] }
 0x3a2   :  { %4420 = vmatprep.subr.mxu1 %v5748_v0 }
 0x3a3   :  { %1059 = vadd.xlane.f32.xlu1 %v1049_v36  ;;  %1011 = vadd.xlane.f32.xlu0 %v1001_v43  ;;  %v1054_v6 = vmul.f32 %v998_v5, %v5659_v48  ;;  %v1006_v7 = vmul.f32 %v998_v5, %v5661_v52  ;;  %v1406_v36 = vld [vmem:[#allocation11 + $0x60] sm:$0xff] }
 0x3a4   :  { %4421 = vmatpush3.msra.mxu1 %v5748_v0  ;;  %4478 = vmatprep.subr.mxu0 %v1406_v36 }
 0x3a5   :  { %4422 = vmatprep.subr.mxu1 %v5756_v15  ;;  %4479 = vmatpush3.msra.mxu0 %v1406_v36  ;;  %v1395_v36 = vld [vmem:[#allocation11 + $0x8] sm:$0xff] }
 0x3a6   :  { %4423 = vmatpush3.msra.mxu1 %v5756_v15  ;;  %4480 = vmatprep.subr.mxu0 %v1405_v46 }
 0x3a7   :  { %1061 = vadd.xlane.f32.xlu1 %v1050_v54  ;;  %1013 = vadd.xlane.f32.xlu0 %v1002_v55 }
 0x3a8   :  { %4424 = vmatprep.subr.mxu1 %v5760_v16  ;;  %4481 = vmatpush3.msra.mxu0 %v1405_v46 }
 0x3a9   :  { %4425 = vmatpush3.msra.mxu1 %v5760_v16  ;;  %4482 = vmatprep.subr.mxu0 %v1404_v47 }
 0x3aa   :  { %4426 = vmatprep.subr.mxu1 %v5764_v17  ;;  %4483 = vmatpush3.msra.mxu0 %v1404_v47 }
 0x3ab   :  { %1063 = vadd.xlane.f32.xlu1 %v1051_v24  ;;  %1015 = vadd.xlane.f32.xlu0 %v1003_v60  ;;  %v1401_v60 = vld [vmem:[#allocation11 + $0x38] sm:$0xff] }
 0x3ac   :  { %4427 = vmatpush3.msra.mxu1 %v5764_v17  ;;  %4484 = vmatprep.subr.mxu0 %v1403_v56 }
 0x3ad   :  { %4428 = vmatprep.subr.mxu1 %v5768_v18  ;;  %4485 = vmatpush3.msra.mxu0 %v1403_v56 }
 0x3ae   :  { %4429 = vmatpush3.msra.mxu1 %v5768_v18  ;;  %4486 = vmatprep.subr.mxu0 %v1402_v57 }
 0x3af   :  { %1065 = vadd.xlane.f32.xlu1 %v1052_v2  ;;  %1017 = vadd.xlane.f32.xlu0 %v1004_v3 }
 0x3b0   :  { %4430 = vmatprep.subr.mxu1 %v5772_v39  ;;  %4487 = vmatpush3.msra.mxu0 %v1402_v57 }
 0x3b1   :  { %4431 = vmatpush3.msra.mxu1 %v5772_v39  ;;  %4488 = vmatprep.subr.mxu0 %v1401_v60 }
 0x3b2   :  { %4433 = vmatmul.mubr.msk.f32.vlgmr.msra.gmra.mxu1 %vm184_vm0, %v5779_v19  ;;  %4489 = vmatpush3.msra.mxu0 %v1401_v60 }
 0x3b3   :  { %1067 = vadd.xlane.f32.xlu1 %v1053_v4  ;;  %1019 = vadd.xlane.f32.xlu0 %v1005_v42  ;;  %v1398_v4 = vld [vmem:[#allocation11 + $0x20] sm:$0xff] }
 0x3b4   :  { %4435 = vmatprep.mubr.msk.f32.mxu1 %vm184_vm0, %v5785_v20  ;;  %4490 = vmatprep.subr.mxu0 %v1400_v1 }
 0x3b5   :  { %4491 = vmatpush3.msra.mxu0 %v1400_v1 }
 0x3b6   :  { %4436 = vmatmul.mubr.msk.f32.gmra.mxu1 %vm184_vm0, %v5795_v27  ;;  %4492 = vmatprep.subr.mxu0 %v1399_v58 }
 0x3b7   :  { %1069 = vadd.xlane.f32.xlu1 %v1054_v6  ;;  %1021 = vadd.xlane.f32.xlu0 %v1006_v7  ;;  %v1397_v6 = vld [vmem:[#allocation11 + $0x18] sm:$0xff] }
 0x3b8   :  { %4438 = vmatprep.mubr.msk.f32.mxu1 %vm184_vm0, %v5802_v28  ;;  %4493 = vmatpush3.msra.mxu0 %v1399_v58 }
 0x3b9   :  { %4494 = vmatprep.subr.mxu0 %v1398_v4 }
 0x3ba   :  { %4439 = vmatmul.mubr.msk.f32.gmra.mxu1 %vm184_vm0, %v5809_v30  ;;  %4495 = vmatpush3.msra.mxu0 %v1398_v4 }
 0x3bb   :  { %4441 = vmatprep.mubr.msk.f32.mxu1 %vm184_vm0, %v5816_v31  ;;  %4496 = vmatprep.subr.mxu0 %v1397_v6 }
 0x3bc   :  { %4497 = vmatpush3.msra.mxu0 %v1397_v6 }
 0x3bd   :  { %4498 = vmatprep.subr.mxu0 %v1396_v51 }
 0x3be   :  { %4442 = vmatmul.mubr.msk.f32.gmra.mxu1 %vm184_vm0, %v5823_v32  ;;  %4499 = vmatpush3.msra.mxu0 %v1396_v51 }
 0x3bf   :  { %4460 = vmatprep.mubr.msk.f32.mxu1 %vm184_vm0, %v1136_v14  ;;  %4500 = vmatprep.subr.mxu0 %v1395_v36 }
 0x3c0   :  { %4501 = vmatpush3.msra.mxu0 %v1395_v36 }
 0x424   :  { %v1010_v43 = vpop.xlane.xlu1 %1009  ;;  %v1008_v44 = vpop.xlane.xlu0 %1007 }
 0x425   :  { %v1023_v7 = vadd.f32 %v1010_v43, %v1008_v44 }
 0x428   :  { %v1058_v54 = vpop.xlane.xlu1 %1057  ;;  %v1056_v55 = vpop.xlane.xlu0 %1055 }
 0x429   :  { %v1071_v14 = vadd.f32 %v1058_v54, %v1056_v55 }
 0x42c   :  { %v1060_v12 = vpop.xlane.xlu1 %1059  ;;  %v1012_v24 = vpop.xlane.xlu0 %1011 }
 0x42d   :  { %v1072_v34 = vadd.f32 %v1071_v14, %v1060_v12  ;;  %v1024_v35 = vadd.f32 %v1023_v7, %v1012_v24 }
 0x430   :  { %v1062_v2 = vpop.xlane.xlu1 %1061  ;;  %v1014_v3 = vpop.xlane.xlu0 %1013 }
 0x431   :  { %v1073_v56 = vadd.f32 %v1072_v34, %v1062_v2  ;;  %v1025_v57 = vadd.f32 %v1024_v35, %v1014_v3 }
 0x434   :  { %v1064_v42 = vpop.xlane.xlu1 %1063  ;;  %v1016_v5 = vpop.xlane.xlu0 %1015 }
 0x435   :  { %v1074_v60 = vadd.f32 %v1073_v56, %v1064_v42  ;;  %v1026_v1 = vadd.f32 %v1025_v57, %v1016_v5 }
 0x438   :  { %v1066_v46 = vpop.xlane.xlu1 %1065  ;;  %v1018_v47 = vpop.xlane.xlu0 %1017 }
 0x439   :  { %v1075_v44 = vadd.f32 %v1074_v60, %v1066_v46  ;;  %v1027_v54 = vadd.f32 %v1026_v1, %v1018_v47 }
 0x43c   :  { %v1068_v58 = vpop.xlane.xlu1 %1067  ;;  %v1020_v43 = vpop.xlane.xlu0 %1019 }
 0x43d   :  { %v1076_v55 = vadd.f32 %v1075_v44, %v1068_v58  ;;  %v1028_v4 = vadd.f32 %v1027_v54, %v1020_v43 }
 0x440   :  { %v1070_v12 = vpop.xlane.xlu1 %1069  ;;  %v1022_v24 = vpop.xlane.xlu0 %1021 }
 0x441   :  { %v1077_v6 = vadd.f32 %v1076_v55, %v1070_v12  ;;  %v1029_v7 = vadd.f32 %v1028_v4, %v1022_v24 }
 0x443   :  { %v1078_v14 = vrot.slane %v1077_v6, 4  ;;  %v1030_v39 = vrot.slane %v1029_v7, 4 }
 0x445   :  { %v1079_v18 = vadd.f32 %v1078_v14, %v1077_v6  ;;  %v1031_v2 = vadd.f32 %v1030_v39, %v1029_v7 }
 0x447   :  { %v1080_v3 = vrot.slane %v1079_v18, 2  ;;  %v1032_v51 = vrot.slane %v1031_v2, 2 }
 0x449   :  { %v1081_v34 = vadd.f32 %v1080_v3, %v1079_v18  ;;  %v1033_v42 = vadd.f32 %v1032_v51, %v1031_v2  ;;  %v1284_v2 = vld [vmem:[#allocation10 + $0x58] sm:$0xff]  ;;  %v1279_v3 = vld [vmem:[#allocation10 + $0x30] sm:$0xff] }
 0x44a   :  { %v1276_v51 = vld [vmem:[#allocation10 + $0x18] sm:$0xff] }
 0x44b   :  { %v1082_v5 = vrot.slane %v1081_v34, 1  ;;  %v1034_v35 = vrot.slane %v1033_v42, 1 }
 0x44d   :  { %v1083_v36 = vadd.f32 %v1082_v5, %v1081_v34  ;;  %v1035_v56 = vadd.f32 %v1034_v35, %v1033_v42  ;;  %v1275_v34 = vld [vmem:[#allocation10 + $0x10] sm:$0xff]  ;;  %v1273_v42 = vld [vmem:[#allocation10] sm:$0xff] }
 0x44f   :  { %v1084_v46 = vmul.f32 0.0005202914, %v1083_v36  ;;  %v1036_v47 = vmul.f32 0.0005202914, %v1035_v56 }
 0x451   :  { %v1085_v57 = vadd.f32 1e-05, %v1084_v46  ;;  %v1037_v60 = vadd.f32 1e-05, %v1036_v47 }
 0x453   :  { %5095 = vrsqrt.f32 %v1085_v57 }
 0x454   :  { %5097 = vrsqrt.f32 %v1037_v60 }
 0x460   :  { %v5096_v1 = vpop.eup %5095 }
 0x461   :  { %v5098_v58 = vpop.eup %5097  ;;  %v1094_v43 = vmul.f32 %v5096_v1, %v5659_v48  ;;  %v1093_v39 = vmul.f32 %v5096_v1, %v5648_v40  ;;  %v1092_v55 = vmul.f32 %v5096_v1, %v5637_v22  ;;  %v1091_v6 = vmul.f32 %v5096_v1, %v5626_v10 }
 0x462   :  { %v1046_v44 = vmul.f32 %v5098_v58, %v5661_v52  ;;  %v1045_v18 = vmul.f32 %v5098_v58, %v5650_v41  ;;  %v1044_v54 = vmul.f32 %v5098_v58, %v5639_v23  ;;  %v1043_v24 = vmul.f32 %v5098_v58, %v5628_v11 }
 0x463   :  { %v1042_v40 = vmul.f32 %v5098_v58, %v5617_v62  ;;  %v1090_v52 = vmul.f32 %v5096_v1, %v5615_v61  ;;  %v1041_v41 = vmul.f32 %v5098_v58, %v5606_v50  ;;  %v1089_v11 = vmul.f32 %v5096_v1, %v5604_v49 }
 0x464   :  { %v1102_v4 = vadd.f32 %v1094_v43, %v1046_v44  ;;  %v1101_v12 = vadd.f32 %v1093_v39, %v1045_v18  ;;  %v1100_v48 = vadd.f32 %v1092_v55, %v1044_v54  ;;  %v1099_v22 = vadd.f32 %v1091_v6, %v1043_v24  ;;  %v6664_v24 = vld [vmem:[#allocation24_spill] sm:$0xff]  ;;  %v3871_v6 = vld [vmem:[%s6650_s5 + $0x48] sm:$0xff] }
 0x465   :  { %v1098_v62 = vadd.f32 %v1090_v52, %v1042_v40  ;;  %v1040_v61 = vmul.f32 %v5098_v58, %v5595_v38  ;;  %v1097_v49 = vadd.f32 %v1089_v11, %v1041_v41  ;;  %v1087_v14 = vmul.f32 %v5096_v1, %v5582_v25  ;;  %v3872_v40 = vld [vmem:[%s6650_s5 + $0x50] sm:$0xff]  ;;  %v3873_v52 = vld [vmem:[%s6650_s5 + $0x58] sm:$0xff]  ;;  %v3875_v41 = vld [vmem:[%s6650_s5 + $0x68] sm:$0xff] }
 0x466   :  { %v5837_v7 = vmul.f32 %v1102_v4, %v5734_v21  ;;  %v5843_v23 = vmul.f32 %v1101_v12, %v5727_v59  ;;  %v5850_v10 = vmul.f32 %v1100_v48, %v5714_v63  ;;  %v1088_v21 = vmul.f32 %v5096_v1, %v5593_v37  ;;  %v1394_v1 = vld [vmem:[#allocation11] sm:$0xff]  ;;  %v6665_v48 = vld [vmem:[#allocation25_spill] sm:$0xff]  ;;  %v3876_v11 = vld [vmem:[%s6650_s5 + $0x70] sm:$0xff] }
 0x467   :  { %v5857_v50 = vmul.f32 %v1099_v22, %v5711_v45  ;;  %v1039_v59 = vmul.f32 %v5098_v58, %v5584_v26  ;;  %v5864_v38 = vmul.f32 %v1098_v62, %v5702_v33  ;;  %v5869_v45 = vmul.f32 %v1097_v49, %v5693_v29  ;;  %v1288_v33 = vld [vmem:[#allocation10 + $0x78] sm:$0xff]  ;;  %v1287_v29 = vld [vmem:[#allocation10 + $0x70] sm:$0xff]  ;;  %4502 = vmatprep.subr.mxu0 %v1394_v1  ;;  %v5912_v12 = vld [vmem:[%s6650_s5 + $0x40] sm:$0xff] }
 0x468   :  { %4444 = vmatprep.subr.mxu1 %v5837_v7  ;;  %v1096_v37 = vadd.f32 %v1088_v21, %v1040_v61  ;;  %4503 = vmatpush3.msra.mxu0 %v1394_v1  ;;  %v3874_v22 = vld [vmem:[%s6650_s5 + $0x60] sm:$0xff]  ;;  %v3877_v62 = vld [vmem:[%s6650_s5 + $0x78] sm:$0xff]  ;;  %v1773_v21 = vld [vmem:[#allocation10 + $0xf0] sm:$0xff] }
 0x469   :  { %4445 = vmatpush3.msra.mxu1 %v5837_v7  ;;  %v1095_v63 = vadd.f32 %v1087_v14, %v1039_v59  ;;  %4560 = vmatprep.subr.mxu0 %v5742_v13  ;;  %v1774_v61 = vld [vmem:[#allocation10 + $0xf8] sm:$0xff]  ;;  %v1772_v49 = vld [vmem:[#allocation10 + $0xe8] sm:$0xff]  ;;  %v1771_v59 = vld [vmem:[#allocation10 + $0xe0] sm:$0xff] }
 0x46a   :  { %4446 = vmatprep.subr.mxu1 %v5843_v23  ;;  %v5874_v25 = vmul.f32 %v1096_v37, %v5678_v8  ;;  %v1286_v8 = vld [vmem:[#allocation10 + $0x68] sm:$0xff]  ;;  %v1770_v14 = vld [vmem:[#allocation10 + $0xd8] sm:$0xff]  ;;  %v1769_v37 = vld [vmem:[#allocation10 + $0xd0] sm:$0xff] }
 0x46b   :  { %4447 = vmatpush3.msra.mxu1 %v5843_v23  ;;  %v5879_v26 = vmul.f32 %v1095_v63, %v5681_v9  ;;  %v1285_v9 = vld [vmem:[#allocation10 + $0x60] sm:$0xff]  ;;  %v1768_v63 = vld [vmem:[#allocation10 + $0xc8] sm:$0xff] }
 0x46c   :  { %4448 = vmatprep.subr.mxu1 %v5850_v10  ;;  %v1881_v1 = vld [vmem:[#allocation11 + $0x80] sm:$0xff] }
 0x46d   :  { %4449 = vmatpush3.msra.mxu1 %v5850_v10 }
 0x46e   :  { %4450 = vmatprep.subr.mxu1 %v5857_v50 }
 0x46f   :  { %4451 = vmatpush3.msra.mxu1 %v5857_v50 }
 0x470   :  { %4452 = vmatprep.subr.mxu1 %v5864_v38 }
 0x471   :  { %4453 = vmatpush3.msra.mxu1 %v5864_v38 }
 0x472   :  { %4454 = vmatprep.subr.mxu1 %v5869_v45  ;;  %v4434_v5 = vpop.f32.mrf.mxu1 }
 0x473   :  { %4455 = vmatpush3.msra.mxu1 %v5869_v45 }
 0x474   :  { %4456 = vmatprep.subr.mxu1 %v5874_v25  ;;  %v1234_v35 = vpop.f32.mrf.mxu1 }
 0x475   :  { %4457 = vmatpush3.msra.mxu1 %v5874_v25 }
 0x476   :  { %4458 = vmatprep.subr.mxu1 %v5879_v26  ;;  %v4437_v36 = vpop.f32.mrf.mxu1 }
 0x477   :  { %4459 = vmatpush3.msra.mxu1 %v5879_v26 }
 0x478   :  { %4461 = vmatmul.mubr.msk.f32.vlgmr.msra.gmra.mxu1 %vm184_vm0, %v5779_v19  ;;  %4516 = vmatprep.subr.mxu1 %v1288_v33  ;;  %v1283_v19 = vld [vmem:[#allocation10 + $0x50] sm:$0xff]  ;;  %v1244_v56 = vpop.f32.mrf.mxu1 }
 0x479   :  { %4463 = vmatprep.mubr.msk.f32.mxu1 %vm184_vm0, %v5785_v20  ;;  %4517 = vmatpush3.msra.mxu1 %v1288_v33  ;;  %v1282_v20 = vld [vmem:[#allocation10 + $0x48] sm:$0xff]  ;;  %v1767_v33 = vld [vmem:[#allocation10 + $0xc0] sm:$0xff] }
 0x47a   :  { %4518 = vmatprep.subr.mxu1 %v1287_v29  ;;  %v4440_v46 = vpop.f32.mrf.mxu1 }
 0x47b   :  { %4519 = vmatpush3.msra.mxu1 %v1287_v29  ;;  %v1766_v29 = vld [vmem:[#allocation10 + $0xb8] sm:$0xff] }
 0x47c   :  { %4464 = vmatmul.mubr.msk.f32.gmra.mxu1 %vm184_vm0, %v5795_v27  ;;  %4520 = vmatprep.subr.mxu1 %v1286_v8  ;;  %v1281_v27 = vld [vmem:[#allocation10 + $0x40] sm:$0xff]  ;;  %v1254_v47 = vpop.f32.mrf.mxu1 }
 0x47d   :  { %4466 = vmatprep.mubr.msk.f32.mxu1 %vm184_vm0, %v5802_v28  ;;  %4521 = vmatpush3.msra.mxu1 %v1286_v8  ;;  %v1280_v28 = vld [vmem:[#allocation10 + $0x38] sm:$0xff]  ;;  %v1765_v8 = vld [vmem:[#allocation10 + $0xb0] sm:$0xff] }
 0x47e   :  { %4522 = vmatprep.subr.mxu1 %v1285_v9  ;;  %v4443_v57 = vpop.f32.mrf.mxu1 }
 0x47f   :  { %4523 = vmatpush3.msra.mxu1 %v1285_v9  ;;  %v1764_v9 = vld [vmem:[#allocation10 + $0xa8] sm:$0xff] }
 0x480   :  { %4467 = vmatmul.mubr.msk.f32.gmra.mxu1 %vm184_vm0, %v5809_v30  ;;  %4524 = vmatprep.subr.mxu1 %v1284_v2  ;;  %v1278_v30 = vld [vmem:[#allocation10 + $0x28] sm:$0xff]  ;;  %v1264_v60 = vpop.f32.mrf.mxu1 }
 0x481   :  { %4469 = vmatprep.mubr.msk.f32.mxu1 %vm184_vm0, %v5816_v31  ;;  %4525 = vmatpush3.msra.mxu1 %v1284_v2  ;;  %v1277_v31 = vld [vmem:[#allocation10 + $0x20] sm:$0xff] }
 0x482   :  { %4526 = vmatprep.subr.mxu1 %v1283_v19  ;;  %v1763_v2 = vld [vmem:[#allocation10 + $0xa0] sm:$0xff] }
 0x483   :  { %4527 = vmatpush3.msra.mxu1 %v1283_v19  ;;  %v1762_v19 = vld [vmem:[#allocation10 + $0x98] sm:$0xff] }
 0x484   :  { %4470 = vmatmul.mubr.msk.f32.gmra.mxu1 %vm184_vm0, %v5823_v32  ;;  %4528 = vmatprep.subr.mxu1 %v1282_v20  ;;  %v1274_v32 = vld [vmem:[#allocation10 + $0x8] sm:$0xff] }
 0x485   :  { %4529 = vmatpush3.msra.mxu1 %v1282_v20  ;;  %4548 = vmatprep.mubr.f32.mxu1 %v1234_v35  ;;  %v1761_v20 = vld [vmem:[#allocation10 + $0x90] sm:$0xff]  ;;  %v1888_v35 = vld [vmem:[#allocation11 + $0xb8] sm:$0xff] }
 0x486   :  { %4530 = vmatprep.subr.mxu1 %v1281_v27 }
 0x487   :  { %4531 = vmatpush3.msra.mxu1 %v1281_v27  ;;  %v1760_v27 = vld [vmem:[#allocation10 + $0x88] sm:$0xff] }
 0x488   :  { %4532 = vmatprep.subr.mxu1 %v1280_v28 }
 0x489   :  { %4533 = vmatpush3.msra.mxu1 %v1280_v28  ;;  %v1759_v28 = vld [vmem:[#allocation10 + $0x80] sm:$0xff] }
 0x48a   :  { %4534 = vmatprep.subr.mxu1 %v1279_v3 }
 0x48b   :  { %4535 = vmatpush3.msra.mxu1 %v1279_v3  ;;  %v1896_v3 = vld [vmem:[#allocation11 + $0xf8] sm:$0xff] }
 0x48c   :  { %4536 = vmatprep.subr.mxu1 %v1278_v30 }
 0x48d   :  { %4537 = vmatpush3.msra.mxu1 %v1278_v30  ;;  %v1895_v30 = vld [vmem:[#allocation11 + $0xf0] sm:$0xff] }
 0x48e   :  { %4538 = vmatprep.subr.mxu1 %v1277_v31 }
 0x48f   :  { %4539 = vmatpush3.msra.mxu1 %v1277_v31  ;;  %v1894_v31 = vld [vmem:[#allocation11 + $0xe8] sm:$0xff] }
 0x490   :  { %4540 = vmatprep.subr.mxu1 %v1276_v51 }
 0x491   :  { %4541 = vmatpush3.msra.mxu1 %v1276_v51  ;;  %v1893_v51 = vld [vmem:[#allocation11 + $0xe0] sm:$0xff] }
 0x492   :  { %4542 = vmatprep.subr.mxu1 %v1275_v34 }
 0x493   :  { %4543 = vmatpush3.msra.mxu1 %v1275_v34  ;;  %v1892_v34 = vld [vmem:[#allocation11 + $0xd8] sm:$0xff] }
 0x494   :  { %4544 = vmatprep.subr.mxu1 %v1274_v32 }
 0x495   :  { %4545 = vmatpush3.msra.mxu1 %v1274_v32  ;;  %v1891_v32 = vld [vmem:[#allocation11 + $0xd0] sm:$0xff] }
 0x496   :  { %4546 = vmatprep.subr.mxu1 %v1273_v42 }
 0x497   :  { %4547 = vmatpush3.msra.mxu1 %v1273_v42  ;;  %v1890_v42 = vld [vmem:[#allocation11 + $0xc8] sm:$0xff] }
 0x498   :  { %4549 = vmatmul.mubr.f32.vlgmr.msra.gmra.mxu1 %v4434_v5  ;;  %4616 = vmatprep.subr.mxu1 %v1896_v3  ;;  %v1889_v5 = vld [vmem:[#allocation11 + $0xc0] sm:$0xff] }
 0x499   :  { %4551 = vmatprep.mubr.f32.mxu1 %v1244_v56  ;;  %4617 = vmatpush3.msra.mxu1 %v1896_v3  ;;  %v1886_v56 = vld [vmem:[#allocation11 + $0xa8] sm:$0xff] }
 0x49a   :  { %4618 = vmatprep.subr.mxu1 %v1895_v30  ;;  %v2263_v3 = vld [vmem:[#allocation10 + $0x148] sm:$0xff] }
 0x49b   :  { %4619 = vmatpush3.msra.mxu1 %v1895_v30  ;;  %v2382_v30 = vld [vmem:[#allocation11 + $0x130] sm:$0xff] }
 0x49c   :  { %4552 = vmatmul.mubr.f32.gmra.mxu1 %v4437_v36  ;;  %4620 = vmatprep.subr.mxu1 %v1894_v31  ;;  %v1887_v36 = vld [vmem:[#allocation11 + $0xb0] sm:$0xff] }
 0x49d   :  { %4554 = vmatprep.mubr.f32.mxu1 %v1254_v47  ;;  %4621 = vmatpush3.msra.mxu1 %v1894_v31  ;;  %v1884_v47 = vld [vmem:[#allocation11 + $0x98] sm:$0xff]  ;;  %v2262_v31 = vld [vmem:[#allocation10 + $0x140] sm:$0xff] }
 0x49e   :  { %4622 = vmatprep.subr.mxu1 %v1893_v51 }
 0x49f   :  { %4623 = vmatpush3.msra.mxu1 %v1893_v51  ;;  %v2381_v51 = vld [vmem:[#allocation11 + $0x128] sm:$0xff] }
 0x4a0   :  { %4555 = vmatmul.mubr.f32.gmra.mxu1 %v4440_v46  ;;  %4624 = vmatprep.subr.mxu1 %v1892_v34  ;;  %v1885_v46 = vld [vmem:[#allocation11 + $0xa0] sm:$0xff] }
 0x4a1   :  { %4557 = vmatprep.mubr.f32.mxu1 %v1264_v60  ;;  %4625 = vmatpush3.msra.mxu1 %v1892_v34  ;;  %v1882_v60 = vld [vmem:[#allocation11 + $0x88] sm:$0xff]  ;;  %v2261_v34 = vld [vmem:[#allocation10 + $0x138] sm:$0xff] }
 0x4a2   :  { %4626 = vmatprep.subr.mxu1 %v1891_v32 }
 0x4a3   :  { %4627 = vmatpush3.msra.mxu1 %v1891_v32  ;;  %v2380_v32 = vld [vmem:[#allocation11 + $0x120] sm:$0xff] }
 0x4a4   :  { %4558 = vmatmul.mubr.f32.gmra.mxu1 %v4443_v57  ;;  %4628 = vmatprep.subr.mxu1 %v1890_v42  ;;  %v1883_v57 = vld [vmem:[#allocation11 + $0x90] sm:$0xff] }
 0x4a5   :  { %4629 = vmatpush3.msra.mxu1 %v1890_v42  ;;  %v2260_v42 = vld [vmem:[#allocation10 + $0x130] sm:$0xff] }
 0x4a6   :  { %4630 = vmatprep.subr.mxu1 %v1889_v5 }
 0x4a7   :  { %4631 = vmatpush3.msra.mxu1 %v1889_v5  ;;  %v2379_v5 = vld [vmem:[#allocation11 + $0x118] sm:$0xff] }
 0x4a8   :  { %4632 = vmatprep.subr.mxu1 %v1888_v35 }
 0x4a9   :  { %4633 = vmatpush3.msra.mxu1 %v1888_v35  ;;  %v2259_v35 = vld [vmem:[#allocation10 + $0x128] sm:$0xff] }
 0x4aa   :  { %4634 = vmatprep.subr.mxu1 %v1887_v36 }
 0x4ab   :  { %4635 = vmatpush3.msra.mxu1 %v1887_v36  ;;  %v2378_v36 = vld [vmem:[#allocation11 + $0x110] sm:$0xff] }
 0x4ac   :  { %4636 = vmatprep.subr.mxu1 %v1886_v56 }
 0x4ad   :  { %4637 = vmatpush3.msra.mxu1 %v1886_v56  ;;  %v2258_v56 = vld [vmem:[#allocation10 + $0x120] sm:$0xff] }
 0x4ae   :  { %4638 = vmatprep.subr.mxu1 %v1885_v46 }
 0x4af   :  { %4639 = vmatpush3.msra.mxu1 %v1885_v46  ;;  %v2377_v46 = vld [vmem:[#allocation11 + $0x108] sm:$0xff] }
 0x4b0   :  { %4640 = vmatprep.subr.mxu1 %v1884_v47 }
 0x4b1   :  { %4641 = vmatpush3.msra.mxu1 %v1884_v47  ;;  %v2257_v47 = vld [vmem:[#allocation10 + $0x118] sm:$0xff] }
 0x4b2   :  { %4642 = vmatprep.subr.mxu1 %v1883_v57 }
 0x4b3   :  { %4643 = vmatpush3.msra.mxu1 %v1883_v57  ;;  %v2376_v57 = vld [vmem:[#allocation11 + $0x100] sm:$0xff] }
 0x4b4   :  { %4644 = vmatprep.subr.mxu1 %v1882_v60 }
 0x4b5   :  { %4645 = vmatpush3.msra.mxu1 %v1882_v60  ;;  %v2256_v60 = vld [vmem:[#allocation10 + $0x110] sm:$0xff] }
 0x4b6   :  { %4646 = vmatprep.subr.mxu1 %v1881_v1 }
 0x4b7   :  { %4647 = vmatpush3.msra.mxu1 %v1881_v1  ;;  %v2255_v1 = vld [vmem:[#allocation10 + $0x108] sm:$0xff] }
 0x4b8   :  { %4704 = vmatprep.subr.mxu1 %v5742_v13 }
 0x538   :  { %v4462_v58 = vpop.f32.mrf.mxu1 }
 0x53a   :  { %v1355_v43 = vpop.f32.mrf.mxu1 }
 0x53b   :  { %4504 = vmatprep.mubr.f32.mxu0 %v1355_v43 }
 0x53c   :  { %v4465_v39 = vpop.f32.mrf.mxu1  ;;  %4505 = vmatmul.mubr.f32.vlgmr.msra.gmra.mxu0 %v4462_v58 }
 0x53d   :  { %4561 = vmatpush3.msra.mxu0 %v5742_v13 }
 0x53e   :  { %4562 = vmatprep.subr.mxu0 %v5744_v53  ;;  %v1365_v44 = vpop.f32.mrf.mxu1 }
 0x53f   :  { %4563 = vmatpush3.msra.mxu0 %v5744_v53  ;;  %4507 = vmatprep.mubr.f32.mxu0 %v1365_v44 }
 0x540   :  { %4564 = vmatprep.subr.mxu0 %v5748_v0  ;;  %v4468_v18 = vpop.f32.mrf.mxu1  ;;  %4508 = vmatmul.mubr.f32.gmra.mxu0 %v4465_v39 }
 0x541   :  { %4565 = vmatpush3.msra.mxu0 %v5748_v0 }
 0x542   :  { %4566 = vmatprep.subr.mxu0 %v5756_v15  ;;  %v1375_v54 = vpop.f32.mrf.mxu1 }
 0x543   :  { %4567 = vmatpush3.msra.mxu0 %v5756_v15  ;;  %4510 = vmatprep.mubr.f32.mxu0 %v1375_v54 }
 0x544   :  { %4568 = vmatprep.subr.mxu0 %v5760_v16  ;;  %v4471_v55 = vpop.f32.mrf.mxu1  ;;  %4511 = vmatmul.mubr.f32.gmra.mxu0 %v4468_v18 }
 0x545   :  { %4569 = vmatpush3.msra.mxu0 %v5760_v16 }
 0x546   :  { %4570 = vmatprep.subr.mxu0 %v5764_v17  ;;  %v1385_v4 = vpop.f32.mrf.mxu1 }
 0x547   :  { %4571 = vmatpush3.msra.mxu0 %v5764_v17  ;;  %4513 = vmatprep.mubr.f32.mxu0 %v1385_v4 }
 0x548   :  { %4572 = vmatprep.subr.mxu0 %v6664_v24  ;;  %4514 = vmatmul.mubr.f32.gmra.mxu0 %v4471_v55 }
 0x549   :  { %4573 = vmatpush3.msra.mxu0 %v6664_v24  ;;  %4576 = vmatprep.mubr.msk.f32.mxu0 %vm184_vm0, %v5912_v12 }
 0x54a   :  { %4574 = vmatprep.subr.mxu0 %v6665_v48 }
 0x54b   :  { %4575 = vmatpush3.msra.mxu0 %v6665_v48 }
 0x54c   :  { %4588 = vmatprep.subr.mxu0 %v5837_v7  ;;  %4577 = vmatmul.mubr.msk.f32.vlgmr.msra.gmra.mxu0 %vm184_vm0, %v3871_v6 }
 0x54d   :  { %4589 = vmatpush3.msra.mxu0 %v5837_v7  ;;  %4579 = vmatprep.mubr.msk.f32.mxu0 %vm184_vm0, %v3872_v40 }
 0x54e   :  { %4590 = vmatprep.subr.mxu0 %v5843_v23 }
 0x54f   :  { %4591 = vmatpush3.msra.mxu0 %v5843_v23 }
 0x550   :  { %4592 = vmatprep.subr.mxu0 %v5850_v10  ;;  %4580 = vmatmul.mubr.msk.f32.gmra.mxu0 %vm184_vm0, %v3873_v52 }
 0x551   :  { %4593 = vmatpush3.msra.mxu0 %v5850_v10  ;;  %4582 = vmatprep.mubr.msk.f32.mxu0 %vm184_vm0, %v3874_v22 }
 0x552   :  { %4594 = vmatprep.subr.mxu0 %v5857_v50 }
 0x553   :  { %4595 = vmatpush3.msra.mxu0 %v5857_v50 }
 0x554   :  { %4596 = vmatprep.subr.mxu0 %v5864_v38  ;;  %4583 = vmatmul.mubr.msk.f32.gmra.mxu0 %vm184_vm0, %v3875_v41 }
 0x555   :  { %4597 = vmatpush3.msra.mxu0 %v5864_v38  ;;  %4585 = vmatprep.mubr.msk.f32.mxu0 %vm184_vm0, %v3876_v11 }
 0x556   :  { %4598 = vmatprep.subr.mxu0 %v5869_v45 }
 0x557   :  { %4599 = vmatpush3.msra.mxu0 %v5869_v45 }
 0x558   :  { %4600 = vmatprep.subr.mxu0 %v5874_v25  ;;  %4586 = vmatmul.mubr.msk.f32.gmra.mxu0 %vm184_vm0, %v3877_v62 }
 0x559   :  { %4601 = vmatpush3.msra.mxu0 %v5874_v25  ;;  %4604 = vmatprep.mubr.msk.f32.mxu0 %vm184_vm0, %v5912_v12 }
 0x55a   :  { %4602 = vmatprep.subr.mxu0 %v5879_v26 }
 0x55b   :  { %4603 = vmatpush3.msra.mxu0 %v5879_v26 }
 0x55c   :  { %4660 = vmatprep.subr.mxu0 %v1774_v61  ;;  %4605 = vmatmul.mubr.msk.f32.vlgmr.msra.gmra.mxu0 %vm184_vm0, %v3871_v6 }
 0x55d   :  { %4661 = vmatpush3.msra.mxu0 %v1774_v61  ;;  %4607 = vmatprep.mubr.msk.f32.mxu0 %vm184_vm0, %v3872_v40 }
 0x55e   :  { %4662 = vmatprep.subr.mxu0 %v1773_v21 }
 0x55f   :  { %4663 = vmatpush3.msra.mxu0 %v1773_v21  ;;  %v3897_v21 = vld [vmem:[%s6650_s5 + $0x98] sm:$0xff] }
 0x560   :  { %4664 = vmatprep.subr.mxu0 %v1772_v49  ;;  %4608 = vmatmul.mubr.msk.f32.gmra.mxu0 %vm184_vm0, %v3873_v52 }
 0x561   :  { %4665 = vmatpush3.msra.mxu0 %v1772_v49  ;;  %4610 = vmatprep.mubr.msk.f32.mxu0 %vm184_vm0, %v3874_v22 }
 0x562   :  { %4666 = vmatprep.subr.mxu0 %v1771_v59 }
 0x563   :  { %4667 = vmatpush3.msra.mxu0 %v1771_v59  ;;  %v3900_v59 = vld [vmem:[%s6650_s5 + $0xb0] sm:$0xff] }
 0x564   :  { %4668 = vmatprep.subr.mxu0 %v1770_v14  ;;  %4611 = vmatmul.mubr.msk.f32.gmra.mxu0 %vm184_vm0, %v3875_v41 }
 0x565   :  { %4669 = vmatpush3.msra.mxu0 %v1770_v14  ;;  %4613 = vmatprep.mubr.msk.f32.mxu0 %vm184_vm0, %v3876_v11 }
 0x566   :  { %4670 = vmatprep.subr.mxu0 %v1769_v37 }
 0x567   :  { %4671 = vmatpush3.msra.mxu0 %v1769_v37  ;;  %v2388_v37 = vld [vmem:[#allocation11 + $0x160] sm:$0xff] }
 0x568   :  { %4672 = vmatprep.subr.mxu0 %v1768_v63  ;;  %4614 = vmatmul.mubr.msk.f32.gmra.mxu0 %vm184_vm0, %v3877_v62  ;;  %v3894_v62 = vld [vmem:[%s6650_s5 + $0x80] sm:$0xff] }
 0x569   :  { %4673 = vmatpush3.msra.mxu0 %v1768_v63  ;;  %v2268_v63 = vld [vmem:[#allocation10 + $0x170] sm:$0xff] }
 0x56a   :  { %4674 = vmatprep.subr.mxu0 %v1767_v33 }
 0x56b   :  { %4675 = vmatpush3.msra.mxu0 %v1767_v33  ;;  %v2387_v33 = vld [vmem:[#allocation11 + $0x158] sm:$0xff] }
 0x56c   :  { %4676 = vmatprep.subr.mxu0 %v1766_v29 }
 0x56d   :  { %4677 = vmatpush3.msra.mxu0 %v1766_v29  ;;  %v2267_v29 = vld [vmem:[#allocation10 + $0x168] sm:$0xff] }
 0x56e   :  { %4678 = vmatprep.subr.mxu0 %v1765_v8 }
 0x56f   :  { %4679 = vmatpush3.msra.mxu0 %v1765_v8  ;;  %v2386_v8 = vld [vmem:[#allocation11 + $0x150] sm:$0xff] }
 0x570   :  { %4680 = vmatprep.subr.mxu0 %v1764_v9 }
 0x571   :  { %4681 = vmatpush3.msra.mxu0 %v1764_v9  ;;  %v2266_v9 = vld [vmem:[#allocation10 + $0x160] sm:$0xff] }
 0x572   :  { %4682 = vmatprep.subr.mxu0 %v1763_v2 }
 0x573   :  { %4683 = vmatpush3.msra.mxu0 %v1763_v2  ;;  %v2385_v2 = vld [vmem:[#allocation11 + $0x148] sm:$0xff] }
 0x574   :  { %4684 = vmatprep.subr.mxu0 %v1762_v19 }
 0x575   :  { %4685 = vmatpush3.msra.mxu0 %v1762_v19  ;;  %v2265_v19 = vld [vmem:[#allocation10 + $0x158] sm:$0xff] }
 0x576   :  { %4686 = vmatprep.subr.mxu0 %v1761_v20 }
 0x577   :  { %4687 = vmatpush3.msra.mxu0 %v1761_v20  ;;  %v2384_v20 = vld [vmem:[#allocation11 + $0x140] sm:$0xff] }
 0x578   :  { %4688 = vmatprep.subr.mxu0 %v1760_v27 }
 0x579   :  { %4689 = vmatpush3.msra.mxu0 %v1760_v27  ;;  %v2264_v27 = vld [vmem:[#allocation10 + $0x150] sm:$0xff] }
 0x57a   :  { %4690 = vmatprep.subr.mxu0 %v1759_v28 }
 0x57b   :  { %4691 = vmatpush3.msra.mxu0 %v1759_v28  ;;  %v2383_v28 = vld [vmem:[#allocation11 + $0x138] sm:$0xff] }
 0x57c   :  { %4732 = vmatprep.subr.mxu0 %v5837_v7 }
 0x5fc   :  { %v5976_v58 = vpop.f32.mrf.mxu0 }
 0x5fe   :  { %v5978_v43 = vpop.f32.mrf.mxu0 }
 0x600   :  { %v5980_v39 = vpop.f32.mrf.mxu0 }
 0x602   :  { %v5982_v44 = vpop.f32.mrf.mxu0 }
 0x604   :  { %v5984_v18 = vpop.f32.mrf.mxu0 }
 0x606   :  { %v5986_v54 = vpop.f32.mrf.mxu0 }
 0x608   :  { %v5988_v55 = vpop.f32.mrf.mxu0 }
 0x60a   :  { %v5990_v4 = vpop.f32.mrf.mxu0 }
 0x60c   :  { %v4578_v6 = vpop.f32.mrf.mxu0 }
 0x60e   :  { %v1719_v40 = vpop.f32.mrf.mxu0 }
 0x60f   :  { %4692 = vmatprep.mubr.f32.mxu0 %v1719_v40  ;;  %v4550_v40 = vpop.f32.mrf.mxu1 }
 0x610   :  { %v4581_v52 = vpop.f32.mrf.mxu0  ;;  %4693 = vmatmul.mubr.f32.vlgmr.msra.gmra.mxu0 %v4578_v6  ;;  %v2254_v6 = vld [vmem:[#allocation10 + $0x100] sm:$0xff] }
 0x611   :  { %4733 = vmatpush3.msra.mxu0 %v5837_v7 }
 0x612   :  { %4734 = vmatprep.subr.mxu0 %v5843_v23  ;;  %v1729_v22 = vpop.f32.mrf.mxu0 }
 0x613   :  { %4735 = vmatpush3.msra.mxu0 %v5843_v23  ;;  %4695 = vmatprep.mubr.f32.mxu0 %v1729_v22 }
 0x614   :  { %4736 = vmatprep.subr.mxu0 %v5850_v10  ;;  %v4584_v41 = vpop.f32.mrf.mxu0  ;;  %4696 = vmatmul.mubr.f32.gmra.mxu0 %v4581_v52  ;;  %v1581_v52 = vpop.f32.mrf.mxu1 }
 0x615   :  { %4737 = vmatpush3.msra.mxu0 %v5850_v10 }
 0x616   :  { %4738 = vmatprep.subr.mxu0 %v5857_v50  ;;  %v1739_v11 = vpop.f32.mrf.mxu0  ;;  %v4553_v22 = vpop.f32.mrf.mxu1 }
 0x617   :  { %4739 = vmatpush3.msra.mxu0 %v5857_v50  ;;  %4698 = vmatprep.mubr.f32.mxu0 %v1739_v11  ;;  %v3895_v50 = vld [vmem:[%s6650_s5 + $0x88] sm:$0xff] }
 0x618   :  { %4740 = vmatprep.subr.mxu0 %v5864_v38  ;;  %v4587_v7 = vpop.f32.mrf.mxu0  ;;  %4699 = vmatmul.mubr.f32.gmra.mxu0 %v4584_v41  ;;  %v1591_v41 = vpop.f32.mrf.mxu1 }
 0x619   :  { %4741 = vmatpush3.msra.mxu0 %v5864_v38 }
 0x61a   :  { %4742 = vmatprep.subr.mxu0 %v5869_v45  ;;  %v1749_v23 = vpop.f32.mrf.mxu0 }
 0x61b   :  { %4743 = vmatpush3.msra.mxu0 %v5869_v45  ;;  %4701 = vmatprep.mubr.f32.mxu0 %v1749_v23  ;;  %v3896_v45 = vld [vmem:[%s6650_s5 + $0x90] sm:$0xff] }
 0x61c   :  { %4744 = vmatprep.subr.mxu0 %v5874_v25  ;;  %v4606_v10 = vpop.f32.mrf.mxu0  ;;  %4702 = vmatmul.mubr.f32.gmra.mxu0 %v4587_v7  ;;  %v4556_v7 = vpop.f32.mrf.mxu1 }
 0x61d   :  { %4745 = vmatpush3.msra.mxu0 %v5874_v25  ;;  %4748 = vmatprep.mubr.msk.f32.mxu0 %vm184_vm0, %v3894_v62 }
 0x61e   :  { %4746 = vmatprep.subr.mxu0 %v5879_v26  ;;  %v1841_v38 = vpop.f32.mrf.mxu0 }
 0x61f   :  { %4747 = vmatpush3.msra.mxu0 %v5879_v26  ;;  %4648 = vmatprep.mubr.f32.mxu1 %v1841_v38  ;;  %v3898_v26 = vld [vmem:[%s6650_s5 + $0xa0] sm:$0xff] }
 0x620   :  { %v4609_v61 = vpop.f32.mrf.mxu0  ;;  %4649 = vmatmul.mubr.f32.vlgmr.msra.gmra.mxu1 %v4606_v10  ;;  %4749 = vmatmul.mubr.msk.f32.vlgmr.msra.gmra.mxu0 %vm184_vm0, %v3895_v50  ;;  %v1601_v10 = vpop.f32.mrf.mxu1 }
 0x621   :  { %4705 = vmatpush3.msra.mxu1 %v5742_v13  ;;  %4751 = vmatprep.mubr.msk.f32.mxu0 %vm184_vm0, %v3896_v45 }
 0x622   :  { %v1851_v25 = vpop.f32.mrf.mxu0  ;;  %4706 = vmatprep.subr.mxu1 %v5744_v53 }
 0x623   :  { %4651 = vmatprep.mubr.f32.mxu1 %v1851_v25  ;;  %4707 = vmatpush3.msra.mxu1 %v5744_v53  ;;  %v3899_v53 = vld [vmem:[%s6650_s5 + $0xa8] sm:$0xff] }
 0x624   :  { %v4612_v49 = vpop.f32.mrf.mxu0  ;;  %4652 = vmatmul.mubr.f32.gmra.mxu1 %v4609_v61  ;;  %4708 = vmatprep.subr.mxu1 %v5748_v0 }
 0x625   :  { %4709 = vmatpush3.msra.mxu1 %v5748_v0  ;;  %4752 = vmatmul.mubr.msk.f32.gmra.mxu0 %vm184_vm0, %v3897_v21 }
 0x626   :  { %v1861_v13 = vpop.f32.mrf.mxu0  ;;  %4710 = vmatprep.subr.mxu1 %v5756_v15  ;;  %4754 = vmatprep.mubr.msk.f32.mxu0 %vm184_vm0, %v3898_v26 }
 0x627   :  { %4654 = vmatprep.mubr.f32.mxu1 %v1861_v13  ;;  %4711 = vmatpush3.msra.mxu1 %v5756_v15  ;;  %v3901_v15 = vld [vmem:[%s6650_s5 + $0xb8] sm:$0xff] }
 0x628   :  { %v4615_v14 = vpop.f32.mrf.mxu0  ;;  %4655 = vmatmul.mubr.f32.gmra.mxu1 %v4612_v49  ;;  %4712 = vmatprep.subr.mxu1 %v5760_v16 }
 0x629   :  { %4713 = vmatpush3.msra.mxu1 %v5760_v16  ;;  %4755 = vmatmul.mubr.msk.f32.gmra.mxu0 %vm184_vm0, %v3899_v53  ;;  %v2391_v16 = vld [vmem:[#allocation11 + $0x178] sm:$0xff] }
 0x62a   :  { %v1871_v0 = vpop.f32.mrf.mxu0  ;;  %4714 = vmatprep.subr.mxu1 %v5764_v17  ;;  %4757 = vmatprep.mubr.msk.f32.mxu0 %vm184_vm0, %v3900_v59 }
 0x62b   :  { %4657 = vmatprep.mubr.f32.mxu1 %v1871_v0  ;;  %4715 = vmatpush3.msra.mxu1 %v5764_v17  ;;  %v2390_v17 = vld [vmem:[#allocation11 + $0x170] sm:$0xff] }
 0x62c   :  { %4658 = vmatmul.mubr.f32.gmra.mxu1 %v4615_v14  ;;  %4716 = vmatprep.subr.mxu1 %v6664_v24 }
 0x62d   :  { %4717 = vmatpush3.msra.mxu1 %v6664_v24  ;;  %4720 = vmatprep.mubr.msk.f32.mxu1 %vm184_vm0, %v3894_v62  ;;  %v2389_v24 = vld [vmem:[#allocation11 + $0x168] sm:$0xff] }
 0x62e   :  { %4718 = vmatprep.subr.mxu1 %v6665_v48  ;;  %4758 = vmatmul.mubr.msk.f32.gmra.mxu0 %vm184_vm0, %v3901_v15 }
 0x62f   :  { %4719 = vmatpush3.msra.mxu1 %v6665_v48  ;;  %v2269_v48 = vld [vmem:[#allocation10 + $0x178] sm:$0xff] }
 0x630   :  { %4721 = vmatmul.mubr.msk.f32.vlgmr.msra.gmra.mxu1 %vm184_vm0, %v3895_v50  ;;  %4760 = vmatprep.subr.mxu1 %v2391_v16 }
 0x631   :  { %4723 = vmatprep.mubr.msk.f32.mxu1 %vm184_vm0, %v3896_v45  ;;  %4761 = vmatpush3.msra.mxu1 %v2391_v16  ;;  %v4559_v45 = vpop.f32.mrf.mxu1 }
 0x632   :  { %4762 = vmatprep.subr.mxu1 %v2390_v17  ;;  %4804 = vmatprep.subr.mxu0 %v2269_v48 }
 0x633   :  { %4763 = vmatpush3.msra.mxu1 %v2390_v17  ;;  %4805 = vmatpush3.msra.mxu0 %v2269_v48  ;;  %v1597_v48 = vadd.f32 %v4553_v22, %v5980_v39 }
 0x634   :  { %4724 = vmatmul.mubr.msk.f32.gmra.mxu1 %vm184_vm0, %v3897_v21  ;;  %4764 = vmatprep.subr.mxu1 %v2389_v24  ;;  %v1611_v21 = vpop.f32.mrf.mxu1 }
 0x635   :  { %4726 = vmatprep.mubr.msk.f32.mxu1 %vm184_vm0, %v3898_v26  ;;  %4765 = vmatpush3.msra.mxu1 %v2389_v24 }
 0x636   :  { %4766 = vmatprep.subr.mxu1 %v2388_v37  ;;  %4806 = vmatprep.subr.mxu0 %v2268_v63 }
 0x637   :  { %4767 = vmatpush3.msra.mxu1 %v2388_v37  ;;  %4807 = vmatpush3.msra.mxu0 %v2268_v63 }
 0x638   :  { %4727 = vmatmul.mubr.msk.f32.gmra.mxu1 %vm184_vm0, %v3899_v53  ;;  %4768 = vmatprep.subr.mxu1 %v2387_v33  ;;  %v1587_v53 = vadd.f32 %v4550_v40, %v5976_v58  ;;  %v1592_v58 = vadd.f32 %v1591_v41, %v5982_v44 }
 0x639   :  { %4729 = vmatprep.mubr.msk.f32.mxu1 %vm184_vm0, %v3900_v59  ;;  %4769 = vmatpush3.msra.mxu1 %v2387_v33 }
 0x63a   :  { %4808 = vmatprep.subr.mxu0 %v2267_v29  ;;  %4770 = vmatprep.subr.mxu1 %v2386_v8 }
 0x63b   :  { %4809 = vmatpush3.msra.mxu0 %v2267_v29  ;;  %4771 = vmatpush3.msra.mxu1 %v2386_v8 }
 0x63c   :  { %4730 = vmatmul.mubr.msk.f32.gmra.mxu1 %vm184_vm0, %v3901_v15  ;;  %4810 = vmatprep.subr.mxu0 %v2266_v9  ;;  %v1582_v15 = vadd.f32 %v1581_v52, %v5978_v43 }
 0x63d   :  { %4772 = vmatprep.subr.mxu1 %v2385_v2  ;;  %4811 = vmatpush3.msra.mxu0 %v2266_v9 }
 0x63e   :  { %4773 = vmatpush3.msra.mxu1 %v2385_v2  ;;  %4812 = vmatprep.subr.mxu0 %v2265_v19 }
 0x63f   :  { %4774 = vmatprep.subr.mxu1 %v2384_v20  ;;  %4813 = vmatpush3.msra.mxu0 %v2265_v19  ;;  %v1607_v19 = vadd.f32 %v4556_v7, %v5984_v18 }
 0x640   :  { %4775 = vmatpush3.msra.mxu1 %v2384_v20  ;;  %4814 = vmatprep.subr.mxu0 %v2264_v27 }
 0x641   :  { %4776 = vmatprep.subr.mxu1 %v2383_v28  ;;  %4815 = vmatpush3.msra.mxu0 %v2264_v27 }
 0x642   :  { %4777 = vmatpush3.msra.mxu1 %v2383_v28  ;;  %4816 = vmatprep.subr.mxu0 %v2263_v3 }
 0x643   :  { %4778 = vmatprep.subr.mxu1 %v2382_v30  ;;  %4817 = vmatpush3.msra.mxu0 %v2263_v3  ;;  %v1602_v3 = vadd.f32 %v1601_v10, %v5986_v54  ;;  %v6095_v10 = vld [vmem:[%s6654_s9 + $0x1] ss:$0 sm:$0xff] }
 0x644   :  { %4779 = vmatpush3.msra.mxu1 %v2382_v30  ;;  %4818 = vmatprep.subr.mxu0 %v2262_v31 }
 0x645   :  { %4780 = vmatprep.subr.mxu1 %v2381_v51  ;;  %4819 = vmatpush3.msra.mxu0 %v2262_v31 }
 0x646   :  { %4781 = vmatpush3.msra.mxu1 %v2381_v51  ;;  %4820 = vmatprep.subr.mxu0 %v2261_v34 }
 0x647   :  { %4782 = vmatprep.subr.mxu1 %v2380_v32  ;;  %4821 = vmatpush3.msra.mxu0 %v2261_v34  ;;  %v1617_v34 = vadd.f32 %v4559_v45, %v5988_v55  ;;  %v5107_v55 = vld [vmem:[%s6650_s5] sm:$0xff] }
 0x648   :  { %4783 = vmatpush3.msra.mxu1 %v2380_v32  ;;  %4822 = vmatprep.subr.mxu0 %v2260_v42 }
 0x649   :  { %4784 = vmatprep.subr.mxu1 %v2379_v5  ;;  %4823 = vmatpush3.msra.mxu0 %v2260_v42 }
 0x64a   :  { %4785 = vmatpush3.msra.mxu1 %v2379_v5  ;;  %4824 = vmatprep.subr.mxu0 %v2259_v35 }
 0x64b   :  { %4786 = vmatprep.subr.mxu1 %v2378_v36  ;;  %4825 = vmatpush3.msra.mxu0 %v2259_v35  ;;  %v1612_v35 = vadd.f32 %v1611_v21, %v5990_v4  ;;  %v6098_v21 = vld [vmem:[#allocation16 + $0x8] sm:$0xff] }
 0x64c   :  { %4787 = vmatpush3.msra.mxu1 %v2378_v36  ;;  %4826 = vmatprep.subr.mxu0 %v2258_v56 }
 0x64d   :  { %4788 = vmatprep.subr.mxu1 %v2377_v46  ;;  %4827 = vmatpush3.msra.mxu0 %v2258_v56 }
 0x64e   :  { %4789 = vmatpush3.msra.mxu1 %v2377_v46  ;;  %4828 = vmatprep.subr.mxu0 %v2257_v47 }
 0x64f   :  { %4790 = vmatprep.subr.mxu1 %v2376_v57  ;;  %4829 = vmatpush3.msra.mxu0 %v2257_v47 }
 0x650   :  { %4791 = vmatpush3.msra.mxu1 %v2376_v57  ;;  %4830 = vmatprep.subr.mxu0 %v2256_v60 }
 0x651   :  { %4831 = vmatpush3.msra.mxu0 %v2256_v60 }
 0x652   :  { %4832 = vmatprep.subr.mxu0 %v2255_v1 }
 0x653   :  { %4833 = vmatpush3.msra.mxu0 %v2255_v1 }
 0x654   :  { %4834 = vmatprep.subr.mxu0 %v2254_v6 }
 0x655   :  { %4835 = vmatpush3.msra.mxu0 %v2254_v6 }
 0x6d0   :  { %v4694_v11 = vpop.f32.mrf.mxu0 }
 0x6d2   :  { %v2068_v23 = vpop.f32.mrf.mxu0 }
 0x6d4   :  { %v4697_v62 = vpop.f32.mrf.mxu0 }
 0x6d6   :  { %v2078_v50 = vpop.f32.mrf.mxu0 }
 0x6d8   :  { %v4700_v38 = vpop.f32.mrf.mxu0 }
 0x6da   :  { %v2088_v61 = vpop.f32.mrf.mxu0 }
 0x6dc   :  { %v4703_v25 = vpop.f32.mrf.mxu0 }
 0x6de   :  { %v2098_v26 = vpop.f32.mrf.mxu0 }
 0x6e0   :  { %v4650_v49 = vpop.f32.mrf.mxu1  ;;  %v4750_v13 = vpop.f32.mrf.mxu0 }
 0x6e1   :  { %v2074_v59 = vadd.f32 %v4694_v11, %v4650_v49 }
 0x6e2   :  { %v1963_v14 = vpop.f32.mrf.mxu1  ;;  %v2336_v0 = vpop.f32.mrf.mxu0 }
 0x6e3   :  { %v6064_v16 = vadd.f32 %v2074_v59, %v1587_v53  ;;  %v2069_v17 = vadd.f32 %v2068_v23, %v1963_v14  ;;  %4792 = vmatprep.mubr.f32.mxu1 %v2336_v0  ;;  %v6104_v53 = vld [vmem:[#allocation16] sm:$0xff] }
 0x6e4   :  { %v4653_v24 = vpop.f32.mrf.mxu1  ;;  %4793 = vmatmul.mubr.f32.vlgmr.msra.gmra.mxu1 %v4750_v13 }
 0x6e5   :  { %v6067_v37 = vadd.f32 %v2069_v17, %v1582_v15  ;;  %v2084_v63 = vadd.f32 %v4697_v62, %v4653_v24  ;;  %v4753_v33 = vpop.f32.mrf.mxu0  ;;  %v6112_v24 = vld [vmem:[#allocation16 + $0x48] sm:$0xff] }
 0x6e6   :  { %v1973_v29 = vpop.f32.mrf.mxu1 }
 0x6e7   :  { %v6070_v8 = vadd.f32 %v2084_v63, %v1597_v48  ;;  %v2079_v9 = vadd.f32 %v2078_v50, %v1973_v29  ;;  %v2346_v2 = vpop.f32.mrf.mxu0  ;;  %v6116_v63 = vld [vmem:[#allocation16 + $0x40] sm:$0xff] }
 0x6e8   :  { %v4656_v43 = vpop.f32.mrf.mxu1  ;;  %4795 = vmatprep.mubr.f32.mxu1 %v2346_v2 }
 0x6e9   :  { %v6073_v20 = vadd.f32 %v2079_v9, %v1592_v58  ;;  %v2094_v27 = vadd.f32 %v4700_v38, %v4656_v43  ;;  %v4756_v28 = vpop.f32.mrf.mxu0  ;;  %4796 = vmatmul.mubr.f32.gmra.mxu1 %v4753_v33  ;;  %v6124_v43 = vld [vmem:[#allocation16 + $0x58] sm:$0xff] }
 0x6ea   :  { %v1983_v39 = vpop.f32.mrf.mxu1 }
 0x6eb   :  { %v6076_v30 = vadd.f32 %v2094_v27, %v1607_v19  ;;  %v2089_v31 = vadd.f32 %v2088_v61, %v1983_v39  ;;  %v2356_v44 = vpop.f32.mrf.mxu0  ;;  %v6128_v27 = vld [vmem:[#allocation16 + $0x18] sm:$0xff] }
 0x6ec   :  { %v4659_v51 = vpop.f32.mrf.mxu1  ;;  %4798 = vmatprep.mubr.f32.mxu1 %v2356_v44 }
 0x6ed   :  { %v6079_v32 = vadd.f32 %v2089_v31, %v1602_v3  ;;  %v2104_v42 = vadd.f32 %v4703_v25, %v4659_v51  ;;  %4799 = vmatmul.mubr.f32.gmra.mxu1 %v4756_v28  ;;  %v6136_v51 = vld [vmem:[#allocation16 + $0x50] sm:$0xff] }
 0x6ee   :  { %v1993_v18 = vpop.f32.mrf.mxu1  ;;  %v4759_v5 = vpop.f32.mrf.mxu0 }
 0x6ef   :  { %v6082_v36 = vadd.f32 %v2104_v42, %v1617_v34  ;;  %v2099_v56 = vadd.f32 %v2098_v26, %v1993_v18  ;;  %v6140_v42 = vld [vmem:[#allocation16 + $0x10] sm:$0xff] }
 0x6f0   :  { %v4722_v54 = vpop.f32.mrf.mxu1  ;;  %v2366_v46 = vpop.f32.mrf.mxu0 }
 0x6f1   :  { %v6084_v47 = vadd.f32 %v2099_v56, %v1612_v35  ;;  %4801 = vmatprep.mubr.f32.mxu1 %v2366_v46  ;;  %v6148_v56 = vld [vmem:[#allocation16 + $0x68] sm:$0xff] }
 0x6f2   :  { %v2214_v57 = vpop.f32.mrf.mxu1  ;;  %4802 = vmatmul.mubr.f32.gmra.mxu1 %v4759_v5  ;;  %v6152_v46 = vld [vmem:[#allocation16 + $0x28] sm:$0xff] }
 0x6f3   :  { %4836 = vmatprep.mubr.f32.mxu0 %v2214_v57  ;;  %4864 = vmatprep.mubr.msk.f32.mxu1 %vm184_vm0, %v5107_v55 }
 0x6f4   :  { %v4725_v60 = vpop.f32.mrf.mxu1  ;;  %4837 = vmatmul.mubr.f32.vlgmr.msra.gmra.mxu0 %v4722_v54 }
 0x6f6   :  { %v2224_v4 = vpop.f32.mrf.mxu1 }
 0x6f7   :  { %4839 = vmatprep.mubr.f32.mxu0 %v2224_v4  ;;  %v6160_v4 = vld [vmem:[#allocation16 + $0x60] sm:$0xff] }
 0x6f8   :  { %v4728_v1 = vpop.f32.mrf.mxu1  ;;  %4840 = vmatmul.mubr.f32.gmra.mxu0 %v4725_v60 }
 0x6fa   :  { %v2234_v6 = vpop.f32.mrf.mxu1 }
 0x6fb   :  { %4842 = vmatprep.mubr.f32.mxu0 %v2234_v6  ;;  %v6164_v6 = vld [vmem:[#allocation16 + $0x20] sm:$0xff] }
 0x6fc   :  { %v4731_v40 = vpop.f32.mrf.mxu1  ;;  %4843 = vmatmul.mubr.f32.gmra.mxu0 %v4728_v1 }
 0x6fe   :  { %v2244_v52 = vpop.f32.mrf.mxu1 }
 0x6ff   :  { %4845 = vmatprep.mubr.f32.mxu0 %v2244_v52 }
 0x700   :  { %4846 = vmatmul.mubr.f32.gmra.mxu0 %v4731_v40 }
 0x701   :  { %4892 = vmatprep.mubr.msk.f32.mxu0 %vm184_vm0, %v5912_v12 }
 0x7a4   :  { %v4794_v22 = vpop.f32.mrf.mxu1 }
 0x7a6   :  { %v2458_v41 = vpop.f32.mrf.mxu1 }
 0x7a9   :  { %v4797_v11 = vpop.f32.mrf.mxu1 }
 0x7ab   :  { %v2468_v23 = vpop.f32.mrf.mxu1 }
 0x7ad   :  { %v4800_v25 = vpop.f32.mrf.mxu1 }
 0x7af   :  { %v2478_v17 = vpop.f32.mrf.mxu1 }
 0x7b2   :  { %v4803_v9 = vpop.f32.mrf.mxu1 }
 0x7b4   :  { %v4838_v7 = vpop.f32.mrf.mxu0  ;;  %v2488_v31 = vpop.f32.mrf.mxu1 }
 0x7b5   :  { %v2569_v62 = vadd.f32 %v4838_v7, %v4794_v22  ;;  %v6172_v22 = vld [vmem:[#allocation16 + $0x70] sm:$0xff] }
 0x7b6   :  { %v2563_v50 = vpop.f32.mrf.mxu0 }
 0x7b7   :  { %v2603_v38 = vadd.f32 %v2569_v62, %v6064_v16  ;;  %v2564_v45 = vadd.f32 %v2563_v50, %v2458_v41  ;;  %v6187_v50 = vld [vmem:[#allocation16 + $0x38] sm:$0xff] }
 0x7b8   :  { %v4841_v61 = vpop.f32.mrf.mxu0 }
 0x7b9   :  { %v6101_v12 = vadd.f32 %v6095_v10, %v2603_v38  ;;  %v2602_v26 = vadd.f32 %v2564_v45, %v6067_v37  ;;  %v2579_v49 = vadd.f32 %v4841_v61, %v4797_v11  ;;  %v6176_v11 = vld [vmem:[#allocation16 + $0x30] sm:$0xff] }
 0x7ba   :  { %v2573_v13 = vpop.f32.mrf.mxu0 }
 0x7bb   :  { %v6107_v59 = vadd.f32 %v6095_v10, %v2602_v26  ;;  %v2605_v14 = vadd.f32 %v2579_v49, %v6070_v8  ;;  %v2574_v0 = vadd.f32 %v2573_v13, %v2468_v23  ;;  %v2624_v15 = vmul.f32 %v6101_v12, %v6098_v21  ;;  %v6183_v23 = vld [vmem:[#allocation16 + $0x78] sm:$0xff] }
 0x7bc   :  { %v4844_v16 = vpop.f32.mrf.mxu0  ;;  %v2670_v8 = vmul.f32 %v6101_v12, %v6112_v24 }
 0x7bd   :  { %2633 = vadd.xlane.f32.xlu1 %v2624_v15  ;;  %v2623_v48 = vmul.f32 %v6107_v59, %v6104_v53  ;;  %v6119_v33 = vadd.f32 %v6095_v10, %v2605_v14  ;;  %v2604_v29 = vadd.f32 %v2574_v0, %v6073_v20  ;;  %v2589_v58 = vadd.f32 %v4844_v16, %v4800_v25 }
 0x7be   :  { %v2583_v37 = vpop.f32.mrf.mxu0  ;;  %v2669_v19 = vmul.f32 %v6107_v59, %v6116_v63 }
 0x7bf   :  { %2631 = vadd.xlane.f32.xlu0 %v2623_v48  ;;  %v6131_v28 = vadd.f32 %v6095_v10, %v2604_v29  ;;  %v2607_v20 = vadd.f32 %v2589_v58, %v6076_v30  ;;  %v2584_v39 = vadd.f32 %v2583_v37, %v2478_v17  ;;  %v2672_v3 = vmul.f32 %v6119_v33, %v6124_v43 }
 0x7c0   :  { %v4847_v2 = vpop.f32.mrf.mxu0  ;;  %v2626_v34 = vmul.f32 %v6119_v33, %v6128_v27 }
 0x7c1   :  { %2679 = vadd.xlane.f32.xlu1 %v2670_v8  ;;  %v6143_v18 = vadd.f32 %v6095_v10, %v2607_v20  ;;  %v2606_v30 = vadd.f32 %v2584_v39, %v6079_v32  ;;  %v2671_v35 = vmul.f32 %v6131_v28, %v6136_v51  ;;  %v2625_v54 = vmul.f32 %v6131_v28, %v6140_v42 }
 0x7c2   :  { %v2593_v44 = vpop.f32.mrf.mxu0  ;;  %v2599_v55 = vadd.f32 %v4847_v2, %v4803_v9 }
 0x7c3   :  { %2677 = vadd.xlane.f32.xlu0 %v2669_v19  ;;  %v2594_v5 = vadd.f32 %v2593_v44, %v2488_v31  ;;  %v6155_v57 = vadd.f32 %v6095_v10, %v2606_v30  ;;  %v2674_v32 = vmul.f32 %v6143_v18, %v6148_v56  ;;  %v2628_v1 = vmul.f32 %v6143_v18, %v6152_v46 }
 0x7c4   :  { %v2609_v40 = vadd.f32 %v2599_v55, %v6082_v36 }
 0x7c5   :  { %2683 = vadd.xlane.f32.xlu1 %v2672_v3  ;;  %v2608_v60 = vadd.f32 %v2594_v5, %v6084_v47  ;;  %v2673_v47 = vmul.f32 %v6155_v57, %v6160_v4  ;;  %v2627_v41 = vmul.f32 %v6155_v57, %v6164_v6 }
 0x7c6   :  { %v6179_v7 = vadd.f32 %v6095_v10, %v2609_v40 }
 0x7c7   :  { %2637 = vadd.xlane.f32.xlu0 %v2626_v34  ;;  %v6168_v52 = vadd.f32 %v6095_v10, %v2608_v60 }
 0x7c8   :  { %v2676_v38 = vmul.f32 %v6179_v7, %v6183_v23  ;;  %v2630_v10 = vmul.f32 %v6179_v7, %v6187_v50 }
 0x7c9   :  { %2681 = vadd.xlane.f32.xlu1 %v2671_v35  ;;  %v2675_v36 = vmul.f32 %v6168_v52, %v6172_v22  ;;  %v2629_v62 = vmul.f32 %v6168_v52, %v6176_v11 }
 0x7cb   :  { %2635 = vadd.xlane.f32.xlu0 %v2625_v54 }
 0x7cd   :  { %2687 = vadd.xlane.f32.xlu1 %v2674_v32 }
 0x7cf   :  { %2641 = vadd.xlane.f32.xlu0 %v2628_v1 }
 0x7d1   :  { %2685 = vadd.xlane.f32.xlu1 %v2673_v47 }
 0x7d3   :  { %2639 = vadd.xlane.f32.xlu0 %v2627_v41 }
 0x7d5   :  { %2689 = vadd.xlane.f32.xlu1 %v2675_v36 }
 0x7d7   :  { %2643 = vadd.xlane.f32.xlu0 %v2629_v62 }
 0x7d9   :  { %2691 = vadd.xlane.f32.xlu1 %v2676_v38 }
 0x7db   :  { %2645 = vadd.xlane.f32.xlu0 %v2630_v10 }
 0x846   :  { %v2634_v45 = vpop.xlane.xlu1 %2633 }
 0x848   :  { %v2632_v61 = vpop.xlane.xlu0 %2631 }
 0x849   :  { %v2647_v16 = vadd.f32 %v2634_v45, %v2632_v61 }
 0x84a   :  { %v2680_v25 = vpop.xlane.xlu1 %2679 }
 0x84c   :  { %v2678_v26 = vpop.xlane.xlu0 %2677 }
 0x84d   :  { %v2693_v0 = vadd.f32 %v2680_v25, %v2678_v26 }
 0x84e   :  { %v2684_v49 = vpop.xlane.xlu1 %2683 }
 0x850   :  { %v2638_v13 = vpop.xlane.xlu0 %2637 }
 0x852   :  { %v2682_v14 = vpop.xlane.xlu1 %2681 }
 0x853   :  { %v2694_v17 = vadd.f32 %v2693_v0, %v2682_v14 }
 0x854   :  { %v2636_v15 = vpop.xlane.xlu0 %2635 }
 0x855   :  { %v2648_v37 = vadd.f32 %v2647_v16, %v2636_v15  ;;  %v2695_v58 = vadd.f32 %v2694_v17, %v2684_v49 }
 0x856   :  { %v2688_v48 = vpop.xlane.xlu1 %2687 }
 0x857   :  { %v2649_v2 = vadd.f32 %v2648_v37, %v2638_v13 }
 0x858   :  { %v2642_v29 = vpop.xlane.xlu0 %2641 }
 0x85a   :  { %v2686_v8 = vpop.xlane.xlu1 %2685 }
 0x85b   :  { %v2696_v9 = vadd.f32 %v2695_v58, %v2686_v8 }
 0x85c   :  { %v2640_v19 = vpop.xlane.xlu0 %2639 }
 0x85d   :  { %v2650_v20 = vadd.f32 %v2649_v2, %v2640_v19  ;;  %v2697_v39 = vadd.f32 %v2696_v9, %v2688_v48 }
 0x85e   :  { %v2690_v3 = vpop.xlane.xlu1 %2689 }
 0x85f   :  { %v2651_v31 = vadd.f32 %v2650_v20, %v2642_v29  ;;  %v2698_v34 = vadd.f32 %v2697_v39, %v2690_v3 }
 0x860   :  { %v2644_v44 = vpop.xlane.xlu0 %2643 }
 0x861   :  { %v2652_v5 = vadd.f32 %v2651_v31, %v2644_v44 }
 0x862   :  { %v2692_v30 = vpop.xlane.xlu1 %2691 }
 0x863   :  { %v2699_v35 = vadd.f32 %v2698_v34, %v2692_v30 }
 0x864   :  { %v2646_v54 = vpop.xlane.xlu0 %2645 }
 0x865   :  { %v2700_v55 = vrot.slane %v2699_v35, 4  ;;  %v2653_v60 = vadd.f32 %v2652_v5, %v2646_v54 }
 0x867   :  { %v2701_v32 = vadd.f32 %v2700_v55, %v2699_v35  ;;  %v2654_v1 = vrot.slane %v2653_v60, 4 }
 0x869   :  { %v2702_v40 = vrot.slane %v2701_v32, 2  ;;  %v2655_v47 = vadd.f32 %v2654_v1, %v2653_v60 }
 0x86b   :  { %v2703_v41 = vadd.f32 %v2702_v40, %v2701_v32  ;;  %v2656_v36 = vrot.slane %v2655_v47, 2 }
 0x86d   :  { %v2704_v62 = vrot.slane %v2703_v41, 1  ;;  %v2657_v38 = vadd.f32 %v2656_v36, %v2655_v47 }
 0x86f   :  { %v2705_v10 = vadd.f32 %v2704_v62, %v2703_v41  ;;  %v2658_v45 = vrot.slane %v2657_v38, 1 }
 0x871   :  { %v2706_v61 = vmul.f32 0.00048828125, %v2705_v10  ;;  %v2659_v25 = vadd.f32 %v2658_v45, %v2657_v38 }
 0x873   :  { %v2660_v26 = vmul.f32 0.00048828125, %v2659_v25  ;;  %v2708_v49 = vmul.f32 %v2706_v61, %v6112_v24  ;;  %v2707_v0 = vmul.f32 %v2706_v61, %v6116_v63  ;;  %v2709_v48 = vmul.f32 %v2706_v61, %v6136_v51 }
 0x874   :  { %v2710_v19 = vmul.f32 %v2706_v61, %v6124_v43  ;;  %v2711_v31 = vmul.f32 %v2706_v61, %v6160_v4 }
 0x875   :  { %v2662_v13 = vmul.f32 %v2660_v26, %v6098_v21  ;;  %v2661_v14 = vmul.f32 %v2660_v26, %v6104_v53  ;;  %v2663_v15 = vmul.f32 %v2660_v26, %v6140_v42  ;;  %v2664_v8 = vmul.f32 %v2660_v26, %v6128_v27 }
 0x876   :  { %v2665_v20 = vmul.f32 %v2660_v26, %v6164_v6  ;;  %v2666_v34 = vmul.f32 %v2660_v26, %v6152_v46  ;;  %v2667_v60 = vmul.f32 %v2660_v26, %v6176_v11  ;;  %v2668_v36 = vmul.f32 %v2660_v26, %v6187_v50 }
 0x877   :  { %v2716_v16 = vadd.f32 %v2708_v49, %v2662_v13  ;;  %v2715_v17 = vadd.f32 %v2707_v0, %v2661_v14  ;;  %v2717_v58 = vadd.f32 %v2709_v48, %v2663_v15  ;;  %v2718_v3 = vadd.f32 %v2710_v19, %v2664_v8 }
 0x878   :  { %v2719_v44 = vadd.f32 %v2711_v31, %v2665_v20 }
 0x879   :  { %v6200_v37 = vsub.f32 %v6101_v12, %v2716_v16  ;;  %v6203_v29 = vsub.f32 %v6107_v59, %v2715_v17  ;;  %v6215_v59 = vsub.f32 %v6131_v28, %v2717_v58  ;;  %v6224_v54 = vsub.f32 %v6119_v33, %v2718_v3 }
 0x87a   :  { %v2712_v28 = vmul.f32 %v2706_v61, %v6148_v56  ;;  %v6233_v47 = vsub.f32 %v6155_v57, %v2719_v44  ;;  %v2713_v33 = vmul.f32 %v2706_v61, %v6172_v22  ;;  %v2714_v57 = vmul.f32 %v2706_v61, %v6183_v23 }
 0x87b   :  { %v2732_v9 = vmul.f32 %v6200_v37, %v6200_v37  ;;  %v2731_v2 = vmul.f32 %v6203_v29, %v6203_v29  ;;  %v2733_v35 = vmul.f32 %v6215_v59, %v6215_v59  ;;  %v2734_v40 = vmul.f32 %v6224_v54, %v6224_v54 }
 0x87c   :  { %v2720_v55 = vadd.f32 %v2712_v28, %v2666_v34  ;;  %v2721_v41 = vadd.f32 %v2713_v33, %v2667_v60  ;;  %v2735_v10 = vmul.f32 %v6233_v47, %v6233_v47  ;;  %v2722_v14 = vadd.f32 %v2714_v57, %v2668_v36 }
 0x87d   :  { %v2740_v39 = vmul.f32 %v2732_v9, %v6098_v21  ;;  %v2739_v12 = vmul.f32 %v2731_v2, %v6104_v53  ;;  %v2788_v30 = vmul.f32 %v2732_v9, %v6112_v24  ;;  %v2787_v5 = vmul.f32 %v2731_v2, %v6116_v63 }
 0x87e   :  { %v2789_v32 = vmul.f32 %v2733_v35, %v6136_v51  ;;  %v2741_v1 = vmul.f32 %v2733_v35, %v6140_v42  ;;  %v2790_v62 = vmul.f32 %v2734_v40, %v6124_v43  ;;  %v2742_v38 = vmul.f32 %v2734_v40, %v6128_v27 }
 0x87f   :  { %2749 = vadd.xlane.f32.xlu1 %v2740_v39  ;;  %2747 = vadd.xlane.f32.xlu0 %v2739_v12  ;;  %v6242_v45 = vsub.f32 %v6143_v18, %v2720_v55  ;;  %v6246_v25 = vsub.f32 %v6168_v52, %v2721_v41  ;;  %v2791_v49 = vmul.f32 %v2735_v10, %v6160_v4 }
 0x880   :  { %v2743_v26 = vmul.f32 %v2735_v10, %v6164_v6  ;;  %v6257_v52 = vsub.f32 %v6179_v7, %v2722_v14 }
 0x881   :  { %v2736_v13 = vmul.f32 %v6242_v45, %v6242_v45  ;;  %v2737_v61 = vmul.f32 %v6246_v25, %v6246_v25 }
 0x882   :  { %v2738_v17 = vmul.f32 %v6257_v52, %v6257_v52 }
 0x883   :  { %2797 = vadd.xlane.f32.xlu1 %v2788_v30  ;;  %2795 = vadd.xlane.f32.xlu0 %v2787_v5  ;;  %v2792_v18 = vmul.f32 %v2736_v13, %v6148_v56  ;;  %v2744_v0 = vmul.f32 %v2736_v13, %v6152_v46  ;;  %v2793_v15 = vmul.f32 %v2737_v61, %v6172_v22 }
 0x884   :  { %v2745_v16 = vmul.f32 %v2737_v61, %v6176_v11  ;;  %v2794_v48 = vmul.f32 %v2738_v17, %v6183_v23  ;;  %v2746_v58 = vmul.f32 %v2738_v17, %v6187_v50 }
 0x887   :  { %2799 = vadd.xlane.f32.xlu1 %v2789_v32  ;;  %2751 = vadd.xlane.f32.xlu0 %v2741_v1 }
 0x88b   :  { %2801 = vadd.xlane.f32.xlu1 %v2790_v62  ;;  %2753 = vadd.xlane.f32.xlu0 %v2742_v38 }
 0x88f   :  { %2803 = vadd.xlane.f32.xlu1 %v2791_v49  ;;  %2755 = vadd.xlane.f32.xlu0 %v2743_v26 }
 0x893   :  { %2805 = vadd.xlane.f32.xlu1 %v2792_v18  ;;  %2757 = vadd.xlane.f32.xlu0 %v2744_v0 }
 0x897   :  { %2807 = vadd.xlane.f32.xlu1 %v2793_v15  ;;  %2759 = vadd.xlane.f32.xlu0 %v2745_v16 }
 0x89b   :  { %2809 = vadd.xlane.f32.xlu1 %v2794_v48  ;;  %2761 = vadd.xlane.f32.xlu0 %v2746_v58 }
 0x908   :  { %v2750_v8 = vpop.xlane.xlu1 %2749  ;;  %v2748_v7 = vpop.xlane.xlu0 %2747 }
 0x909   :  { %v2763_v44 = vadd.f32 %v2750_v8, %v2748_v7 }
 0x90c   :  { %v2798_v9 = vpop.xlane.xlu1 %2797  ;;  %v2796_v2 = vpop.xlane.xlu0 %2795 }
 0x90d   :  { %v2811_v34 = vadd.f32 %v2798_v9, %v2796_v2 }
 0x910   :  { %v2800_v19 = vpop.xlane.xlu1 %2799  ;;  %v2752_v20 = vpop.xlane.xlu0 %2751 }
 0x911   :  { %v2812_v30 = vadd.f32 %v2811_v34, %v2800_v19  ;;  %v2764_v5 = vadd.f32 %v2763_v44, %v2752_v20 }
 0x914   :  { %v2802_v39 = vpop.xlane.xlu1 %2801  ;;  %v2754_v12 = vpop.xlane.xlu0 %2753 }
 0x915   :  { %v2813_v55 = vadd.f32 %v2812_v30, %v2802_v39  ;;  %v2765_v60 = vadd.f32 %v2764_v5, %v2754_v12 }
 0x918   :  { %v2804_v3 = vpop.xlane.xlu1 %2803  ;;  %v2756_v31 = vpop.xlane.xlu0 %2755 }
 0x919   :  { %v2814_v32 = vadd.f32 %v2813_v55, %v2804_v3  ;;  %v2766_v1 = vadd.f32 %v2765_v60, %v2756_v31 }
 0x91c   :  { %v2806_v35 = vpop.xlane.xlu1 %2805  ;;  %v2758_v28 = vpop.xlane.xlu0 %2757 }
 0x91d   :  { %v2815_v41 = vadd.f32 %v2814_v32, %v2806_v35  ;;  %v2767_v36 = vadd.f32 %v2766_v1, %v2758_v28 }
 0x920   :  { %v2808_v40 = vpop.xlane.xlu1 %2807  ;;  %v2760_v33 = vpop.xlane.xlu0 %2759 }
 0x921   :  { %v2816_v62 = vadd.f32 %v2815_v41, %v2808_v40  ;;  %v2768_v38 = vadd.f32 %v2767_v36, %v2760_v33 }
 0x924   :  { %v2810_v10 = vpop.xlane.xlu1 %2809  ;;  %v2762_v57 = vpop.xlane.xlu0 %2761 }
 0x925   :  { %v2817_v49 = vadd.f32 %v2816_v62, %v2810_v10  ;;  %v2769_v26 = vadd.f32 %v2768_v38, %v2762_v57  ;;  %v5108_v38 = vld [vmem:[%s6650_s5 + $0x8] sm:$0xff]  ;;  %v3100_v57 = vld [vmem:[#allocation13 + $0xf0] sm:$0xff] }
 0x926   :  { %v5109_v10 = vld [vmem:[%s6650_s5 + $0x48] sm:$0xff] }
 0x927   :  { %v2818_v13 = vrot.slane %v2817_v49, 4  ;;  %v2770_v14 = vrot.slane %v2769_v26, 4 }
 0x929   :  { %v2819_v18 = vadd.f32 %v2818_v13, %v2817_v49  ;;  %v2771_v0 = vadd.f32 %v2770_v14, %v2769_v26  ;;  %v2979_v49 = vld [vmem:[#allocation13 + $0x78] sm:$0xff]  ;;  %v5110_v26 = vld [vmem:[%s6650_s5 + $0x10] sm:$0xff]  ;;  %v3099_v14 = vld [vmem:[#allocation13 + $0xe8] sm:$0xff] }
 0x92a   :  { %v5111_v13 = vld [vmem:[%s6650_s5 + $0x50] sm:$0xff] }
 0x92b   :  { %v2820_v61 = vrot.slane %v2819_v18, 2  ;;  %v2772_v15 = vrot.slane %v2771_v0, 2 }
 0x92d   :  { %v2821_v16 = vadd.f32 %v2820_v61, %v2819_v18  ;;  %v2773_v17 = vadd.f32 %v2772_v15, %v2771_v0  ;;  %v5112_v18 = vld [vmem:[%s6650_s5 + $0x58] sm:$0xff]  ;;  %v3098_v0 = vld [vmem:[#allocation13 + $0xe0] sm:$0xff] }
 0x92e   :  { %v5113_v61 = vld [vmem:[%s6650_s5 + $0x18] sm:$0xff]  ;;  %v5114_v15 = vld [vmem:[%s6650_s5 + $0x20] sm:$0xff] }
 0x92f   :  { %v2822_v48 = vrot.slane %v2821_v16, 1  ;;  %v2774_v58 = vrot.slane %v2773_v17, 1 }
 0x931   :  { %v2823_v8 = vadd.f32 %v2822_v48, %v2821_v16  ;;  %v2775_v7 = vadd.f32 %v2774_v58, %v2773_v17  ;;  %v3097_v16 = vld [vmem:[#allocation13 + $0xd8] sm:$0xff]  ;;  %v5115_v17 = vld [vmem:[%s6650_s5 + $0x60] sm:$0xff]  ;;  %v5116_v48 = vld [vmem:[%s6650_s5 + $0x68] sm:$0xff] }
 0x932   :  { %v3096_v58 = vld [vmem:[#allocation13 + $0xd0] sm:$0xff] }
 0x933   :  { %v2824_v9 = vmul.f32 0.00048828125, %v2823_v8  ;;  %v2776_v2 = vmul.f32 0.00048828125, %v2775_v7  ;;  %v5117_v8 = vld [vmem:[%s6650_s5 + $0x28] sm:$0xff]  ;;  %v5118_v7 = vld [vmem:[%s6650_s5 + $0x30] sm:$0xff] }
 0x935   :  { %v2825_v19 = vadd.f32 1e-05, %v2824_v9  ;;  %v2777_v20 = vadd.f32 1e-05, %v2776_v2  ;;  %v3095_v9 = vld [vmem:[#allocation13 + $0xc8] sm:$0xff]  ;;  %v5119_v2 = vld [vmem:[%s6650_s5 + $0x70] sm:$0xff] }
 0x937   :  { %5099 = vrsqrt.f32 %v2825_v19  ;;  %v5120_v19 = vld [vmem:[%s6650_s5 + $0x78] sm:$0xff] }
 0x938   :  { %5101 = vrsqrt.f32 %v2777_v20  ;;  %v3094_v20 = vld [vmem:[#allocation13 + $0xc0] sm:$0xff] }
 0x944   :  { %v5100_v39 = vpop.eup %5099 }
 0x945   :  { %v5102_v12 = vpop.eup %5101  ;;  %v2834_v3 = vmul.f32 %v5100_v39, %v6183_v23  ;;  %v2833_v31 = vmul.f32 %v5100_v39, %v6172_v22  ;;  %v2832_v44 = vmul.f32 %v5100_v39, %v6148_v56  ;;  %v2831_v34 = vmul.f32 %v5100_v39, %v6160_v4 }
 0x946   :  { %v2786_v30 = vmul.f32 %v5102_v12, %v6187_v50  ;;  %v2785_v5 = vmul.f32 %v5102_v12, %v6176_v11  ;;  %v2784_v35 = vmul.f32 %v5102_v12, %v6152_v46  ;;  %v2783_v28 = vmul.f32 %v5102_v12, %v6164_v6 }
 0x947   :  { %v2782_v55 = vmul.f32 %v5102_v12, %v6128_v27  ;;  %v2830_v60 = vmul.f32 %v5100_v39, %v6124_v43  ;;  %v2781_v22 = vmul.f32 %v5102_v12, %v6140_v42  ;;  %v2829_v56 = vmul.f32 %v5100_v39, %v6136_v51 }
 0x948   :  { %v2842_v32 = vadd.f32 %v2834_v3, %v2786_v30  ;;  %v2841_v23 = vadd.f32 %v2833_v31, %v2785_v5  ;;  %v2840_v1 = vadd.f32 %v2832_v44, %v2784_v35  ;;  %v2839_v11 = vadd.f32 %v2831_v34, %v2783_v28  ;;  %v3093_v3 = vld [vmem:[#allocation13 + $0xb8] sm:$0xff]  ;;  %v2977_v31 = vld [vmem:[#allocation13 + $0x68] sm:$0xff]  ;;  %v3092_v44 = vld [vmem:[#allocation13 + $0xb0] sm:$0xff] }
 0x949   :  { %v2838_v40 = vadd.f32 %v2830_v60, %v2782_v55  ;;  %v2780_v27 = vmul.f32 %v5102_v12, %v6098_v21  ;;  %v2828_v43 = vmul.f32 %v5100_v39, %v6112_v24  ;;  %v2837_v33 = vadd.f32 %v2829_v56, %v2781_v22  ;;  %v2976_v34 = vld [vmem:[#allocation13 + $0x60] sm:$0xff]  ;;  %v3091_v30 = vld [vmem:[#allocation13 + $0xa8] sm:$0xff]  ;;  %v2975_v5 = vld [vmem:[#allocation13 + $0x58] sm:$0xff] }
 0x94a   :  { %v2850_v4 = vmul.f32 %v2842_v32, %v6257_v52  ;;  %v2849_v50 = vmul.f32 %v2841_v23, %v6246_v25  ;;  %v2848_v6 = vmul.f32 %v2840_v1, %v6242_v45  ;;  %v2847_v42 = vmul.f32 %v2839_v11, %v6233_v47  ;;  %v3090_v35 = vld [vmem:[#allocation13 + $0xa0] sm:$0xff]  ;;  %v2974_v28 = vld [vmem:[#allocation13 + $0x50] sm:$0xff]  ;;  %v3089_v55 = vld [vmem:[#allocation13 + $0x98] sm:$0xff] }
 0x94b   :  { %v2779_v25 = vmul.f32 %v5102_v12, %v6104_v53  ;;  %v2827_v52 = vmul.f32 %v5100_v39, %v6116_v63  ;;  %v2846_v24 = vmul.f32 %v2838_v40, %v6224_v54  ;;  %v2836_v45 = vadd.f32 %v2828_v43, %v2780_v27  ;;  %v2978_v39 = vld [vmem:[#allocation13 + $0x70] sm:$0xff]  ;;  %v5121_v12 = vld [vmem:[%s6650_s5 + $0x38] sm:$0xff]  ;;  %v2973_v60 = vld [vmem:[#allocation13 + $0x48] sm:$0xff] }
 0x94c   :  { %v6279_v46 = vmax.f32 %v2850_v4, 0.0  ;;  %v6286_v51 = vmax.f32 %v2849_v50, 0.0  ;;  %v6295_v21 = vmax.f32 %v2848_v6, 0.0  ;;  %v6302_v53 = vmax.f32 %v2847_v42, 0.0  ;;  %v3088_v32 = vld [vmem:[#allocation13 + $0x90] sm:$0xff]  ;;  %v2972_v23 = vld [vmem:[#allocation13 + $0x40] sm:$0xff] }
 0x94d   :  { %v2845_v63 = vmul.f32 %v2837_v33, %v6215_v59  ;;  %v2835_v47 = vadd.f32 %v2827_v52, %v2779_v25  ;;  %v6309_v54 = vmax.f32 %v2846_v24, 0.0  ;;  %v2844_v41 = vmul.f32 %v2836_v45, %v6200_v37  ;;  %v3087_v1 = vld [vmem:[#allocation13 + $0x88] sm:$0xff]  ;;  %v2971_v22 = vld [vmem:[#allocation13 + $0x38] sm:$0xff]  ;;  %v3086_v56 = vld [vmem:[#allocation13 + $0x80] sm:$0xff] }
 0x94e   :  { %4848 = vmatprep.subr.mxu1 %v6279_v46  ;;  %4876 = vmatprep.subr.mxu0 %v6279_v46  ;;  %v2970_v4 = vld [vmem:[#allocation13 + $0x30] sm:$0xff]  ;;  %v2969_v50 = vld [vmem:[#allocation13 + $0x28] sm:$0xff]  ;;  %v2968_v11 = vld [vmem:[#allocation13 + $0x20] sm:$0xff] }
 0x94f   :  { %4849 = vmatpush3.msra.mxu1 %v6279_v46  ;;  %4877 = vmatpush3.msra.mxu0 %v6279_v46  ;;  %v6316_v59 = vmax.f32 %v2845_v63, 0.0  ;;  %v2843_v36 = vmul.f32 %v2835_v47, %v6203_v29  ;;  %v6323_v37 = vmax.f32 %v2844_v41, 0.0  ;;  %v3101_v29 = vld [vmem:[#allocation13 + $0xf8] sm:$0xff]  ;;  %v2966_v6 = vld [vmem:[#allocation13 + $0x10] sm:$0xff]  ;;  %v2965_v27 = vld [vmem:[#allocation13 + $0x8] sm:$0xff] }
 0x950   :  { %4850 = vmatprep.subr.mxu1 %v6286_v51  ;;  %4878 = vmatprep.subr.mxu0 %v6286_v51  ;;  %v2967_v40 = vld [vmem:[#allocation13 + $0x18] sm:$0xff]  ;;  %v2964_v43 = vld [vmem:[#allocation13] sm:$0xff]  ;;  %v3432_v45 = vld [vmem:[#allocation13 + $0x170] sm:$0xff] }
 0x951   :  { %4851 = vmatpush3.msra.mxu1 %v6286_v51  ;;  %4879 = vmatpush3.msra.mxu0 %v6286_v51  ;;  %v6329_v62 = vmax.f32 %v2843_v36, 0.0  ;;  %v3433_v33 = vld [vmem:[#allocation13 + $0x178] sm:$0xff] }
 0x952   :  { %4852 = vmatprep.subr.mxu1 %v6295_v21  ;;  %4880 = vmatprep.subr.mxu0 %v6295_v21 }
 0x953   :  { %4853 = vmatpush3.msra.mxu1 %v6295_v21  ;;  %4881 = vmatpush3.msra.mxu0 %v6295_v21 }
 0x954   :  { %4854 = vmatprep.subr.mxu1 %v6302_v53  ;;  %4882 = vmatprep.subr.mxu0 %v6302_v53 }
 0x955   :  { %4855 = vmatpush3.msra.mxu1 %v6302_v53  ;;  %4883 = vmatpush3.msra.mxu0 %v6302_v53 }
 0x956   :  { %4856 = vmatprep.subr.mxu1 %v6309_v54  ;;  %4884 = vmatprep.subr.mxu0 %v6309_v54 }
 0x957   :  { %4857 = vmatpush3.msra.mxu1 %v6309_v54  ;;  %4885 = vmatpush3.msra.mxu0 %v6309_v54 }
 0x958   :  { %4858 = vmatprep.subr.mxu1 %v6316_v59  ;;  %4886 = vmatprep.subr.mxu0 %v6316_v59 }
 0x959   :  { %4859 = vmatpush3.msra.mxu1 %v6316_v59  ;;  %4887 = vmatpush3.msra.mxu0 %v6316_v59 }
 0x95a   :  { %4860 = vmatprep.subr.mxu1 %v6323_v37  ;;  %4888 = vmatprep.subr.mxu0 %v6323_v37 }
 0x95b   :  { %4861 = vmatpush3.msra.mxu1 %v6323_v37  ;;  %4889 = vmatpush3.msra.mxu0 %v6323_v37 }
 0x95c   :  { %4862 = vmatprep.subr.mxu1 %v6329_v62  ;;  %4890 = vmatprep.subr.mxu0 %v6329_v62 }
 0x95d   :  { %4863 = vmatpush3.msra.mxu1 %v6329_v62  ;;  %4891 = vmatpush3.msra.mxu0 %v6329_v62 }
 0x95e   :  { %4865 = vmatmul.mubr.msk.f32.vlgmr.msra.gmra.mxu1 %vm184_vm0, %v5108_v38  ;;  %4893 = vmatmul.mubr.msk.f32.vlgmr.msra.gmra.mxu0 %vm184_vm0, %v5109_v10 }
 0x95f   :  { %4904 = vmatprep.subr.mxu1 %v3101_v29  ;;  %4867 = vmatprep.mubr.msk.f32.mxu1 %vm184_vm0, %v5110_v26  ;;  %v3430_v26 = vld [vmem:[#allocation13 + $0x160] sm:$0xff] }
 0x960   :  { %4905 = vmatpush3.msra.mxu1 %v3101_v29  ;;  %4895 = vmatprep.mubr.msk.f32.mxu0 %vm184_vm0, %v5111_v13  ;;  %v5124_v13 = vld [vmem:[%s6650_s5 + $0x90] sm:$0xff] }
 0x961   :  { %4906 = vmatprep.subr.mxu1 %v3100_v57  ;;  %4948 = vmatprep.subr.mxu0 %v2979_v49 }
 0x962   :  { %4907 = vmatpush3.msra.mxu1 %v3100_v57  ;;  %4896 = vmatmul.mubr.msk.f32.gmra.mxu0 %vm184_vm0, %v5112_v18  ;;  %v5126_v18 = vld [vmem:[%s6650_s5 + $0xa0] sm:$0xff] }
 0x963   :  { %4868 = vmatmul.mubr.msk.f32.gmra.mxu1 %vm184_vm0, %v5113_v61  ;;  %4908 = vmatprep.subr.mxu1 %v3099_v14  ;;  %v5128_v61 = vld [vmem:[%s6650_s5 + $0xb0] sm:$0xff] }
 0x964   :  { %4909 = vmatpush3.msra.mxu1 %v3099_v14  ;;  %4870 = vmatprep.mubr.msk.f32.mxu1 %vm184_vm0, %v5114_v15  ;;  %v3428_v14 = vld [vmem:[#allocation13 + $0x150] sm:$0xff]  ;;  %v5129_v15 = vld [vmem:[%s6650_s5 + $0xb8] sm:$0xff] }
 0x965   :  { %4910 = vmatprep.subr.mxu1 %v3098_v0  ;;  %4898 = vmatprep.mubr.msk.f32.mxu0 %vm184_vm0, %v5115_v17  ;;  %v3426_v17 = vld [vmem:[#allocation13 + $0x140] sm:$0xff] }
 0x966   :  { %4911 = vmatpush3.msra.mxu1 %v3098_v0  ;;  %4899 = vmatmul.mubr.msk.f32.gmra.mxu0 %vm184_vm0, %v5116_v48  ;;  %v5127_v0 = vld [vmem:[%s6650_s5 + $0xa8] sm:$0xff]  ;;  %v3425_v48 = vld [vmem:[#allocation13 + $0x138] sm:$0xff] }
 0x967   :  { %4871 = vmatmul.mubr.msk.f32.gmra.mxu1 %vm184_vm0, %v5117_v8  ;;  %4912 = vmatprep.subr.mxu1 %v3097_v16  ;;  %v3423_v8 = vld [vmem:[#allocation13 + $0x128] sm:$0xff] }
 0x968   :  { %4913 = vmatpush3.msra.mxu1 %v3097_v16  ;;  %4873 = vmatprep.mubr.msk.f32.mxu1 %vm184_vm0, %v5118_v7  ;;  %v3427_v16 = vld [vmem:[#allocation13 + $0x148] sm:$0xff]  ;;  %v3422_v7 = vld [vmem:[#allocation13 + $0x120] sm:$0xff] }
 0x969   :  { %4914 = vmatprep.subr.mxu1 %v3096_v58  ;;  %4901 = vmatprep.mubr.msk.f32.mxu0 %vm184_vm0, %v5119_v2  ;;  %v3420_v2 = vld [vmem:[#allocation13 + $0x110] sm:$0xff] }
 0x96a   :  { %4915 = vmatpush3.msra.mxu1 %v3096_v58  ;;  %4902 = vmatmul.mubr.msk.f32.gmra.mxu0 %vm184_vm0, %v5120_v19  ;;  %v3424_v58 = vld [vmem:[#allocation13 + $0x130] sm:$0xff]  ;;  %v3419_v19 = vld [vmem:[#allocation13 + $0x108] sm:$0xff] }
 0x96b   :  { %4874 = vmatmul.mubr.msk.f32.gmra.mxu1 %vm184_vm0, %v5121_v12  ;;  %4916 = vmatprep.subr.mxu1 %v3095_v9 }
 0x96c   :  { %4917 = vmatpush3.msra.mxu1 %v3095_v9  ;;  %4949 = vmatpush3.msra.mxu0 %v2979_v49  ;;  %v3421_v9 = vld [vmem:[#allocation13 + $0x118] sm:$0xff] }
 0x96d   :  { %4918 = vmatprep.subr.mxu1 %v3094_v20  ;;  %4950 = vmatprep.subr.mxu0 %v2978_v39 }
 0x96e   :  { %4919 = vmatpush3.msra.mxu1 %v3094_v20  ;;  %4951 = vmatpush3.msra.mxu0 %v2978_v39  ;;  %v3418_v20 = vld [vmem:[#allocation13 + $0x100] sm:$0xff] }
 0x96f   :  { %4920 = vmatprep.subr.mxu1 %v3093_v3  ;;  %4952 = vmatprep.subr.mxu0 %v2977_v31 }
 0x970   :  { %4921 = vmatpush3.msra.mxu1 %v3093_v3  ;;  %4953 = vmatpush3.msra.mxu0 %v2977_v31 }
 0x971   :  { %4922 = vmatprep.subr.mxu1 %v3092_v44  ;;  %4954 = vmatprep.subr.mxu0 %v2976_v34 }
 0x972   :  { %4923 = vmatpush3.msra.mxu1 %v3092_v44  ;;  %4955 = vmatpush3.msra.mxu0 %v2976_v34 }
 0x973   :  { %4924 = vmatprep.subr.mxu1 %v3091_v30  ;;  %4956 = vmatprep.subr.mxu0 %v2975_v5 }
 0x974   :  { %4925 = vmatpush3.msra.mxu1 %v3091_v30  ;;  %4957 = vmatpush3.msra.mxu0 %v2975_v5 }
 0x975   :  { %4926 = vmatprep.subr.mxu1 %v3090_v35  ;;  %4958 = vmatprep.subr.mxu0 %v2974_v28 }
 0x976   :  { %4927 = vmatpush3.msra.mxu1 %v3090_v35  ;;  %4959 = vmatpush3.msra.mxu0 %v2974_v28 }
 0x977   :  { %4928 = vmatprep.subr.mxu1 %v3089_v55  ;;  %4960 = vmatprep.subr.mxu0 %v2973_v60 }
 0x978   :  { %4929 = vmatpush3.msra.mxu1 %v3089_v55  ;;  %4961 = vmatpush3.msra.mxu0 %v2973_v60 }
 0x979   :  { %4930 = vmatprep.subr.mxu1 %v3088_v32  ;;  %4962 = vmatprep.subr.mxu0 %v2972_v23 }
 0x97a   :  { %4931 = vmatpush3.msra.mxu1 %v3088_v32  ;;  %4963 = vmatpush3.msra.mxu0 %v2972_v23 }
 0x97b   :  { %4932 = vmatprep.subr.mxu1 %v3087_v1  ;;  %4964 = vmatprep.subr.mxu0 %v2971_v22 }
 0x97c   :  { %4933 = vmatpush3.msra.mxu1 %v3087_v1  ;;  %4965 = vmatpush3.msra.mxu0 %v2971_v22 }
 0x97d   :  { %4934 = vmatprep.subr.mxu1 %v3086_v56  ;;  %4966 = vmatprep.subr.mxu0 %v2970_v4 }
 0x97e   :  { %4935 = vmatpush3.msra.mxu1 %v3086_v56  ;;  %4967 = vmatpush3.msra.mxu0 %v2970_v4 }
 0x97f   :  { %4992 = vmatprep.subr.mxu1 %v6279_v46  ;;  %4968 = vmatprep.subr.mxu0 %v2969_v50 }
 0x980   :  { %4969 = vmatpush3.msra.mxu0 %v2969_v50 }
 0x981   :  { %4970 = vmatprep.subr.mxu0 %v2968_v11 }
 0x982   :  { %4971 = vmatpush3.msra.mxu0 %v2968_v11 }
 0x983   :  { %4972 = vmatprep.subr.mxu0 %v2967_v40 }
 0x984   :  { %4973 = vmatpush3.msra.mxu0 %v2967_v40 }
 0x985   :  { %4974 = vmatprep.subr.mxu0 %v2966_v6 }
 0x986   :  { %4975 = vmatpush3.msra.mxu0 %v2966_v6 }
 0x987   :  { %4976 = vmatprep.subr.mxu0 %v2965_v27 }
 0x988   :  { %4977 = vmatpush3.msra.mxu0 %v2965_v27 }
 0x989   :  { %4978 = vmatprep.subr.mxu0 %v2964_v43 }
 0x98a   :  { %4979 = vmatpush3.msra.mxu0 %v2964_v43 }
 0x98b   :  { %5020 = vmatprep.subr.mxu0 %v3433_v33 }
 0xa1e   :  { %v4866_v42 = vpop.f32.mrf.mxu1  ;;  %v4894_v25 = vpop.f32.mrf.mxu0 }
 0xa20   :  { %v2925_v52 = vpop.f32.mrf.mxu1  ;;  %v3046_v24 = vpop.f32.mrf.mxu0 }
 0xa21   :  { %4936 = vmatprep.mubr.f32.mxu1 %v3046_v24  ;;  %4980 = vmatprep.mubr.f32.mxu0 %v2925_v52 }
 0xa22   :  { %v4897_v63 = vpop.f32.mrf.mxu0  ;;  %4937 = vmatmul.mubr.f32.vlgmr.msra.gmra.mxu1 %v4894_v25  ;;  %4981 = vmatmul.mubr.f32.vlgmr.msra.gmra.mxu0 %v4866_v42  ;;  %v6450_v25 = vld [vmem:[%s6654_s9 + $0x2] ss:$0 sm:$0xff]  ;;  %s5372_s9 = smov [#allocation17]  }
 0xa23   :  { %v4869_v47 = vpop.f32.mrf.mxu1  ;;  %4993 = vmatpush3.msra.mxu1 %v6279_v46  ;;  %5021 = vmatpush3.msra.mxu0 %v3433_v33  ;;  %s3809_s7 = sshll.u32 %s5372_s9, 4  ;;  %s3810_s7 = int_to_ptr.vmem [resolvable:$true] %s3809_s7 }
 0xa24   :  { %4994 = vmatprep.subr.mxu1 %v6286_v51  ;;  %v3056_v41 = vpop.f32.mrf.mxu0  ;;  %5022 = vmatprep.subr.mxu0 %v3432_v45  ;;  %s5326_s29 = scalar_lea.vmem %s3810_s7, 1024  ;;  %p5331_p4 = scmp.lt.s32.totalorder %s3810_s7, %s3810_s7 }
 0xa25   :  { %v2935_v36 = vpop.f32.mrf.mxu1  ;;  %4995 = vmatpush3.msra.mxu1 %v6286_v51  ;;  %4939 = vmatprep.mubr.f32.mxu1 %v3056_v41  ;;  %p5327_p3 = scmp.ne.s32.totalorder %s3810_s7, %s5326_s29  ;;  %p5332_p5 = scmp.lt.s32.totalorder %s5326_s29, %s5326_s29 }
 0xa26   :  { %4983 = vmatprep.mubr.f32.mxu0 %v2935_v36  ;;  %4996 = vmatprep.subr.mxu1 %v6295_v21  ;;  %v4900_v29 = vpop.f32.mrf.mxu0 }
 0xa27   :  { %v4872_v38 = vpop.f32.mrf.mxu1  ;;  %4940 = vmatmul.mubr.f32.gmra.mxu1 %v4897_v63  ;;  %4984 = vmatmul.mubr.f32.gmra.mxu0 %v4869_v47  ;;  %p5333_p6 = por %p5332_p5, %p5331_p4 }
 0xa28   :  { %4997 = vmatpush3.msra.mxu1 %v6295_v21  ;;  %v3066_v10 = vpop.f32.mrf.mxu0  ;;  %5023 = vmatpush3.msra.mxu0 %v3432_v45 }
 0xa29   :  { %4998 = vmatprep.subr.mxu1 %v6302_v53  ;;  %v2945_v46 = vpop.f32.mrf.mxu1  ;;  %4942 = vmatprep.mubr.f32.mxu1 %v3066_v10  ;;  %v6458_v10 = vld [vmem:[#allocation16 + $0x8] sm:$0xff]  ;;  %p5334_p7 = pnand %p5333_p6, %p5327_p3 }
 0xa2a   :  { %4999 = vmatpush3.msra.mxu1 %v6302_v53  ;;  %4986 = vmatprep.mubr.f32.mxu0 %v2945_v46  ;;  %v4903_v51 = vpop.f32.mrf.mxu0  ;;  %v3431_v53 = vld [vmem:[#allocation13 + $0x168] sm:$0xff] }
 0xa2b   :  { %5000 = vmatprep.subr.mxu1 %v6309_v54  ;;  %v4875_v57 = vpop.f32.mrf.mxu1  ;;  %4943 = vmatmul.mubr.f32.gmra.mxu1 %v4900_v29 }
 0xa2c   :  { %4987 = vmatmul.mubr.f32.gmra.mxu0 %v4872_v38  ;;  %5001 = vmatpush3.msra.mxu1 %v6309_v54  ;;  %v3076_v49 = vpop.f32.mrf.mxu0  ;;  %v5122_v54 = vld [vmem:[%s6650_s5 + $0x80] sm:$0xff] }
 0xa2d   :  { %5002 = vmatprep.subr.mxu1 %v6316_v59  ;;  %v2955_v21 = vpop.f32.mrf.mxu1  ;;  %4945 = vmatprep.mubr.f32.mxu1 %v3076_v49  ;;  %v6462_v49 = vld [vmem:[#allocation16] sm:$0xff] }
 0xa2e   :  { %5003 = vmatpush3.msra.mxu1 %v6316_v59  ;;  %4989 = vmatprep.mubr.f32.mxu0 %v2955_v21  ;;  %v5123_v59 = vld [vmem:[%s6650_s5 + $0x88] sm:$0xff] }
 0xa2f   :  { %5004 = vmatprep.subr.mxu1 %v6323_v37  ;;  %4946 = vmatmul.mubr.f32.gmra.mxu1 %v4903_v51 }
 0xa30   :  { %4990 = vmatmul.mubr.f32.gmra.mxu0 %v4875_v57  ;;  %5005 = vmatpush3.msra.mxu1 %v6323_v37  ;;  %v3429_v37 = vld [vmem:[#allocation13 + $0x158] sm:$0xff] }
 0xa31   :  { %5006 = vmatprep.subr.mxu1 %v6329_v62  ;;  %5008 = vmatprep.mubr.msk.f32.mxu1 %vm184_vm0, %v5122_v54 }
 0xa32   :  { %5007 = vmatpush3.msra.mxu1 %v6329_v62  ;;  %5024 = vmatprep.subr.mxu0 %v3431_v53  ;;  %v5125_v62 = vld [vmem:[%s6650_s5 + $0x98] sm:$0xff] }
 0xa33   :  { %5009 = vmatmul.mubr.msk.f32.vlgmr.msra.gmra.mxu1 %vm184_vm0, %v5123_v59  ;;  %5025 = vmatpush3.msra.mxu0 %v3431_v53  ;;  %v6469_v59 = vld [vmem:[#allocation16 + $0x48] sm:$0xff] }
 0xa34   :  { %5011 = vmatprep.mubr.msk.f32.mxu1 %vm184_vm0, %v5124_v13  ;;  %5026 = vmatprep.subr.mxu0 %v3430_v26 }
 0xa35   :  { %5027 = vmatpush3.msra.mxu0 %v3430_v26 }
 0xa36   :  { %5028 = vmatprep.subr.mxu0 %v3429_v37 }
 0xa37   :  { %5012 = vmatmul.mubr.msk.f32.gmra.mxu1 %vm184_vm0, %v5125_v62  ;;  %5029 = vmatpush3.msra.mxu0 %v3429_v37  ;;  %v6473_v62 = vld [vmem:[#allocation16 + $0x40] sm:$0xff] }
 0xa38   :  { %5014 = vmatprep.mubr.msk.f32.mxu1 %vm184_vm0, %v5126_v18  ;;  %5030 = vmatprep.subr.mxu0 %v3428_v14 }
 0xa39   :  { %5031 = vmatpush3.msra.mxu0 %v3428_v14 }
 0xa3a   :  { %5032 = vmatprep.subr.mxu0 %v3427_v16 }
 0xa3b   :  { %5015 = vmatmul.mubr.msk.f32.gmra.mxu1 %vm184_vm0, %v5127_v0  ;;  %5033 = vmatpush3.msra.mxu0 %v3427_v16 }
 0xa3c   :  { %5017 = vmatprep.mubr.msk.f32.mxu1 %vm184_vm0, %v5128_v61  ;;  %5034 = vmatprep.subr.mxu0 %v3426_v17 }
 0xa3d   :  { %5035 = vmatpush3.msra.mxu0 %v3426_v17 }
 0xa3e   :  { %5036 = vmatprep.subr.mxu0 %v3425_v48 }
 0xa3f   :  { %5018 = vmatmul.mubr.msk.f32.gmra.mxu1 %vm184_vm0, %v5129_v15  ;;  %5037 = vmatpush3.msra.mxu0 %v3425_v48  ;;  %v6480_v15 = vld [vmem:[#allocation16 + $0x58] sm:$0xff] }
 0xa40   :  { %5038 = vmatprep.subr.mxu0 %v3424_v58 }
 0xa41   :  { %5039 = vmatpush3.msra.mxu0 %v3424_v58  ;;  %v6485_v58 = vld [vmem:[#allocation16 + $0x18] sm:$0xff] }
 0xa42   :  { %5040 = vmatprep.subr.mxu0 %v3423_v8 }
 0xa43   :  { %5041 = vmatpush3.msra.mxu0 %v3423_v8 }
 0xa44   :  { %5042 = vmatprep.subr.mxu0 %v3422_v7 }
 0xa45   :  { %5043 = vmatpush3.msra.mxu0 %v3422_v7 }
 0xa46   :  { %5044 = vmatprep.subr.mxu0 %v3421_v9 }
 0xa47   :  { %5045 = vmatpush3.msra.mxu0 %v3421_v9 }
 0xa48   :  { %5046 = vmatprep.subr.mxu0 %v3420_v2 }
 0xa49   :  { %5047 = vmatpush3.msra.mxu0 %v3420_v2  ;;  %v6492_v2 = vld [vmem:[#allocation16 + $0x50] sm:$0xff] }
 0xa4a   :  { %5048 = vmatprep.subr.mxu0 %v3419_v19 }
 0xa4b   :  { %5049 = vmatpush3.msra.mxu0 %v3419_v19 }
 0xa4c   :  { %5050 = vmatprep.subr.mxu0 %v3418_v20 }
 0xa4d   :  { %5051 = vmatpush3.msra.mxu0 %v3418_v20 }
 0xae2   :  { %v4938_v39 = vpop.f32.mrf.mxu1  ;;  %v4982_v56 = vpop.f32.mrf.mxu0 }
 0xae3   :  { %v3279_v33 = vadd.f32 %v4982_v56, %v4938_v39 }
 0xae4   :  { %v3168_v12 = vpop.f32.mrf.mxu1  ;;  %v3273_v4 = vpop.f32.mrf.mxu0 }
 0xae5   :  { %v3274_v52 = vadd.f32 %v3273_v4, %v3168_v12  ;;  %v6497_v12 = vld [vmem:[#allocation16 + $0x10] sm:$0xff] }
 0xae6   :  { %v6527_v4 = vld [vmem:[#allocation16 + $0x70] sm:$0xff] }
 0xae7   :  { %v4941_v3 = vpop.f32.mrf.mxu1  ;;  %v4985_v50 = vpop.f32.mrf.mxu0 }
 0xae8   :  { %v3289_v63 = vadd.f32 %v4985_v50, %v4941_v3 }
 0xae9   :  { %v3178_v31 = vpop.f32.mrf.mxu1  ;;  %v3283_v11 = vpop.f32.mrf.mxu0 }
 0xaea   :  { %v3284_v57 = vadd.f32 %v3283_v11, %v3178_v31  ;;  %v6531_v11 = vld [vmem:[#allocation16 + $0x30] sm:$0xff] }
 0xaeb   :  { %v4944_v44 = vpop.f32.mrf.mxu1 }
 0xaec   :  { %v4988_v40 = vpop.f32.mrf.mxu0 }
 0xaed   :  { %v6441_v34 = vpop.f32.mrf.mxu1  ;;  %v3299_v14 = vadd.f32 %v4988_v40, %v4944_v44 }
 0xaee   :  { %v3293_v6 = vpop.f32.mrf.mxu0 }
 0xaef   :  { %v6443_v30 = vpop.f32.mrf.mxu1  ;;  %v3294_v48 = vadd.f32 %v3293_v6, %v6441_v34  ;;  %v6504_v34 = vld [vmem:[#allocation16 + $0x68] sm:$0xff]  ;;  %v6535_v6 = vld [vmem:[#allocation16 + $0x78] sm:$0xff] }
 0xaf0   :  { %v4991_v27 = vpop.f32.mrf.mxu0 }
 0xaf1   :  { %v6445_v5 = vpop.f32.mrf.mxu1 }
 0xaf2   :  { %v3303_v43 = vpop.f32.mrf.mxu0 }
 0xaf3   :  { %v5010_v35 = vpop.f32.mrf.mxu1  ;;  %v3304_v39 = vadd.f32 %v3303_v43, %v6445_v5  ;;  %v6509_v5 = vld [vmem:[#allocation16 + $0x28] sm:$0xff]  ;;  %v6539_v43 = vld [vmem:[#allocation16 + $0x38] sm:$0xff] }
 0xaf5   :  { %v3378_v28 = vpop.f32.mrf.mxu1 }
 0xaf6   :  { %5052 = vmatprep.mubr.f32.mxu0 %v3378_v28  ;;  %v3309_v28 = vadd.f32 %v4991_v27, %v6443_v30 }
 0xaf7   :  { %v5013_v55 = vpop.f32.mrf.mxu1  ;;  %5053 = vmatmul.mubr.f32.vlgmr.msra.gmra.mxu0 %v5010_v35 }
 0xaf9   :  { %v3388_v60 = vpop.f32.mrf.mxu1 }
 0xafa   :  { %5055 = vmatprep.mubr.f32.mxu0 %v3388_v60 }
 0xafb   :  { %v5016_v32 = vpop.f32.mrf.mxu1  ;;  %5056 = vmatmul.mubr.f32.gmra.mxu0 %v5013_v55 }
 0xafd   :  { %v3398_v23 = vpop.f32.mrf.mxu1 }
 0xafe   :  { %5058 = vmatprep.mubr.f32.mxu0 %v3398_v23  ;;  %v6516_v23 = vld [vmem:[#allocation16 + $0x60] sm:$0xff] }
 0xaff   :  { %v5019_v1 = vpop.f32.mrf.mxu1  ;;  %5059 = vmatmul.mubr.f32.gmra.mxu0 %v5016_v32 }
 0xb01   :  { %v3408_v22 = vpop.f32.mrf.mxu1 }
 0xb02   :  { %5061 = vmatprep.mubr.f32.mxu0 %v3408_v22  ;;  %v6520_v22 = vld [vmem:[#allocation16 + $0x20] sm:$0xff] }
 0xb03   :  { %5062 = vmatmul.mubr.f32.gmra.mxu0 %v5019_v1 }
 0xbb7   :  { %v5054_v42 = vpop.f32.mrf.mxu0 }
 0xbb8   :  { %v3540_v24 = vadd.f32 %v5054_v42, %v3279_v33 }
 0xbb9   :  { %v3500_v45 = vpop.f32.mrf.mxu0 }
 0xbba   :  { %v6453_v47 = vadd.f32 %v6450_v25, %v3540_v24  ;;  %v3539_v41 = vadd.f32 %v3500_v45, %v3274_v52 }
 0xbbb   :  { %v5057_v36 = vpop.f32.mrf.mxu0 }
 0xbbc   :  { %v6456_v29 = vadd.f32 %v6450_v25, %v3539_v41  ;;  %v3542_v38 = vadd.f32 %v5057_v36, %v3289_v63  ;;  %v3561_v46 = vmul.f32 %v6458_v10, %v6453_v47  ;;  %v3607_v37 = vmul.f32 %v6469_v59, %v6453_v47 }
 0xbbd   :  { %v3510_v51 = vpop.f32.mrf.mxu0 }
 0xbbe   :  { %3570 = vadd.xlane.f32.xlu1 %v3561_v46  ;;  %v3560_v21 = vmul.f32 %v6462_v49, %v6456_v29  ;;  %v6467_v54 = vadd.f32 %v6450_v25, %v3542_v38  ;;  %v3541_v26 = vadd.f32 %v3510_v51, %v3284_v57  ;;  %v3606_v18 = vmul.f32 %v6473_v62, %v6456_v29 }
 0xbbf   :  { %v5060_v53 = vpop.f32.mrf.mxu0 }
 0xbc0   :  { %3568 = vadd.xlane.f32.xlu0 %v3560_v21  ;;  %v6478_v0 = vadd.f32 %v6450_v25, %v3541_v26  ;;  %v3544_v61 = vadd.f32 %v5060_v53, %v3299_v14  ;;  %v3609_v16 = vmul.f32 %v6480_v15, %v6467_v54  ;;  %v3563_v8 = vmul.f32 %v6485_v58, %v6467_v54 }
 0xbc1   :  { %v3520_v13 = vpop.f32.mrf.mxu0 }
 0xbc2   :  { %3616 = vadd.xlane.f32.xlu1 %v3607_v37  ;;  %v6490_v7 = vadd.f32 %v6450_v25, %v3544_v61  ;;  %v3543_v9 = vadd.f32 %v3520_v13, %v3294_v48  ;;  %v3608_v19 = vmul.f32 %v6492_v2, %v6478_v0  ;;  %v3562_v3 = vmul.f32 %v6497_v12, %v6478_v0 }
 0xbc3   :  { %v5063_v17 = vpop.f32.mrf.mxu0 }
 0xbc4   :  { %3614 = vadd.xlane.f32.xlu0 %v3606_v18  ;;  %v6502_v31 = vadd.f32 %v6450_v25, %v3543_v9  ;;  %v3611_v35 = vmul.f32 %v6504_v34, %v6490_v7  ;;  %v3565_v55 = vmul.f32 %v6509_v5, %v6490_v7  ;;  %v3546_v60 = vadd.f32 %v5063_v17, %v3309_v28 }
 0xbc5   :  { %v3530_v20 = vpop.f32.mrf.mxu0 }
 0xbc6   :  { %3620 = vadd.xlane.f32.xlu1 %v3609_v16  ;;  %v3545_v44 = vadd.f32 %v3530_v20, %v3304_v39  ;;  %v3610_v1 = vmul.f32 %v6516_v23, %v6502_v31  ;;  %v3564_v30 = vmul.f32 %v6520_v22, %v6502_v31  ;;  %v6525_v56 = vadd.f32 %v6450_v25, %v3546_v60 }
 0xbc8   :  { %3574 = vadd.xlane.f32.xlu0 %v3563_v8  ;;  %v6514_v32 = vadd.f32 %v6450_v25, %v3545_v44  ;;  %v3613_v27 = vmul.f32 %v6535_v6, %v6525_v56  ;;  %v3567_v33 = vmul.f32 %v6539_v43, %v6525_v56 }
 0xbca   :  { %3618 = vadd.xlane.f32.xlu1 %v3608_v19  ;;  %v3612_v50 = vmul.f32 %v6527_v4, %v6514_v32  ;;  %v3566_v40 = vmul.f32 %v6531_v11, %v6514_v32 }
 0xbcc   :  { %3572 = vadd.xlane.f32.xlu0 %v3562_v3 }
 0xbce   :  { %3624 = vadd.xlane.f32.xlu1 %v3611_v35 }
 0xbd0   :  { %3578 = vadd.xlane.f32.xlu0 %v3565_v55 }
 0xbd2   :  { %3622 = vadd.xlane.f32.xlu1 %v3610_v1 }
 0xbd4   :  { %3576 = vadd.xlane.f32.xlu0 %v3564_v30 }
 0xbd6   :  { %3626 = vadd.xlane.f32.xlu1 %v3612_v50 }
 0xbd8   :  { %3580 = vadd.xlane.f32.xlu0 %v3566_v40 }
 0xbda   :  { %3628 = vadd.xlane.f32.xlu1 %v3613_v27 }
 0xbdc   :  { %3582 = vadd.xlane.f32.xlu0 %v3567_v33 }
 0xc47   :  { %v3571_v42 = vpop.xlane.xlu1 %3570 }
 0xc49   :  { %v3569_v25 = vpop.xlane.xlu0 %3568 }
 0xc4a   :  { %v3584_v46 = vadd.f32 %v3571_v42, %v3569_v25 }
 0xc4b   :  { %v3617_v52 = vpop.xlane.xlu1 %3616 }
 0xc4d   :  { %v3615_v24 = vpop.xlane.xlu0 %3614 }
 0xc4e   :  { %v3630_v36 = vadd.f32 %v3617_v52, %v3615_v24 }
 0xc4f   :  { %v3621_v45 = vpop.xlane.xlu1 %3620 }
 0xc51   :  { %v3575_v63 = vpop.xlane.xlu0 %3574 }
 0xc53   :  { %v3619_v41 = vpop.xlane.xlu1 %3618 }
 0xc54   :  { %v3631_v51 = vadd.f32 %v3630_v36, %v3619_v41 }
 0xc55   :  { %v3573_v38 = vpop.xlane.xlu0 %3572 }
 0xc56   :  { %v3585_v21 = vadd.f32 %v3584_v46, %v3573_v38  ;;  %v3632_v26 = vadd.f32 %v3631_v51, %v3621_v45 }
 0xc57   :  { %v3625_v57 = vpop.xlane.xlu1 %3624 }
 0xc58   :  { %v3586_v14 = vadd.f32 %v3585_v21, %v3575_v63 }
 0xc59   :  { %v3579_v53 = vpop.xlane.xlu0 %3578 }
 0xc5b   :  { %v3623_v37 = vpop.xlane.xlu1 %3622 }
 0xc5c   :  { %v3633_v13 = vadd.f32 %v3632_v26, %v3623_v37 }
 0xc5d   :  { %v3577_v18 = vpop.xlane.xlu0 %3576 }
 0xc5e   :  { %v3587_v61 = vadd.f32 %v3586_v14, %v3577_v18  ;;  %v3634_v16 = vadd.f32 %v3633_v13, %v3625_v57 }
 0xc5f   :  { %v3627_v17 = vpop.xlane.xlu1 %3626 }
 0xc60   :  { %v3588_v48 = vadd.f32 %v3587_v61, %v3579_v53  ;;  %v3635_v9 = vadd.f32 %v3634_v16, %v3627_v17 }
 0xc61   :  { %v3581_v8 = vpop.xlane.xlu0 %3580 }
 0xc62   :  { %v3589_v20 = vadd.f32 %v3588_v48, %v3581_v8 }
 0xc63   :  { %v3629_v19 = vpop.xlane.xlu1 %3628 }
 0xc64   :  { %v3636_v39 = vadd.f32 %v3635_v9, %v3629_v19 }
 0xc65   :  { %v3583_v3 = vpop.xlane.xlu0 %3582 }
 0xc66   :  { %v3637_v44 = vrot.slane %v3636_v39, 4  ;;  %v3590_v35 = vadd.f32 %v3589_v20, %v3583_v3 }
 0xc68   :  { %v3638_v28 = vadd.f32 %v3637_v44, %v3636_v39  ;;  %v3591_v55 = vrot.slane %v3590_v35, 4 }
 0xc6a   :  { %v3639_v60 = vrot.slane %v3638_v28, 2  ;;  %v3592_v1 = vadd.f32 %v3591_v55, %v3590_v35 }
 0xc6c   :  { %v3640_v30 = vadd.f32 %v3639_v60, %v3638_v28  ;;  %v3593_v50 = vrot.slane %v3592_v1, 2 }
 0xc6e   :  { %v3641_v40 = vrot.slane %v3640_v30, 1  ;;  %v3594_v27 = vadd.f32 %v3593_v50, %v3592_v1 }
 0xc70   :  { %v3642_v33 = vadd.f32 %v3641_v40, %v3640_v30  ;;  %v3595_v42 = vrot.slane %v3594_v27, 1 }
 0xc72   :  { %v3643_v25 = vmul.f32 0.00048828125, %v3642_v33  ;;  %v3596_v52 = vadd.f32 %v3595_v42, %v3594_v27 }
 0xc74   :  { %v3597_v24 = vmul.f32 0.00048828125, %v3596_v52  ;;  %v3645_v45 = vmul.f32 %v6469_v59, %v3643_v25  ;;  %v3644_v36 = vmul.f32 %v6473_v62, %v3643_v25  ;;  %v3646_v57 = vmul.f32 %v6492_v2, %v3643_v25 }
 0xc75   :  { %v3647_v18 = vmul.f32 %v6480_v15, %v3643_v25  ;;  %v3648_v48 = vmul.f32 %v6516_v23, %v3643_v25 }
 0xc76   :  { %v3599_v63 = vmul.f32 %v6458_v10, %v3597_v24  ;;  %v3598_v41 = vmul.f32 %v6462_v49, %v3597_v24  ;;  %v3600_v38 = vmul.f32 %v6497_v12, %v3597_v24  ;;  %v3601_v37 = vmul.f32 %v6485_v58, %v3597_v24 }
 0xc77   :  { %v3602_v61 = vmul.f32 %v6520_v22, %v3597_v24  ;;  %v3603_v9 = vmul.f32 %v6509_v5, %v3597_v24  ;;  %v3604_v35 = vmul.f32 %v6531_v11, %v3597_v24  ;;  %v3605_v50 = vmul.f32 %v6539_v43, %v3597_v24 }
 0xc78   :  { %v3653_v46 = vadd.f32 %v3645_v45, %v3599_v63  ;;  %v3652_v51 = vadd.f32 %v3644_v36, %v3598_v41  ;;  %v3654_v26 = vadd.f32 %v3646_v57, %v3600_v38  ;;  %v3655_v17 = vadd.f32 %v3647_v18, %v3601_v37 }
 0xc79   :  { %v3656_v8 = vadd.f32 %v3648_v48, %v3602_v61 }
 0xc7a   :  { %v6550_v21 = vsub.f32 %v6453_v47, %v3653_v46  ;;  %v6553_v53 = vsub.f32 %v6456_v29, %v3652_v51  ;;  %v6565_v29 = vsub.f32 %v6478_v0, %v3654_v26  ;;  %v6574_v3 = vsub.f32 %v6467_v54, %v3655_v17 }
 0xc7b   :  { %v3649_v0 = vmul.f32 %v6504_v34, %v3643_v25  ;;  %v6583_v1 = vsub.f32 %v6502_v31, %v3656_v8  ;;  %v3650_v54 = vmul.f32 %v6527_v4, %v3643_v25  ;;  %v3651_v31 = vmul.f32 %v6535_v6, %v3643_v25 }
 0xc7c   :  { %v3669_v13 = vmul.f32 %v6550_v21, %v6550_v21  ;;  %v3668_v14 = vmul.f32 %v6553_v53, %v6553_v53  ;;  %v3670_v39 = vmul.f32 %v6565_v29, %v6565_v29  ;;  %v3671_v60 = vmul.f32 %v6574_v3, %v6574_v3 }
 0xc7d   :  { %v3657_v44 = vadd.f32 %v3649_v0, %v3603_v9  ;;  %v3658_v30 = vadd.f32 %v3650_v54, %v3604_v35  ;;  %v3672_v33 = vmul.f32 %v6583_v1, %v6583_v1  ;;  %v3659_v41 = vadd.f32 %v3651_v31, %v3605_v50 }
 0xc7e   :  { %v3677_v16 = vmul.f32 %v6458_v10, %v3669_v13  ;;  %v3676_v47 = vmul.f32 %v6462_v49, %v3668_v14  ;;  %v3725_v19 = vmul.f32 %v6469_v59, %v3669_v13  ;;  %v3724_v20 = vmul.f32 %v6473_v62, %v3668_v14 }
 0xc7f   :  { %v3726_v28 = vmul.f32 %v6492_v2, %v3670_v39  ;;  %v3678_v55 = vmul.f32 %v6497_v12, %v3670_v39  ;;  %v3727_v40 = vmul.f32 %v6480_v15, %v3671_v60  ;;  %v3679_v27 = vmul.f32 %v6485_v58, %v3671_v60 }
 0xc80   :  { %3686 = vadd.xlane.f32.xlu1 %v3677_v16  ;;  %3684 = vadd.xlane.f32.xlu0 %v3676_v47  ;;  %v6592_v42 = vsub.f32 %v6490_v7, %v3657_v44  ;;  %v6596_v52 = vsub.f32 %v6514_v32, %v3658_v30  ;;  %v3728_v45 = vmul.f32 %v6516_v23, %v3672_v33 }
 0xc81   :  { %v3680_v24 = vmul.f32 %v6520_v22, %v3672_v33  ;;  %v6607_v32 = vsub.f32 %v6525_v56, %v3659_v41 }
 0xc82   :  { %v3673_v63 = vmul.f32 %v6592_v42, %v6592_v42  ;;  %v3674_v25 = vmul.f32 %v6596_v52, %v6596_v52 }
 0xc83   :  { %v3675_v51 = vmul.f32 %v6607_v32, %v6607_v32 }
 0xc84   :  { %3734 = vadd.xlane.f32.xlu1 %v3725_v19  ;;  %3732 = vadd.xlane.f32.xlu0 %v3724_v20  ;;  %v3729_v7 = vmul.f32 %v6504_v34, %v3673_v63  ;;  %v3681_v36 = vmul.f32 %v6509_v5, %v3673_v63  ;;  %v3730_v38 = vmul.f32 %v6527_v4, %v3674_v25 }
 0xc85   :  { %v3682_v46 = vmul.f32 %v6531_v11, %v3674_v25  ;;  %v3731_v57 = vmul.f32 %v6535_v6, %v3675_v51  ;;  %v3683_v26 = vmul.f32 %v6539_v43, %v3675_v51 }
 0xc88   :  { %3736 = vadd.xlane.f32.xlu1 %v3726_v28  ;;  %3688 = vadd.xlane.f32.xlu0 %v3678_v55 }
 0xc8c   :  { %3738 = vadd.xlane.f32.xlu1 %v3727_v40  ;;  %3690 = vadd.xlane.f32.xlu0 %v3679_v27 }
 0xc90   :  { %3740 = vadd.xlane.f32.xlu1 %v3728_v45  ;;  %3692 = vadd.xlane.f32.xlu0 %v3680_v24 }
 0xc94   :  { %3742 = vadd.xlane.f32.xlu1 %v3729_v7  ;;  %3694 = vadd.xlane.f32.xlu0 %v3681_v36 }
 0xc98   :  { %3744 = vadd.xlane.f32.xlu1 %v3730_v38  ;;  %3696 = vadd.xlane.f32.xlu0 %v3682_v46 }
 0xc9c   :  { %3746 = vadd.xlane.f32.xlu1 %v3731_v57  ;;  %3698 = vadd.xlane.f32.xlu0 %v3683_v26 }
 0xd09   :  { %v3687_v37 = vpop.xlane.xlu1 %3686  ;;  %v3685_v56 = vpop.xlane.xlu0 %3684 }
 0xd0a   :  { %v3700_v8 = vadd.f32 %v3687_v37, %v3685_v56 }
 0xd0d   :  { %v3735_v13 = vpop.xlane.xlu1 %3734  ;;  %v3733_v14 = vpop.xlane.xlu0 %3732 }
 0xd0e   :  { %v3748_v9 = vadd.f32 %v3735_v13, %v3733_v14 }
 0xd11   :  { %v3737_v18 = vpop.xlane.xlu1 %3736  ;;  %v3689_v61 = vpop.xlane.xlu0 %3688 }
 0xd12   :  { %v3749_v19 = vadd.f32 %v3748_v9, %v3737_v18  ;;  %v3701_v20 = vadd.f32 %v3700_v8, %v3689_v61 }
 0xd15   :  { %v3739_v16 = vpop.xlane.xlu1 %3738  ;;  %v3691_v47 = vpop.xlane.xlu0 %3690 }
 0xd16   :  { %v3750_v44 = vadd.f32 %v3749_v19, %v3739_v16  ;;  %v3702_v35 = vadd.f32 %v3701_v20, %v3691_v47 }
 0xd19   :  { %v3741_v17 = vpop.xlane.xlu1 %3740  ;;  %v3693_v48 = vpop.xlane.xlu0 %3692 }
 0xd1a   :  { %v3751_v28 = vadd.f32 %v3750_v44, %v3741_v17  ;;  %v3703_v55 = vadd.f32 %v3702_v35, %v3693_v48 }
 0xd1d   :  { %v3743_v39 = vpop.xlane.xlu1 %3742  ;;  %v3695_v0 = vpop.xlane.xlu0 %3694 }
 0xd1e   :  { %v3752_v30 = vadd.f32 %v3751_v28, %v3743_v39  ;;  %v3704_v50 = vadd.f32 %v3703_v55, %v3695_v0 }
 0xd21   :  { %v3745_v60 = vpop.xlane.xlu1 %3744  ;;  %v3697_v54 = vpop.xlane.xlu0 %3696 }
 0xd22   :  { %v3753_v40 = vadd.f32 %v3752_v30, %v3745_v60  ;;  %v3705_v27 = vadd.f32 %v3704_v50, %v3697_v54 }
 0xd25   :  { %v3747_v33 = vpop.xlane.xlu1 %3746  ;;  %v3699_v31 = vpop.xlane.xlu0 %3698 }
 0xd26   :  { %v3754_v45 = vadd.f32 %v3753_v40, %v3747_v33  ;;  %v3706_v24 = vadd.f32 %v3705_v27, %v3699_v31 }
 0xd28   :  { %v3755_v63 = vrot.slane %v3754_v45, 4  ;;  %v3707_v41 = vrot.slane %v3706_v24, 4 }
 0xd2a   :  { %v3756_v7 = vadd.f32 %v3755_v63, %v3754_v45  ;;  %v3708_v36 = vadd.f32 %v3707_v41, %v3706_v24 }
 0xd2c   :  { %v3757_v25 = vrot.slane %v3756_v7, 2  ;;  %v3709_v38 = vrot.slane %v3708_v36, 2 }
 0xd2e   :  { %v3758_v46 = vadd.f32 %v3757_v25, %v3756_v7  ;;  %v3710_v51 = vadd.f32 %v3709_v38, %v3708_v36 }
 0xd30   :  { %v3759_v57 = vrot.slane %v3758_v46, 1  ;;  %v3711_v26 = vrot.slane %v3710_v51, 1 }
 0xd32   :  { %v3760_v37 = vadd.f32 %v3759_v57, %v3758_v46  ;;  %v3712_v56 = vadd.f32 %v3711_v26, %v3710_v51 }
 0xd34   :  { %v3761_v13 = vmul.f32 0.00048828125, %v3760_v37  ;;  %v3713_v14 = vmul.f32 0.00048828125, %v3712_v56 }
 0xd36   :  { %v3762_v18 = vadd.f32 1e-05, %v3761_v13  ;;  %v3714_v61 = vadd.f32 1e-05, %v3713_v14 }
 0xd38   :  { %5103 = vrsqrt.f32 %v3762_v18 }
 0xd39   :  { %5105 = vrsqrt.f32 %v3714_v61 }
 0xd45   :  { %v5104_v16 = vpop.eup %5103 }
 0xd46   :  { %v5106_v47 = vpop.eup %5105  ;;  %v3764_v17 = vmul.f32 %v6473_v62, %v5104_v16  ;;  %v3765_v48 = vmul.f32 %v6469_v59, %v5104_v16  ;;  %v3766_v8 = vmul.f32 %v6492_v2, %v5104_v16  ;;  %v3767_v9 = vmul.f32 %v6480_v15, %v5104_v16 }
 0xd47   :  { %v3716_v19 = vmul.f32 %v6462_v49, %v5106_v47  ;;  %v3717_v20 = vmul.f32 %v6458_v10, %v5106_v47  ;;  %v3718_v39 = vmul.f32 %v6497_v12, %v5106_v47  ;;  %v3719_v0 = vmul.f32 %v6485_v58, %v5106_v47 }
 0xd48   :  { %v3720_v44 = vmul.f32 %v6520_v22, %v5106_v47  ;;  %v3721_v35 = vmul.f32 %v6509_v5, %v5106_v47  ;;  %v3722_v62 = vmul.f32 %v6531_v11, %v5106_v47  ;;  %v3723_v59 = vmul.f32 %v6539_v43, %v5106_v47 }
 0xd49   :  { %v3768_v2 = vmul.f32 %v6516_v23, %v5104_v16  ;;  %v3769_v15 = vmul.f32 %v6504_v34, %v5104_v16  ;;  %v3770_v49 = vmul.f32 %v6527_v4, %v5104_v16  ;;  %v3771_v10 = vmul.f32 %v6535_v6, %v5104_v16 }
 0xd4a   :  { %v3772_v28 = vadd.f32 %v3764_v17, %v3716_v19  ;;  %v3773_v12 = vadd.f32 %v3765_v48, %v3717_v20  ;;  %v3774_v55 = vadd.f32 %v3766_v8, %v3718_v39  ;;  %v3775_v58 = vadd.f32 %v3767_v9, %v3719_v0 }
 0xd4b   :  { %v3776_v60 = vadd.f32 %v3768_v2, %v3720_v44  ;;  %v3777_v22 = vadd.f32 %v3769_v15, %v3721_v35  ;;  %v3778_v54 = vadd.f32 %v3770_v49, %v3722_v62  ;;  %v3779_v5 = vadd.f32 %v3771_v10, %v3723_v59 }
 0xd4c   :  { %v3780_v11 = vmul.f32 %v3772_v28, %v6553_v53  ;;  %v3781_v43 = vmul.f32 %v3773_v12, %v6550_v21  ;;  %v3782_v23 = vmul.f32 %v3774_v55, %v6565_v29  ;;  %v3783_v34 = vmul.f32 %v3775_v58, %v6574_v3 }
 0xd4d   :  { %v3784_v4 = vmul.f32 %v3776_v60, %v6583_v1  ;;  %v3785_v6 = vmul.f32 %v3777_v22, %v6592_v42  ;;  %v3786_v30 = vmul.f32 %v3778_v54, %v6596_v52  ;;  %v3787_v50 = vmul.f32 %v3779_v5, %v6607_v32 }
 0xd4e   :  { %v3788_v40 = vmax.f32 %v3780_v11, 0.0  ;;  %v3789_v27 = vmax.f32 %v3781_v43, 0.0  ;;  %v3790_v33 = vmax.f32 %v3782_v23, 0.0  ;;  %v3791_v53 = vmax.f32 %v3783_v34, 0.0 }
 0xd4f   :  { %v3792_v31 = vmax.f32 %v3784_v4, 0.0  ;;  %v3793_v21 = vmax.f32 %v3785_v6, 0.0  ;;  %v3794_v45 = vmax.f32 %v3786_v30, 0.0  ;;  %v3795_v29 = vmax.f32 %v3787_v50, 0.0 }
 0xd50   :  { %3796 = vst [vmem:[#allocation17] sm:$0xff] %v3788_v40  ;;  %3797 = vst [vmem:[#allocation17 + $0x8] sm:$0xff] %v3789_v27 }
 0xd51   :  { %3798 = vst [vmem:[#allocation17 + $0x10] sm:$0xff] %v3790_v33  ;;  %3799 = vst [vmem:[#allocation17 + $0x18] sm:$0xff] %v3791_v53 }
 0xd52   :  { %3800 = vst [vmem:[#allocation17 + $0x20] sm:$0xff] %v3792_v31  ;;  %3801 = vst [vmem:[#allocation17 + $0x28] sm:$0xff] %v3793_v21 }
 0xd53   :  { %3802 = vst [vmem:[#allocation17 + $0x30] sm:$0xff] %v3794_v45  ;;  %3803 = vst [vmem:[#allocation17 + $0x38] sm:$0xff] %v3795_v29 }
 0xd54   :  { %5337 = shalt.err (!%p5334_p7)
}
 0xd55   :  { %3815 = dma.vmem_to_hbm [thread:$0]  %s3810_s7, 1024, %s6657_s12, [#allocation4], %s5360_s26, %s5360_s26, %s5361_s27  }
 0xd56   :  { %5356 = dma.done.wait [#allocation4], 1024  }
 0xd57   :  { %5357 = vsyncadd [#allocation4], 4294966272 }
 0xd58   :  { %3819 = vsyncpa [#allocation3], 1 }
 0xd59   :  { %3820 = vsyncpa [#allocation6], 1 }
 0xd5a   :  { %3821 = vsyncpa [#allocation9], 1 }
 0xd5b   :  { %3822 = vsyncpa [#allocation12], 1 }
 0xd5c   :  { %3823 = vsyncpa [#allocation15], 1 }
 0xd5d   :  { %3824 = vsyncpa [#allocation4], 1 }

</bundles_post_ra>
